<compile_context>
chip_gen: v7x
topology: tpu7x:2x2x1
jax: 0.10.0
libtpu: 0.0.40
codegen_flags: <defaults>
</compile_context>

<pallas_src>
import functools

import jax
import jax.numpy as jnp
from jax.experimental import pallas as pl
from jax.experimental.pallas import tpu as pltpu

EPS = 1e-5
LANE = 128
SUBLANE = 8
MAX_TK = 1024   # Kp never exceeds round_up(K, 128) for K <= 1024
MAX_TM = 1024


def _round_up(x, m):
    return -(-x // m) * m


def _tile_m(mp0, max_tm):
    """Largest M tile that still gives >= 2 tiles (so the 'parallel' M axis can
    split across v7x's two TensorCores); big tiles amortize per-step overhead on
    v5e/v6e."""
    if mp0 <= 2 * SUBLANE:
        return mp0
    return min(max_tm, _round_up(-(-mp0 // 2), SUBLANE))


def _vmem_limit(*bufs):
    """bufs: (n_elems, itemsize_bytes, n_copies). Scoped-VMEM grant covering the
    double-buffered working set plus headroom, capped at v7x's 64 MiB physical."""
    total = sum(int(n) * int(b) * int(c) for n, b, c in bufs)
    return int(min(total + (8 << 20), 64 << 20))


def _fit(a, rows, cols):
    """Crop/zero-pad a 2-D array to (rows, cols); no-op when already matching."""
    r, c = a.shape
    if r > rows:
        a = a[:rows]
    if c > cols:
        a = a[:, :cols]
    r, c = a.shape
    if r < rows or c < cols:
        a = jnp.pad(a, ((0, rows - r), (0, cols - c)))
    return a


# ----------------------------------------------------------------------------
# Pass 1: bf16 MXU matmul (+ optional fused input affine/ReLU) -> bf16 y block
#         + per-M-tile BN partial stats (f32)
# ----------------------------------------------------------------------------
def _make_matmul_stats_kernel(pre_affine, pre_relu, row_mask, tm, m_valid, single_k):
    def kernel(*refs):
        if pre_affine:
            x_ref, w_ref, ps_ref, pb_ref, *rest = refs
        else:
            x_ref, w_ref, *rest = refs
        if single_k:
            y_ref, stats_ref = rest
        else:
            y_ref, stats_ref, acc_ref = rest

        x = x_ref[...]
        if pre_affine:
            # previous layer's BN affine (+ ReLU) applied to the input tile in f32
            xf = x.astype(jnp.float32) * ps_ref[...] + pb_ref[...]
            if pre_relu:
                xf = jnp.maximum(xf, 0.0)
            if row_mask:
                # zero padded rows so they don't pollute the BN statistics
                rows = (jax.lax.broadcasted_iota(jnp.int32, (tm, 1), 0)
                        + pl.program_id(0) * tm)
                xf = jnp.where(rows < m_valid, xf, 0.0)
            x = xf.astype(jnp.bfloat16)

        prod = jnp.dot(x, w_ref[...], preferred_element_type=jnp.float32)

        def epilogue(acc):
            y_ref[...] = acc.astype(y_ref.dtype)
            s = jnp.sum(acc, axis=0, keepdims=True)
            sq = jnp.sum(acc * acc, axis=0, keepdims=True)
            stats_ref[...] = jnp.concatenate([s, sq], axis=0)[None]

        if single_k:
            epilogue(prod)
        else:
            k = pl.program_id(1)

            @pl.when(k == 0)
            def _():
                acc_ref[...] = prod

            @pl.when(k > 0)
            def _():
                acc_ref[...] += prod

            @pl.when(k == pl.num_programs(1) - 1)
            def _():
                epilogue(acc_ref[...])

    return kernel


# ----------------------------------------------------------------------------
# Pass 2: normalize + optional residual (with optional residual affine) + ReLU
# ----------------------------------------------------------------------------
def _make_bn_act_kernel(relu, has_residual, res_affine):
    def kernel(*refs):
        if has_residual and res_affine:
            y_ref, s_ref, b_ref, r_ref, rs_ref, rb_ref, out_ref = refs
        elif has_residual:
            y_ref, s_ref, b_ref, r_ref, out_ref = refs
        else:
            y_ref, s_ref, b_ref, out_ref = refs
        v = y_ref[...].astype(jnp.float32) * s_ref[...] + b_ref[...]
        if has_residual:
            r = r_ref[...].astype(jnp.float32)
            if res_affine:
                r = r * rs_ref[...] + rb_ref[...]
            v = v + r
        if relu:
            v = jnp.maximum(v, 0.0)
        out_ref[...] = v.astype(out_ref.dtype)

    return kernel


# ----------------------------------------------------------------------------
# Wrapper: conv-as-matmul + train-mode BN statistics
# ----------------------------------------------------------------------------
def conv_matmul_stats(x2d, w, gamma, beta, *, pre=None, m_valid=None):
    """Returns (y bf16 (Mp,Cp), scale f32 (1,Cp), bias f32 (1,Cp), tm, (m_valid, Cout)).

    y is the raw (pre-BN) conv output; scale/bias are this layer's BatchNorm
    affine computed from batch statistics. `pre=(scale, bias, relu)` fuses the
    previous layer's BN affine (+ReLU) onto the input tiles inside the kernel."""
    M, Kx = x2d.shape
    Kw, Cout = w.shape
    if m_valid is None:
        m_valid = M

    Cp = _round_up(Cout, LANE)
    Kp = _round_up(Kx, LANE)
    Mp0 = _round_up(M, SUBLANE)
    TM = _tile_m(Mp0, MAX_TM)
    nm = -(-Mp0 // TM)
    Mp = TM * nm
    nk = -(-Kp // MAX_TK)
    TK = LANE * (-(-Kp // (LANE * nk)))
    nk = -(-Kp // TK)
    Kp = TK * nk

    xb = x2d if x2d.dtype == jnp.bfloat16 else x2d.astype(jnp.bfloat16)
    if (Mp, Kp) != (M, Kx):
        xb = jnp.pad(xb, ((0, Mp - M), (0, Kp - Kx)))
    wb = jnp.pad(w.astype(jnp.bfloat16), ((0, Kp - Kw), (0, Cp - Cout)))

    pre_affine = pre is not None
    args = [xb, wb]
    in_specs = [pl.BlockSpec((TM, TK), lambda m, k: (m, k)),
                pl.BlockSpec((TK, Cp), lambda m, k: (k, 0))]
    pre_relu = False
    if pre_affine:
        ps, pb, pre_relu = pre
        ps = jnp.pad(ps.astype(jnp.float32), ((0, 0), (0, Kp - ps.shape[1])))
        pb = jnp.pad(pb.astype(jnp.float32), ((0, 0), (0, Kp - pb.shape[1])))
        args += [ps, pb]
        in_specs += [pl.BlockSpec((1, TK), lambda m, k: (0, k)),
                     pl.BlockSpec((1, TK), lambda m, k: (0, k))]

    row_mask = pre_affine and (Mp > m_valid)
    single_k = (nk == 1)
    scratch = [] if single_k else [pltpu.VMEM((TM, Cp), jnp.float32)]

    vlim = _vmem_limit((TM * TK, 2, 2), (TK * Cp, 2, 2), (TM * Cp, 2, 2),
                       (2 * Cp, 4, 2),
                       (0 if single_k else TM * Cp, 4, 1),
                       (TK, 4, 4) if pre_affine else (0, 4, 0))

    y, stats = pl.pallas_call(
        _make_matmul_stats_kernel(pre_affine, pre_relu, row_mask, TM, m_valid,
                                  single_k),
        out_shape=(jax.ShapeDtypeStruct((Mp, Cp), jnp.bfloat16),
                   jax.ShapeDtypeStruct((nm, 2, Cp), jnp.float32)),
        grid_spec=pltpu.PrefetchScalarGridSpec(
            num_scalar_prefetch=0,
            grid=(nm, nk),
            in_specs=in_specs,
            out_specs=(pl.BlockSpec((TM, Cp), lambda m, k: (m, 0)),
                       pl.BlockSpec((1, 2, Cp), lambda m, k: (m, 0, 0))),
            scratch_shapes=scratch),
        compiler_params=pltpu.CompilerParams(
            dimension_semantics=("parallel", "arbitrary"),
            vmem_limit_bytes=vlim),
    )(*args)

    # Combine tiny per-tile stats in plain JAX (train-mode, biased variance).
    total = jnp.sum(stats[:, 0, :], axis=0)
    total_sq = jnp.sum(stats[:, 1, :], axis=0)
    mean = total / m_valid
    # TODO(synk): E[y^2]-E[y]^2 in f32 is cancellation-prone when |mean| >> std;
    # a centered second reduction would be safer if that regime shows up.
    var = jnp.maximum(total_sq / m_valid - mean * mean, 0.0)

    gamma_p = jnp.pad(gamma.astype(jnp.float32), (0, Cp - Cout), constant_values=1.0)
    beta_p = jnp.pad(beta.astype(jnp.float32), (0, Cp - Cout))
    scale = (gamma_p * jax.lax.rsqrt(var + EPS)).reshape(1, Cp)
    bias = (beta_p - mean * scale[0]).reshape(1, Cp)
    return y, scale, bias, TM, (m_valid, Cout)


def bn_act(y, scale, bias, *, tm, relu, residual=None, res_scale=None,
           res_bias=None):
    """Pass 2: bf16 in / bf16 out elementwise BN affine + residual + ReLU."""
    Mp, Cp = y.shape
    nm = Mp // tm
    has_res = residual is not None
    res_aff = res_scale is not None

    args = [y, scale, bias]
    in_specs = [pl.BlockSpec((tm, Cp), lambda m: (m, 0)),
                pl.BlockSpec((1, Cp), lambda m: (0, 0)),
                pl.BlockSpec((1, Cp), lambda m: (0, 0))]
    if has_res:
        args.append(residual)
        in_specs.append(pl.BlockSpec((tm, Cp), lambda m: (m, 0)))
        if res_aff:
            args += [res_scale, res_bias]
            in_specs += [pl.BlockSpec((1, Cp), lambda m: (0, 0)),
                         pl.BlockSpec((1, Cp), lambda m: (0, 0))]

    vlim = _vmem_limit((tm * Cp, 2, 2 * (2 + int(has_res))), (Cp, 4, 8))

    return pl.pallas_call(
        _make_bn_act_kernel(relu, has_res, res_aff),
        out_shape=jax.ShapeDtypeStruct((Mp, Cp), jnp.bfloat16),
        grid_spec=pltpu.PrefetchScalarGridSpec(
            num_scalar_prefetch=0,
            grid=(nm,),
            in_specs=in_specs,
            out_specs=pl.BlockSpec((tm, Cp), lambda m: (m, 0))),
        compiler_params=pltpu.CompilerParams(
            dimension_semantics=("parallel",),
            vmem_limit_bytes=vlim),
    )(*args)


# ----------------------------------------------------------------------------
# Plain-JAX glue: im2col for the 3x3x3 conv (bf16, lane-padded, single copy)
# ----------------------------------------------------------------------------
# TODO(synk): replace host-side im2col with an in-kernel 27-tap accumulating
# matmul (per-tap shifted 1x1 contributions into the resident accumulator) to
# remove the ~27x HBM blow-up of the activation entirely.
def im2col3d(x, ksize, stride, dilation, padding):
    # x: (N, D, H, W, C) bf16 -> (N*Do*Ho*Wo, round_up(ksize^3*C, 128)) bf16,
    # tap-major / channel-minor; lane padding baked in so the matmul pass never
    # re-pads the expanded array.
    N, D, H, W, C = x.shape
    eff = dilation * (ksize - 1) + 1
    Do = (D + 2 * padding - eff) // stride + 1
    Ho = (H + 2 * padding - eff) // stride + 1
    Wo = (W + 2 * padding - eff) // stride + 1
    xp = jnp.pad(x, ((0, 0), (padding, padding), (padding, padding),
                     (padding, padding), (0, 0)))
    M = N * Do * Ho * Wo
    cols = []
    for a in range(ksize):
        for b in range(ksize):
            for c in range(ksize):
                sl = xp[:,
                        a * dilation: a * dilation + (Do - 1) * stride + 1: stride,
                        b * dilation: b * dilation + (Ho - 1) * stride + 1: stride,
                        c * dilation: c * dilation + (Wo - 1) * stride + 1: stride,
                        :]
                cols.append(sl.reshape(M, C))
    K = ksize ** 3 * C
    Kp = _round_up(K, LANE)
    if Kp != K:
        cols.append(jnp.zeros((M, Kp - K), x.dtype))
    return jnp.concatenate(cols, axis=1), (N, Do, Ho, Wo)


# ----------------------------------------------------------------------------
# Bottleneck block (expansion = 4), channels-last activations
# ----------------------------------------------------------------------------
@functools.partial(jax.jit, static_argnames=("stride", "dilation"))
def bottleneck_forward(params, x, stride=1, dilation=1):
    # x: (N, D, H, W, Cin) -> (N, Do, Ho, Wo, 4*channels) bf16
    N, D, H, W, Cin = x.shape
    ch = params["w1"].shape[1]
    out_ch = params["w3"].shape[1]

    # conv1 (1x1) + bn1 + relu — the normalized activation must be materialized
    # because the 3x3x3 conv consumes it through im2col.
    y1, s1, b1, tm1, (m1, c1) = conv_matmul_stats(
        x.reshape(-1, Cin), params["w1"], params["g1"], params["b1"])
    o1 = bn_act(y1, s1, b1, tm=tm1, relu=True)[:m1, :c1]
    o1 = o1.reshape(N, D, H, W, ch)

    # conv2 (3x3x3, stride, dilation, padding=dilation) + bn2. BN2 + ReLU are NOT
    # materialized; they are fused into conv3's matmul as an input affine.
    cols, (_, Do, Ho, Wo) = im2col3d(o1, 3, stride, dilation, dilation)
    y2, s2, b2, tm2, (m2, c2) = conv_matmul_stats(
        cols, params["w2"], params["g2"], params["b2"])

    # conv3 (1x1) + bn3: consumes the raw (padded, bf16) conv2 output and applies
    # relu(y2*s2 + b2) to each input tile inside the kernel before the dot.
    y3, s3, b3, tm3, (m3, c3) = conv_matmul_stats(
        y2, params["w3"], params["g3"], params["b3"],
        pre=(s2, b2, True), m_valid=m2)
    Mp3, Cp3 = y3.shape

    # Residual branch: 1x1 strided conv (raw output; its BN affine is fused into
    # the final elementwise pass) or the identity.
    if "wd" in params:
        xs = x[:, ::stride, ::stride, ::stride, :]
        yd, sd, bd, _, _ = conv_matmul_stats(
            xs.reshape(-1, Cin), params["wd"], params["gd"], params["bd"])
        res = _fit(yd, Mp3, Cp3)
        rs, rb = sd, bd
    else:
        assert stride == 1 and Cin == out_ch, \
            "identity shortcut requires stride=1 and matching channels"
        res = _fit(x.reshape(-1, Cin).astype(jnp.bfloat16), Mp3, Cp3)
        rs = rb = None

    # Final elementwise pass: bn3 affine + (downsample BN affine on residual)
    # + residual add + ReLU, bf16 out.
    o3 = bn_act(y3, s3, b3, tm=tm3, relu=True,
                residual=res, res_scale=rs, res_bias=rb)[:m3, :c3]
    return o3.reshape(N, Do, Ho, Wo, out_ch)


# ----------------------------------------------------------------------------
# Parameter initialization (deterministic; BN gamma=1, beta=0)
# ----------------------------------------------------------------------------
def init_bottleneck_params(key, in_channels, channels, stride=1):
    out_channels = 4 * channels
    ks = jax.random.split(key, 4)

    def conv_w(k, fan_in, cout):
        std = (2.0 / float(fan_in)) ** 0.5
        return jax.random.normal(k, (fan_in, cout), jnp.float32) * std

    p = {
        "w1": conv_w(ks[0], in_channels, channels),
        "g1": jnp.ones((channels,), jnp.float32),
        "b1": jnp.zeros((channels,), jnp.float32),
        "w2": conv_w(ks[1], 27 * channels, channels),
        "g2": jnp.ones((channels,), jnp.float32),
        "b2": jnp.zeros((channels,), jnp.float32),
        "w3": conv_w(ks[2], channels, out_channels),
        "g3": jnp.ones((out_channels,), jnp.float32),
        "b3": jnp.zeros((out_channels,), jnp.float32),
    }
    if stride != 1 or in_channels != out_channels:
        p["wd"] = conv_w(ks[3], in_channels, out_channels)
        p["gd"] = jnp.ones((out_channels,), jnp.float32)
        p["bd"] = jnp.zeros((out_channels,), jnp.float32)
    return p


if __name__ == "__main__":
    key = jax.random.PRNGKey(0)
    k1, k2, k3, kx = jax.random.split(key, 4)

    N, Cin, S = 2, 32, 8
    x_ncdhw = jax.random.normal(kx, (N, Cin, S, S, S), jnp.float32)
    x = jnp.transpose(x_ncdhw, (0, 2, 3, 4, 1))  # -> NDHWC

    # Three Bottleneck configurations: projection shortcut, identity shortcut,
    # strided + dilated (as used in the dilated DeepLab backbone).
    p1 = init_bottleneck_params(k1, in_channels=32, channels=16, stride=1)  # 32 -> 64
    p2 = init_bottleneck_params(k2, in_channels=64, channels=16, stride=1)  # identity
    p3 = init_bottleneck_params(k3, in_channels=64, channels=32, stride=2)  # 64 -> 128

    o = bottleneck_forward(p1, x, stride=1, dilation=1)
    o = bottleneck_forward(p2, o, stride=1, dilation=1)
    o = bottleneck_forward(p3, o, stride=2, dilation=2)

    out = jnp.transpose(o, (0, 4, 1, 2, 3))  # back to NCDHW
    out = jax.block_until_ready(out)

    assert out.shape == (N, 128, 4, 4, 4), out.shape
    assert bool(jnp.all(jnp.isfinite(out.astype(jnp.float32))))
    print("KERNEL_OK")
</pallas_src>

<mosaic_0001>
module attributes {stable_mosaic.version = 11 : i64} {
  func.func @kernel(%arg0: i32, %arg1: memref<512x128xbf16, #tpu.memory_space<vmem>>, %arg2: memref<1x128xf32, #tpu.memory_space<vmem>>, %arg3: memref<1x128xf32, #tpu.memory_space<vmem>>, %arg4: memref<512x128xbf16, #tpu.memory_space<vmem>>) attributes {dimension_semantics = [#tpu.dimension_semantics<parallel>], iteration_bounds = array<i64: 2>, scalar_prefetch = 0 : i64, scratch_operands = 0 : i64, tpu.core_type = #tpu.core_type<tc>, window_params = [{transform_indices = @transform_0, window_bounds = array<i64: 512, 128>}, {pipeline_mode = #tpu.pipeline_mode<synchronous>, transform_indices = @transform_1, window_bounds = array<i64: 1, 128>}, {pipeline_mode = #tpu.pipeline_mode<synchronous>, transform_indices = @transform_2, window_bounds = array<i64: 1, 128>}, {transform_indices = @transform_3, window_bounds = array<i64: 512, 128>}]} {
    %c0 = arith.constant 0 : index
    %c0_0 = arith.constant 0 : index
    %0 = vector.load %arg1[%c0, %c0_0] : memref<512x128xbf16, #tpu.memory_space<vmem>>, vector<512x128xbf16>
    %1 = arith.extf %0 : vector<512x128xbf16> to vector<512x128xf32>
    %c0_1 = arith.constant 0 : index
    %c0_2 = arith.constant 0 : index
    %2 = vector.load %arg2[%c0_1, %c0_2] : memref<1x128xf32, #tpu.memory_space<vmem>>, vector<1x128xf32>
    %3 = vector.broadcast %2 : vector<1x128xf32> to vector<512x128xf32>
    %4 = arith.mulf %1, %3 : vector<512x128xf32>
    %c0_3 = arith.constant 0 : index
    %c0_4 = arith.constant 0 : index
    %5 = vector.load %arg3[%c0_3, %c0_4] : memref<1x128xf32, #tpu.memory_space<vmem>>, vector<1x128xf32>
    %6 = vector.broadcast %5 : vector<1x128xf32> to vector<512x128xf32>
    %7 = arith.addf %4, %6 : vector<512x128xf32>
    %cst = arith.constant 0.000000e+00 : f32
    %8 = vector.broadcast %cst : f32 to vector<512x128xf32>
    %9 = arith.maximumf %7, %8 : vector<512x128xf32>
    %10 = arith.truncf %9 : vector<512x128xf32> to vector<512x128xbf16>
    %c0_5 = arith.constant 0 : index
    %c0_6 = arith.constant 0 : index
    %11 = vector.load %arg4[%c0_5, %c0_6] : memref<512x128xbf16, #tpu.memory_space<vmem>>, vector<512x128xbf16>
    tpu.vector_store %arg4[%c0_5, %c0_6], %10 {strides = array<i32>} : memref<512x128xbf16, #tpu.memory_space<vmem>>, vector<512x128xbf16>,
    return
  }
  func.func @transform_0(%arg0: i32) -> (i32, i32) {
    %c0_i32 = arith.constant 0 : i32
    %c0_i32_0 = arith.constant 0 : i32
    return %arg0, %c0_i32 : i32, i32
  }
  func.func @transform_1(%arg0: i32) -> (i32, i32) {
    %c0_i32 = arith.constant 0 : i32
    %c0_i32_0 = arith.constant 0 : i32
    %c0_i32_1 = arith.constant 0 : i32
    return %c0_i32, %c0_i32_0 : i32, i32
  }
  func.func @transform_2(%arg0: i32) -> (i32, i32) {
    %c0_i32 = arith.constant 0 : i32
    %c0_i32_0 = arith.constant 0 : i32
    %c0_i32_1 = arith.constant 0 : i32
    return %c0_i32, %c0_i32_0 : i32, i32
  }
  func.func @transform_3(%arg0: i32) -> (i32, i32) {
    %c0_i32 = arith.constant 0 : i32
    %c0_i32_0 = arith.constant 0 : i32
    return %arg0, %c0_i32 : i32, i32
  }
}

module attributes {stable_mosaic.version = 11 : i64} {
  func.func @kernel(%arg0: i32, %arg1: i32, %arg2: memref<512x128xbf16, #tpu.memory_space<vmem>>, %arg3: memref<128x128xbf16, #tpu.memory_space<vmem>>, %arg4: memref<512x128xbf16, #tpu.memory_space<vmem>>, %arg5: memref<1x2x128xf32, #tpu.memory_space<vmem>>) attributes {dimension_semantics = [#tpu.dimension_semantics<parallel>, #tpu.dimension_semantics<arbitrary>], iteration_bounds = array<i64: 2, 1>, scalar_prefetch = 0 : i64, scratch_operands = 0 : i64, tpu.core_type = #tpu.core_type<tc>, window_params = [{transform_indices = @transform_0, window_bounds = array<i64: 512, 128>}, {transform_indices = @transform_1, window_bounds = array<i64: 128, 128>}, {transform_indices = @transform_2, window_bounds = array<i64: 512, 128>}, {transform_indices = @transform_3, window_bounds = array<i64: 1, 2, 128>}]} {
    %c0 = arith.constant 0 : index
    %c0_0 = arith.constant 0 : index
    %0 = vector.load %arg2[%c0, %c0_0] : memref<512x128xbf16, #tpu.memory_space<vmem>>, vector<512x128xbf16>
    %c0_1 = arith.constant 0 : index
    %c0_2 = arith.constant 0 : index
    %1 = vector.load %arg3[%c0_1, %c0_2] : memref<128x128xbf16, #tpu.memory_space<vmem>>, vector<128x128xbf16>
    %cst = arith.constant dense<0.000000e+00> : vector<512x128xf32>
    %2 = tpu.matmul %0, %1, %cst {dimension_numbers = #tpu.dot_dimension_numbers<[1], [0], [0], [1], [0, 0, 1, 1], [], []>} : vector<512x128xbf16>, vector<128x128xbf16>, vector<512x128xf32> -> vector<512x128xf32>
    %3 = arith.truncf %2 : vector<512x128xf32> to vector<512x128xbf16>
    %c0_3 = arith.constant 0 : index
    %c0_4 = arith.constant 0 : index
    %4 = vector.load %arg4[%c0_3, %c0_4] : memref<512x128xbf16, #tpu.memory_space<vmem>>, vector<512x128xbf16>
    tpu.vector_store %arg4[%c0_3, %c0_4], %3 {strides = array<i32>} : memref<512x128xbf16, #tpu.memory_space<vmem>>, vector<512x128xbf16>,
    %cst_5 = arith.constant dense<0.000000e+00> : vector<128xf32>
    %5 = vector.multi_reduction <add>, %2, %cst_5 [0] : vector<512x128xf32> to vector<128xf32>
    %6 = vector.shape_cast %5 : vector<128xf32> to vector<1x128xf32>
    %7 = arith.mulf %2, %2 : vector<512x128xf32>
    %cst_6 = arith.constant dense<0.000000e+00> : vector<128xf32>
    %8 = vector.multi_reduction <add>, %7, %cst_6 [0] : vector<512x128xf32> to vector<128xf32>
    %9 = vector.shape_cast %8 : vector<128xf32> to vector<1x128xf32>
    %10 = tpu.concatenate %6, %9 in 0 : vector<1x128xf32>, vector<1x128xf32> -> vector<2x128xf32>
    %11 = vector.shape_cast %10 : vector<2x128xf32> to vector<1x2x128xf32>
    %c0_7 = arith.constant 0 : index
    %c0_8 = arith.constant 0 : index
    %c0_9 = arith.constant 0 : index
    %12 = vector.load %arg5[%c0_7, %c0_8, %c0_9] : memref<1x2x128xf32, #tpu.memory_space<vmem>>, vector<1x2x128xf32>
    tpu.vector_store %arg5[%c0_7, %c0_8, %c0_9], %11 {strides = array<i32>} : memref<1x2x128xf32, #tpu.memory_space<vmem>>, vector<1x2x128xf32>,
    return
  }
  func.func @transform_0(%arg0: i32, %arg1: i32) -> (i32, i32) {
    %c0_i32 = arith.constant 0 : i32
    return %arg0, %arg1 : i32, i32
  }
  func.func @transform_1(%arg0: i32, %arg1: i32) -> (i32, i32) {
    %c0_i32 = arith.constant 0 : i32
    %c0_i32_0 = arith.constant 0 : i32
    return %arg1, %c0_i32 : i32, i32
  }
  func.func @transform_2(%arg0: i32, %arg1: i32) -> (i32, i32) {
    %c0_i32 = arith.constant 0 : i32
    %c0_i32_0 = arith.constant 0 : i32
    return %arg0, %c0_i32 : i32, i32
  }
  func.func @transform_3(%arg0: i32, %arg1: i32) -> (i32, i32, i32) {
    %c0_i32 = arith.constant 0 : i32
    %c0_i32_0 = arith.constant 0 : i32
    %c0_i32_1 = arith.constant 0 : i32
    return %arg0, %c0_i32, %c0_i32_0 : i32, i32, i32
  }
}

module attributes {stable_mosaic.version = 11 : i64} {
  func.func @kernel(%arg0: i32, %arg1: i32, %arg2: memref<512x512xbf16, #tpu.memory_space<vmem>>, %arg3: memref<512x128xbf16, #tpu.memory_space<vmem>>, %arg4: memref<512x128xbf16, #tpu.memory_space<vmem>>, %arg5: memref<1x2x128xf32, #tpu.memory_space<vmem>>) attributes {dimension_semantics = [#tpu.dimension_semantics<parallel>, #tpu.dimension_semantics<arbitrary>], iteration_bounds = array<i64: 2, 1>, scalar_prefetch = 0 : i64, scratch_operands = 0 : i64, tpu.core_type = #tpu.core_type<tc>, window_params = [{transform_indices = @transform_0, window_bounds = array<i64: 512, 512>}, {transform_indices = @transform_1, window_bounds = array<i64: 512, 128>}, {transform_indices = @transform_2, window_bounds = array<i64: 512, 128>}, {transform_indices = @transform_3, window_bounds = array<i64: 1, 2, 128>}]} {
    %c0 = arith.constant 0 : index
    %c0_0 = arith.constant 0 : index
    %0 = vector.load %arg2[%c0, %c0_0] : memref<512x512xbf16, #tpu.memory_space<vmem>>, vector<512x512xbf16>
    %c0_1 = arith.constant 0 : index
    %c0_2 = arith.constant 0 : index
    %1 = vector.load %arg3[%c0_1, %c0_2] : memref<512x128xbf16, #tpu.memory_space<vmem>>, vector<512x128xbf16>
    %cst = arith.constant dense<0.000000e+00> : vector<512x128xf32>
    %2 = tpu.matmul %0, %1, %cst {dimension_numbers = #tpu.dot_dimension_numbers<[1], [0], [0], [1], [0, 0, 1, 1], [], []>} : vector<512x512xbf16>, vector<512x128xbf16>, vector<512x128xf32> -> vector<512x128xf32>
    %3 = arith.truncf %2 : vector<512x128xf32> to vector<512x128xbf16>
    %c0_3 = arith.constant 0 : index
    %c0_4 = arith.constant 0 : index
    %4 = vector.load %arg4[%c0_3, %c0_4] : memref<512x128xbf16, #tpu.memory_space<vmem>>, vector<512x128xbf16>
    tpu.vector_store %arg4[%c0_3, %c0_4], %3 {strides = array<i32>} : memref<512x128xbf16, #tpu.memory_space<vmem>>, vector<512x128xbf16>,
    %cst_5 = arith.constant dense<0.000000e+00> : vector<128xf32>
    %5 = vector.multi_reduction <add>, %2, %cst_5 [0] : vector<512x128xf32> to vector<128xf32>
    %6 = vector.shape_cast %5 : vector<128xf32> to vector<1x128xf32>
    %7 = arith.mulf %2, %2 : vector<512x128xf32>
    %cst_6 = arith.constant dense<0.000000e+00> : vector<128xf32>
    %8 = vector.multi_reduction <add>, %7, %cst_6 [0] : vector<512x128xf32> to vector<128xf32>
    %9 = vector.shape_cast %8 : vector<128xf32> to vector<1x128xf32>
    %10 = tpu.concatenate %6, %9 in 0 : vector<1x128xf32>, vector<1x128xf32> -> vector<2x128xf32>
    %11 = vector.shape_cast %10 : vector<2x128xf32> to vector<1x2x128xf32>
    %c0_7 = arith.constant 0 : index
    %c0_8 = arith.constant 0 : index
    %c0_9 = arith.constant 0 : index
    %12 = vector.load %arg5[%c0_7, %c0_8, %c0_9] : memref<1x2x128xf32, #tpu.memory_space<vmem>>, vector<1x2x128xf32>
    tpu.vector_store %arg5[%c0_7, %c0_8, %c0_9], %11 {strides = array<i32>} : memref<1x2x128xf32, #tpu.memory_space<vmem>>, vector<1x2x128xf32>,
    return
  }
  func.func @transform_0(%arg0: i32, %arg1: i32) -> (i32, i32) {
    %c0_i32 = arith.constant 0 : i32
    return %arg0, %arg1 : i32, i32
  }
  func.func @transform_1(%arg0: i32, %arg1: i32) -> (i32, i32) {
    %c0_i32 = arith.constant 0 : i32
    %c0_i32_0 = arith.constant 0 : i32
    return %arg1, %c0_i32 : i32, i32
  }
  func.func @transform_2(%arg0: i32, %arg1: i32) -> (i32, i32) {
    %c0_i32 = arith.constant 0 : i32
    %c0_i32_0 = arith.constant 0 : i32
    return %arg0, %c0_i32 : i32, i32
  }
  func.func @transform_3(%arg0: i32, %arg1: i32) -> (i32, i32, i32) {
    %c0_i32 = arith.constant 0 : i32
    %c0_i32_0 = arith.constant 0 : i32
    %c0_i32_1 = arith.constant 0 : i32
    return %arg0, %c0_i32, %c0_i32_0 : i32, i32, i32
  }
}

module attributes {stable_mosaic.version = 11 : i64} {
  func.func @kernel(%arg0: i32, %arg1: i32, %arg2: memref<512x128xbf16, #tpu.memory_space<vmem>>, %arg3: memref<128x128xbf16, #tpu.memory_space<vmem>>, %arg4: memref<1x128xf32, #tpu.memory_space<vmem>>, %arg5: memref<1x128xf32, #tpu.memory_space<vmem>>, %arg6: memref<512x128xbf16, #tpu.memory_space<vmem>>, %arg7: memref<1x2x128xf32, #tpu.memory_space<vmem>>) attributes {dimension_semantics = [#tpu.dimension_semantics<parallel>, #tpu.dimension_semantics<arbitrary>], iteration_bounds = array<i64: 2, 1>, scalar_prefetch = 0 : i64, scratch_operands = 0 : i64, tpu.core_type = #tpu.core_type<tc>, window_params = [{transform_indices = @transform_0, window_bounds = array<i64: 512, 128>}, {transform_indices = @transform_1, window_bounds = array<i64: 128, 128>}, {transform_indices = @transform_2, window_bounds = array<i64: 1, 128>}, {transform_indices = @transform_3, window_bounds = array<i64: 1, 128>}, {transform_indices = @transform_4, window_bounds = array<i64: 512, 128>}, {transform_indices = @transform_5, window_bounds = array<i64: 1, 2, 128>}]} {
    %c0 = arith.constant 0 : index
    %c0_0 = arith.constant 0 : index
    %0 = vector.load %arg2[%c0, %c0_0] : memref<512x128xbf16, #tpu.memory_space<vmem>>, vector<512x128xbf16>
    %1 = arith.extf %0 : vector<512x128xbf16> to vector<512x128xf32>
    %c0_1 = arith.constant 0 : index
    %c0_2 = arith.constant 0 : index
    %2 = vector.load %arg4[%c0_1, %c0_2] : memref<1x128xf32, #tpu.memory_space<vmem>>, vector<1x128xf32>
    %3 = vector.broadcast %2 : vector<1x128xf32> to vector<512x128xf32>
    %4 = arith.mulf %1, %3 : vector<512x128xf32>
    %c0_3 = arith.constant 0 : index
    %c0_4 = arith.constant 0 : index
    %5 = vector.load %arg5[%c0_3, %c0_4] : memref<1x128xf32, #tpu.memory_space<vmem>>, vector<1x128xf32>
    %6 = vector.broadcast %5 : vector<1x128xf32> to vector<512x128xf32>
    %7 = arith.addf %4, %6 : vector<512x128xf32>
    %cst = arith.constant 0.000000e+00 : f32
    %8 = vector.broadcast %cst : f32 to vector<512x128xf32>
    %9 = arith.maximumf %7, %8 : vector<512x128xf32>
    %10 = arith.truncf %9 : vector<512x128xf32> to vector<512x128xbf16>
    %c0_5 = arith.constant 0 : index
    %c0_6 = arith.constant 0 : index
    %11 = vector.load %arg3[%c0_5, %c0_6] : memref<128x128xbf16, #tpu.memory_space<vmem>>, vector<128x128xbf16>
    %cst_7 = arith.constant dense<0.000000e+00> : vector<512x128xf32>
    %12 = tpu.matmul %10, %11, %cst_7 {dimension_numbers = #tpu.dot_dimension_numbers<[1], [0], [0], [1], [0, 0, 1, 1], [], []>} : vector<512x128xbf16>, vector<128x128xbf16>, vector<512x128xf32> -> vector<512x128xf32>
    %13 = arith.truncf %12 : vector<512x128xf32> to vector<512x128xbf16>
    %c0_8 = arith.constant 0 : index
    %c0_9 = arith.constant 0 : index
    %14 = vector.load %arg6[%c0_8, %c0_9] : memref<512x128xbf16, #tpu.memory_space<vmem>>, vector<512x128xbf16>
    tpu.vector_store %arg6[%c0_8, %c0_9], %13 {strides = array<i32>} : memref<512x128xbf16, #tpu.memory_space<vmem>>, vector<512x128xbf16>,
    %cst_10 = arith.constant dense<0.000000e+00> : vector<128xf32>
    %15 = vector.multi_reduction <add>, %12, %cst_10 [0] : vector<512x128xf32> to vector<128xf32>
    %16 = vector.shape_cast %15 : vector<128xf32> to vector<1x128xf32>
    %17 = arith.mulf %12, %12 : vector<512x128xf32>
    %cst_11 = arith.constant dense<0.000000e+00> : vector<128xf32>
    %18 = vector.multi_reduction <add>, %17, %cst_11 [0] : vector<512x128xf32> to vector<128xf32>
    %19 = vector.shape_cast %18 : vector<128xf32> to vector<1x128xf32>
    %20 = tpu.concatenate %16, %19 in 0 : vector<1x128xf32>, vector<1x128xf32> -> vector<2x128xf32>
    %21 = vector.shape_cast %20 : vector<2x128xf32> to vector<1x2x128xf32>
    %c0_12 = arith.constant 0 : index
    %c0_13 = arith.constant 0 : index
    %c0_14 = arith.constant 0 : index
    %22 = vector.load %arg7[%c0_12, %c0_13, %c0_14] : memref<1x2x128xf32, #tpu.memory_space<vmem>>, vector<1x2x128xf32>
    tpu.vector_store %arg7[%c0_12, %c0_13, %c0_14], %21 {strides = array<i32>} : memref<1x2x128xf32, #tpu.memory_space<vmem>>, vector<1x2x128xf32>,
    return
  }
  func.func @transform_0(%arg0: i32, %arg1: i32) -> (i32, i32) {
    %c0_i32 = arith.constant 0 : i32
    return %arg0, %arg1 : i32, i32
  }
  func.func @transform_1(%arg0: i32, %arg1: i32) -> (i32, i32) {
    %c0_i32 = arith.constant 0 : i32
    %c0_i32_0 = arith.constant 0 : i32
    return %arg1, %c0_i32 : i32, i32
  }
  func.func @transform_2(%arg0: i32, %arg1: i32) -> (i32, i32) {
    %c0_i32 = arith.constant 0 : i32
    %c0_i32_0 = arith.constant 0 : i32
    return %c0_i32, %arg1 : i32, i32
  }
  func.func @transform_3(%arg0: i32, %arg1: i32) -> (i32, i32) {
    %c0_i32 = arith.constant 0 : i32
    %c0_i32_0 = arith.constant 0 : i32
    return %c0_i32, %arg1 : i32, i32
  }
  func.func @transform_4(%arg0: i32, %arg1: i32) -> (i32, i32) {
    %c0_i32 = arith.constant 0 : i32
    %c0_i32_0 = arith.constant 0 : i32
    return %arg0, %c0_i32 : i32, i32
  }
  func.func @transform_5(%arg0: i32, %arg1: i32) -> (i32, i32, i32) {
    %c0_i32 = arith.constant 0 : i32
    %c0_i32_0 = arith.constant 0 : i32
    %c0_i32_1 = arith.constant 0 : i32
    return %arg0, %c0_i32, %c0_i32_0 : i32, i32, i32
  }
}

module attributes {stable_mosaic.version = 11 : i64} {
  func.func @kernel(%arg0: i32, %arg1: memref<512x128xbf16, #tpu.memory_space<vmem>>, %arg2: memref<1x128xf32, #tpu.memory_space<vmem>>, %arg3: memref<1x128xf32, #tpu.memory_space<vmem>>, %arg4: memref<512x128xbf16, #tpu.memory_space<vmem>>, %arg5: memref<1x128xf32, #tpu.memory_space<vmem>>, %arg6: memref<1x128xf32, #tpu.memory_space<vmem>>, %arg7: memref<512x128xbf16, #tpu.memory_space<vmem>>) attributes {dimension_semantics = [#tpu.dimension_semantics<parallel>], iteration_bounds = array<i64: 2>, scalar_prefetch = 0 : i64, scratch_operands = 0 : i64, tpu.core_type = #tpu.core_type<tc>, window_params = [{transform_indices = @transform_0, window_bounds = array<i64: 512, 128>}, {pipeline_mode = #tpu.pipeline_mode<synchronous>, transform_indices = @transform_1, window_bounds = array<i64: 1, 128>}, {pipeline_mode = #tpu.pipeline_mode<synchronous>, transform_indices = @transform_2, window_bounds = array<i64: 1, 128>}, {transform_indices = @transform_3, window_bounds = array<i64: 512, 128>}, {pipeline_mode = #tpu.pipeline_mode<synchronous>, transform_indices = @transform_4, window_bounds = array<i64: 1, 128>}, {pipeline_mode = #tpu.pipeline_mode<synchronous>, transform_indices = @transform_5, window_bounds = array<i64: 1, 128>}, {transform_indices = @transform_6, window_bounds = array<i64: 512, 128>}]} {
    %c0 = arith.constant 0 : index
    %c0_0 = arith.constant 0 : index
    %0 = vector.load %arg1[%c0, %c0_0] : memref<512x128xbf16, #tpu.memory_space<vmem>>, vector<512x128xbf16>
    %1 = arith.extf %0 : vector<512x128xbf16> to vector<512x128xf32>
    %c0_1 = arith.constant 0 : index
    %c0_2 = arith.constant 0 : index
    %2 = vector.load %arg2[%c0_1, %c0_2] : memref<1x128xf32, #tpu.memory_space<vmem>>, vector<1x128xf32>
    %3 = vector.broadcast %2 : vector<1x128xf32> to vector<512x128xf32>
    %4 = arith.mulf %1, %3 : vector<512x128xf32>
    %c0_3 = arith.constant 0 : index
    %c0_4 = arith.constant 0 : index
    %5 = vector.load %arg3[%c0_3, %c0_4] : memref<1x128xf32, #tpu.memory_space<vmem>>, vector<1x128xf32>
    %6 = vector.broadcast %5 : vector<1x128xf32> to vector<512x128xf32>
    %7 = arith.addf %4, %6 : vector<512x128xf32>
    %c0_5 = arith.constant 0 : index
    %c0_6 = arith.constant 0 : index
    %8 = vector.load %arg4[%c0_5, %c0_6] : memref<512x128xbf16, #tpu.memory_space<vmem>>, vector<512x128xbf16>
    %9 = arith.extf %8 : vector<512x128xbf16> to vector<512x128xf32>
    %c0_7 = arith.constant 0 : index
    %c0_8 = arith.constant 0 : index
    %10 = vector.load %arg5[%c0_7, %c0_8] : memref<1x128xf32, #tpu.memory_space<vmem>>, vector<1x128xf32>
    %11 = vector.broadcast %10 : vector<1x128xf32> to vector<512x128xf32>
    %12 = arith.mulf %9, %11 : vector<512x128xf32>
    %c0_9 = arith.constant 0 : index
    %c0_10 = arith.constant 0 : index
    %13 = vector.load %arg6[%c0_9, %c0_10] : memref<1x128xf32, #tpu.memory_space<vmem>>, vector<1x128xf32>
    %14 = vector.broadcast %13 : vector<1x128xf32> to vector<512x128xf32>
    %15 = arith.addf %12, %14 : vector<512x128xf32>
    %16 = arith.addf %7, %15 : vector<512x128xf32>
    %cst = arith.constant 0.000000e+00 : f32
    %17 = vector.broadcast %cst : f32 to vector<512x128xf32>
    %18 = arith.maximumf %16, %17 : vector<512x128xf32>
    %19 = arith.truncf %18 : vector<512x128xf32> to vector<512x128xbf16>
    %c0_11 = arith.constant 0 : index
    %c0_12 = arith.constant 0 : index
    %20 = vector.load %arg7[%c0_11, %c0_12] : memref<512x128xbf16, #tpu.memory_space<vmem>>, vector<512x128xbf16>
    tpu.vector_store %arg7[%c0_11, %c0_12], %19 {strides = array<i32>} : memref<512x128xbf16, #tpu.memory_space<vmem>>, vector<512x128xbf16>,
    return
  }
  func.func @transform_0(%arg0: i32) -> (i32, i32) {
    %c0_i32 = arith.constant 0 : i32
    %c0_i32_0 = arith.constant 0 : i32
    return %arg0, %c0_i32 : i32, i32
  }
  func.func @transform_1(%arg0: i32) -> (i32, i32) {
    %c0_i32 = arith.constant 0 : i32
    %c0_i32_0 = arith.constant 0 : i32
    %c0_i32_1 = arith.constant 0 : i32
    return %c0_i32, %c0_i32_0 : i32, i32
  }
  func.func @transform_2(%arg0: i32) -> (i32, i32) {
    %c0_i32 = arith.constant 0 : i32
    %c0_i32_0 = arith.constant 0 : i32
    %c0_i32_1 = arith.constant 0 : i32
    return %c0_i32, %c0_i32_0 : i32, i32
  }
  func.func @transform_3(%arg0: i32) -> (i32, i32) {
    %c0_i32 = arith.constant 0 : i32
    %c0_i32_0 = arith.constant 0 : i32
    return %arg0, %c0_i32 : i32, i32
  }
  func.func @transform_4(%arg0: i32) -> (i32, i32) {
    %c0_i32 = arith.constant 0 : i32
    %c0_i32_0 = arith.constant 0 : i32
    %c0_i32_1 = arith.constant 0 : i32
    return %c0_i32, %c0_i32_0 : i32, i32
  }
  func.func @transform_5(%arg0: i32) -> (i32, i32) {
    %c0_i32 = arith.constant 0 : i32
    %c0_i32_0 = arith.constant 0 : i32
    %c0_i32_1 = arith.constant 0 : i32
    return %c0_i32, %c0_i32_0 : i32, i32
  }
  func.func @transform_6(%arg0: i32) -> (i32, i32) {
    %c0_i32 = arith.constant 0 : i32
    %c0_i32_0 = arith.constant 0 : i32
    return %arg0, %c0_i32 : i32, i32
  }
}

</mosaic_0001>

<bundles_post_ra>
// kernel: bottleneck_forward.7
= control target key start
LH: loop header
LB: loop body
LE: loop exit
PB: predicated region body
PF: predicated region fallthrough
CT: control target
= control target key end

     0   :  { %s1411_s12 = smov 0   ;;  %s1641_s0 = inlined_call_operand.vmem [shape: bf16[1024,128], index: 0, kind: input, shape index: {}]   ;;  %s1642_s1 = inlined_call_operand.vmem [shape: f32[1,128], index: 1, kind: input, shape index: {}]   ;;  %s1643_s2 = inlined_call_operand.vmem [shape: f32[1,128], index: 2, kind: input, shape index: {}]   ;;  %s1644_s3 = inlined_call_operand.vmem [shape: bf16[1024,128], index: 3, kind: output, shape index: {}]  }
   0x1 LB: > { %s884_s13 = sadd.s32 4294967295, %s1389_s12   ;;  %p888_p0 = scmp.ge.s32.totalorder %s1389_s12, 1  ;;  %s1389_s12 = sphi %s1411_s12, %s13_s12  }
   0x2   : > { %p138_p1 = scmp.lt.s32.totalorder %s1389_s12, 3 }
   0x4   : > { %p139_p2 = pnand %p888_p0, %p138_p1 }
   0x5   : > { %s889_s14 = sshll.u32 (!%p139_p2), %s884_s13, 6  ;;  %v1432_v0 = vld [vmem:[%s1642_s1] ss:$0 sm:$0xff] (!%p139_p2) }
   0x6   : > { %142 = sbr.rel (%p139_p2) target bundleno = 95 (0x5f), region = 32  ;;  %p163_p3 = scmp.lt.s32.totalorder (!%p139_p2), %s889_s14, 127  ;;  %v1441_v9 = vld [vmem:[%s1643_s2] ss:$0 sm:$0xff] (!%p139_p2) }
   0xd   : > { %s1646_s14 = smov (!%p163_p3, %s889_s14), 127 }
   0xe   : > { %s890_s15 = sshll.u32 %s1646_s14, 2 }
   0xf   : > { %s1427_s18 = scalar_lea.vmem %s1641_s0, %s890_s15  ;;  %s1466_s25 = scalar_lea.vmem %s1644_s3, %s890_s15 }
  0x10   : > { %v1026_v1 = vld [vmem:[%s1427_s18] sm:$0xff]   ;;  %v1313_v2 = vld [vmem:[%s1427_s18 + $0x8] sm:$0xff]   ;;  %v1314_v3 = vld [vmem:[%s1427_s18 + $0x10] sm:$0xff]  }
  0x11   : > { %v1027_v4 = vunpack.c.l.bf16 %v1026_v1  ;;  %v1028_v5 = vunpack.c.h.bf16 %v1026_v1  ;;  %v1031_v6 = vunpack.c.l.bf16 %v1313_v2  ;;  %v1032_v7 = vunpack.c.h.bf16 %v1313_v2  ;;  %v1315_v8 = vld [vmem:[%s1427_s18 + $0x18] sm:$0xff]   ;;  %v1316_v30 = vld [vmem:[%s1427_s18 + $0x20] sm:$0xff]   ;;  %v1317_v35 = vld [vmem:[%s1427_s18 + $0x28] sm:$0xff]  }
  0x12   : > { %v1035_v10 = vunpack.c.l.bf16 %v1314_v3  ;;  %v1036_v11 = vunpack.c.h.bf16 %v1314_v3  ;;  %v1039_v12 = vunpack.c.l.bf16 %v1315_v8  ;;  %v1040_v13 = vunpack.c.h.bf16 %v1315_v8  ;;  %v1318_v40 = vld [vmem:[%s1427_s18 + $0x30] sm:$0xff]   ;;  %v1319_v45 = vld [vmem:[%s1427_s18 + $0x38] sm:$0xff]   ;;  %v1320_v3 = vld [vmem:[%s1427_s18 + $0x40] sm:$0xff]  }
  0x13   : > { %v309_v14 = vmul.f32 %v1027_v4, %v1432_v0  ;;  %v310_v15 = vmul.f32 %v1028_v5, %v1432_v0  ;;  %v311_v16 = vmul.f32 %v1031_v6, %v1432_v0  ;;  %v312_v17 = vmul.f32 %v1032_v7, %v1432_v0 }
  0x14   : > { %v313_v18 = vmul.f32 %v1035_v10, %v1432_v0  ;;  %v314_v19 = vmul.f32 %v1036_v11, %v1432_v0  ;;  %v315_v20 = vmul.f32 %v1039_v12, %v1432_v0  ;;  %v316_v21 = vmul.f32 %v1040_v13, %v1432_v0  ;;  %v1321_v13 = vld [vmem:[%s1427_s18 + $0x48] sm:$0xff]  }
  0x15   : > { %v380_v22 = vadd.f32 %v1441_v9, %v309_v14  ;;  %v381_v23 = vadd.f32 %v1441_v9, %v310_v15  ;;  %v382_v24 = vadd.f32 %v1441_v9, %v311_v16  ;;  %v383_v25 = vadd.f32 %v1441_v9, %v312_v17 }
  0x16   : > { %v384_v26 = vadd.f32 %v1441_v9, %v313_v18  ;;  %v385_v27 = vadd.f32 %v1441_v9, %v314_v19  ;;  %v386_v28 = vadd.f32 %v1441_v9, %v315_v20  ;;  %v387_v29 = vadd.f32 %v1441_v9, %v316_v21  ;;  %v1322_v18 = vld [vmem:[%s1427_s18 + $0x50] sm:$0xff]  }
  0x17   : > { %v444_v31 = vmax.f32 %v380_v22, 0.0  ;;  %v445_v32 = vmax.f32 %v381_v23, 0.0  ;;  %v446_v33 = vmax.f32 %v382_v24, 0.0  ;;  %v447_v34 = vmax.f32 %v383_v25, 0.0  ;;  %v1323_v23 = vld [vmem:[%s1427_s18 + $0x58] sm:$0xff]  }
  0x18   : > { %v448_v36 = vmax.f32 %v384_v26, 0.0  ;;  %v449_v37 = vmax.f32 %v385_v27, 0.0  ;;  %v450_v38 = vmax.f32 %v386_v28, 0.0  ;;  %v451_v39 = vmax.f32 %v387_v29, 0.0 }
  0x19   : > { %v1156_v41 = vpack.c.bf16 %v445_v32, %v444_v31  ;;  %v1161_v42 = vpack.c.bf16 %v447_v34, %v446_v33  ;;  %v1043_v43 = vunpack.c.l.bf16 %v1316_v30  ;;  %v1044_v44 = vunpack.c.h.bf16 %v1316_v30 }
  0x1a   : > { %v1166_v46 = vpack.c.bf16 %v449_v37, %v448_v36  ;;  %v1171_v47 = vpack.c.bf16 %v451_v39, %v450_v38  ;;  %v1047_v48 = vunpack.c.l.bf16 %v1317_v35  ;;  %v1048_v49 = vunpack.c.h.bf16 %v1317_v35 }
  0x1b   : > { %1157 = vst [vmem:[%s1466_s25] sm:$0xff] %v1156_v41   ;;  %1344 = vst [vmem:[%s1466_s25 + $0x8] sm:$0xff] %v1161_v42   ;;  %v317_v50 = vmul.f32 %v1043_v43, %v1432_v0  ;;  %v318_v51 = vmul.f32 %v1044_v44, %v1432_v0  ;;  %v1051_v52 = vunpack.c.l.bf16 %v1318_v40  ;;  %v1052_v53 = vunpack.c.h.bf16 %v1318_v40  ;;  %v1324_v40 = vld [vmem:[%s1427_s18 + $0x60] sm:$0xff]  }
  0x1c   : > { %1345 = vst [vmem:[%s1466_s25 + $0x10] sm:$0xff] %v1166_v46   ;;  %1346 = vst [vmem:[%s1466_s25 + $0x18] sm:$0xff] %v1171_v47   ;;  %v319_v54 = vmul.f32 %v1047_v48, %v1432_v0  ;;  %v320_v55 = vmul.f32 %v1048_v49, %v1432_v0  ;;  %v1055_v56 = vunpack.c.l.bf16 %v1319_v45  ;;  %v1056_v57 = vunpack.c.h.bf16 %v1319_v45 }
  0x1d   : > { %v388_v58 = vadd.f32 %v1441_v9, %v317_v50  ;;  %v389_v59 = vadd.f32 %v1441_v9, %v318_v51  ;;  %v321_v60 = vmul.f32 %v1051_v52, %v1432_v0  ;;  %v322_v61 = vmul.f32 %v1052_v53, %v1432_v0  ;;  %v1325_v53 = vld [vmem:[%s1427_s18 + $0x68] sm:$0xff]  }
  0x1e   : > { %v390_v62 = vadd.f32 %v1441_v9, %v319_v54  ;;  %v391_v63 = vadd.f32 %v1441_v9, %v320_v55  ;;  %v323_v1 = vmul.f32 %v1055_v56, %v1432_v0  ;;  %v324_v2 = vmul.f32 %v1056_v57, %v1432_v0 }
  0x1f   : > { %v452_v4 = vmax.f32 %v388_v58, 0.0  ;;  %v453_v5 = vmax.f32 %v389_v59, 0.0  ;;  %v392_v6 = vadd.f32 %v1441_v9, %v321_v60  ;;  %v393_v7 = vadd.f32 %v1441_v9, %v322_v61  ;;  %v1326_v58 = vld [vmem:[%s1427_s18 + $0x70] sm:$0xff]  }
  0x20   : > { %v454_v8 = vmax.f32 %v390_v62, 0.0  ;;  %v455_v10 = vmax.f32 %v391_v63, 0.0  ;;  %v394_v11 = vadd.f32 %v1441_v9, %v323_v1  ;;  %v395_v12 = vadd.f32 %v1441_v9, %v324_v2  ;;  %v1327_v63 = vld [vmem:[%s1427_s18 + $0x78] sm:$0xff]  }
  0x21   : > { %v1176_v14 = vpack.c.bf16 %v453_v5, %v452_v4  ;;  %v456_v15 = vmax.f32 %v392_v6, 0.0  ;;  %v457_v16 = vmax.f32 %v393_v7, 0.0  ;;  %v1059_v17 = vunpack.c.l.bf16 %v1320_v3 }
  0x22   : > { %v1181_v19 = vpack.c.bf16 %v455_v10, %v454_v8  ;;  %v458_v20 = vmax.f32 %v394_v11, 0.0  ;;  %v459_v21 = vmax.f32 %v395_v12, 0.0  ;;  %v1060_v22 = vunpack.c.h.bf16 %v1320_v3 }
  0x23   : > { %1347 = vst [vmem:[%s1466_s25 + $0x20] sm:$0xff] %v1176_v14   ;;  %v1186_v24 = vpack.c.bf16 %v457_v16, %v456_v15  ;;  %v325_v25 = vmul.f32 %v1059_v17, %v1432_v0  ;;  %v1063_v26 = vunpack.c.l.bf16 %v1321_v13  ;;  %v1064_v27 = vunpack.c.h.bf16 %v1321_v13  ;;  %v1328_v14 = vld [vmem:[%s1427_s18 + $0x80] sm:$0xff]  }
  0x24   : > { %1348 = vst [vmem:[%s1466_s25 + $0x28] sm:$0xff] %v1181_v19   ;;  %v1191_v28 = vpack.c.bf16 %v459_v21, %v458_v20  ;;  %v326_v29 = vmul.f32 %v1060_v22, %v1432_v0  ;;  %v1067_v30 = vunpack.c.l.bf16 %v1322_v18  ;;  %v1068_v31 = vunpack.c.h.bf16 %v1322_v18 }
  0x25   : > { %1349 = vst [vmem:[%s1466_s25 + $0x30] sm:$0xff] %v1186_v24   ;;  %v396_v32 = vadd.f32 %v1441_v9, %v325_v25  ;;  %v327_v33 = vmul.f32 %v1063_v26, %v1432_v0  ;;  %v328_v34 = vmul.f32 %v1064_v27, %v1432_v0  ;;  %v1071_v35 = vunpack.c.l.bf16 %v1323_v23 }
  0x26   : > { %1350 = vst [vmem:[%s1466_s25 + $0x38] sm:$0xff] %v1191_v28   ;;  %v397_v36 = vadd.f32 %v1441_v9, %v326_v29  ;;  %v329_v37 = vmul.f32 %v1067_v30, %v1432_v0  ;;  %v330_v38 = vmul.f32 %v1068_v31, %v1432_v0  ;;  %v1072_v39 = vunpack.c.h.bf16 %v1323_v23  ;;  %v1329_v31 = vld [vmem:[%s1427_s18 + $0x88] sm:$0xff]  }
  0x27   : > { %v460_v41 = vmax.f32 %v396_v32, 0.0  ;;  %v398_v42 = vadd.f32 %v1441_v9, %v327_v33  ;;  %v399_v43 = vadd.f32 %v1441_v9, %v328_v34  ;;  %v331_v44 = vmul.f32 %v1071_v35, %v1432_v0 }
  0x28   : > { %v461_v45 = vmax.f32 %v397_v36, 0.0  ;;  %v400_v46 = vadd.f32 %v1441_v9, %v329_v37  ;;  %v401_v47 = vadd.f32 %v1441_v9, %v330_v38  ;;  %v332_v48 = vmul.f32 %v1072_v39, %v1432_v0  ;;  %v1330_v36 = vld [vmem:[%s1427_s18 + $0x90] sm:$0xff]  }
  0x29   : > { %v462_v49 = vmax.f32 %v398_v42, 0.0  ;;  %v463_v50 = vmax.f32 %v399_v43, 0.0  ;;  %v402_v51 = vadd.f32 %v1441_v9, %v331_v44  ;;  %v1075_v52 = vunpack.c.l.bf16 %v1324_v40 }
  0x2a   : > { %v1196_v54 = vpack.c.bf16 %v461_v45, %v460_v41  ;;  %v464_v55 = vmax.f32 %v400_v46, 0.0  ;;  %v465_v56 = vmax.f32 %v401_v47, 0.0  ;;  %v403_v57 = vadd.f32 %v1441_v9, %v332_v48  ;;  %v1331_v41 = vld [vmem:[%s1427_s18 + $0x98] sm:$0xff]  }
  0x2b   : > { %v1201_v59 = vpack.c.bf16 %v463_v50, %v462_v49  ;;  %v466_v60 = vmax.f32 %v402_v51, 0.0  ;;  %v1076_v61 = vunpack.c.h.bf16 %v1324_v40  ;;  %v333_v62 = vmul.f32 %v1075_v52, %v1432_v0 }
  0x2c   : > { %1351 = vst [vmem:[%s1466_s25 + $0x40] sm:$0xff] %v1196_v54   ;;  %v1206_v1 = vpack.c.bf16 %v465_v56, %v464_v55  ;;  %v467_v2 = vmax.f32 %v403_v57, 0.0  ;;  %v1079_v3 = vunpack.c.l.bf16 %v1325_v53  ;;  %v1080_v4 = vunpack.c.h.bf16 %v1325_v53  ;;  %v1332_v54 = vld [vmem:[%s1427_s18 + $0xa0] sm:$0xff]  }
  0x2d   : > { %1352 = vst [vmem:[%s1466_s25 + $0x48] sm:$0xff] %v1201_v59   ;;  %v334_v5 = vmul.f32 %v1076_v61, %v1432_v0  ;;  %v404_v6 = vadd.f32 %v1441_v9, %v333_v62  ;;  %v1083_v7 = vunpack.c.l.bf16 %v1326_v58  ;;  %v1084_v8 = vunpack.c.h.bf16 %v1326_v58 }
  0x2e   : > { %1353 = vst [vmem:[%s1466_s25 + $0x50] sm:$0xff] %v1206_v1   ;;  %v1211_v10 = vpack.c.bf16 %v467_v2, %v466_v60  ;;  %v335_v11 = vmul.f32 %v1079_v3, %v1432_v0  ;;  %v336_v12 = vmul.f32 %v1080_v4, %v1432_v0  ;;  %v1087_v13 = vunpack.c.l.bf16 %v1327_v63  ;;  %v1333_v4 = vld [vmem:[%s1427_s18 + $0xa8] sm:$0xff]  }
  0x2f   : > { %v405_v15 = vadd.f32 %v1441_v9, %v334_v5  ;;  %v468_v16 = vmax.f32 %v404_v6, 0.0  ;;  %v337_v17 = vmul.f32 %v1083_v7, %v1432_v0  ;;  %v338_v18 = vmul.f32 %v1084_v8, %v1432_v0 }
  0x30   : > { %1354 = vst [vmem:[%s1466_s25 + $0x58] sm:$0xff] %v1211_v10   ;;  %v406_v19 = vadd.f32 %v1441_v9, %v335_v11  ;;  %v407_v20 = vadd.f32 %v1441_v9, %v336_v12  ;;  %v1088_v21 = vunpack.c.h.bf16 %v1327_v63  ;;  %v339_v22 = vmul.f32 %v1087_v13, %v1432_v0 }
  0x31   : > { %v469_v23 = vmax.f32 %v405_v15, 0.0  ;;  %v408_v24 = vadd.f32 %v1441_v9, %v337_v17  ;;  %v409_v25 = vadd.f32 %v1441_v9, %v338_v18  ;;  %v1091_v26 = vunpack.c.l.bf16 %v1328_v14 }
  0x32   : > { %v470_v27 = vmax.f32 %v406_v19, 0.0  ;;  %v471_v28 = vmax.f32 %v407_v20, 0.0  ;;  %v340_v29 = vmul.f32 %v1088_v21, %v1432_v0  ;;  %v410_v30 = vadd.f32 %v1441_v9, %v339_v22  ;;  %v1335_v19 = vld [vmem:[%s1427_s18 + $0xb8] sm:$0xff]  }
  0x33   : > { %v1216_v32 = vpack.c.bf16 %v469_v23, %v468_v16  ;;  %v472_v33 = vmax.f32 %v408_v24, 0.0  ;;  %v473_v34 = vmax.f32 %v409_v25, 0.0  ;;  %v1092_v35 = vunpack.c.h.bf16 %v1328_v14  ;;  %v1334_v14 = vld [vmem:[%s1427_s18 + $0xb0] sm:$0xff]  }
  0x34   : > { %v1221_v37 = vpack.c.bf16 %v471_v28, %v470_v27  ;;  %v411_v38 = vadd.f32 %v1441_v9, %v340_v29  ;;  %v474_v39 = vmax.f32 %v410_v30, 0.0  ;;  %v341_v40 = vmul.f32 %v1091_v26, %v1432_v0 }
  0x35   : > { %1355 = vst [vmem:[%s1466_s25 + $0x60] sm:$0xff] %v1216_v32   ;;  %v1226_v42 = vpack.c.bf16 %v473_v34, %v472_v33  ;;  %v342_v43 = vmul.f32 %v1092_v35, %v1432_v0  ;;  %v1095_v44 = vunpack.c.l.bf16 %v1329_v31  ;;  %v1096_v45 = vunpack.c.h.bf16 %v1329_v31  ;;  %v1336_v32 = vld [vmem:[%s1427_s18 + $0xc0] sm:$0xff]  }
  0x36   : > { %1356 = vst [vmem:[%s1466_s25 + $0x68] sm:$0xff] %v1221_v37   ;;  %v475_v46 = vmax.f32 %v411_v38, 0.0  ;;  %v412_v47 = vadd.f32 %v1441_v9, %v341_v40  ;;  %v1099_v48 = vunpack.c.l.bf16 %v1330_v36  ;;  %v1100_v49 = vunpack.c.h.bf16 %v1330_v36 }
  0x37   : > { %1357 = vst [vmem:[%s1466_s25 + $0x70] sm:$0xff] %v1226_v42   ;;  %v413_v50 = vadd.f32 %v1441_v9, %v342_v43  ;;  %v343_v51 = vmul.f32 %v1095_v44, %v1432_v0  ;;  %v344_v52 = vmul.f32 %v1096_v45, %v1432_v0  ;;  %v1103_v53 = vunpack.c.l.bf16 %v1331_v41  ;;  %v1337_v45 = vld [vmem:[%s1427_s18 + $0xc8] sm:$0xff]  }
  0x38   : > { %v1231_v55 = vpack.c.bf16 %v475_v46, %v474_v39  ;;  %v476_v56 = vmax.f32 %v412_v47, 0.0  ;;  %v345_v57 = vmul.f32 %v1099_v48, %v1432_v0  ;;  %v346_v58 = vmul.f32 %v1100_v49, %v1432_v0 }
  0x39   : > { %v477_v59 = vmax.f32 %v413_v50, 0.0  ;;  %v414_v60 = vadd.f32 %v1441_v9, %v343_v51  ;;  %v415_v61 = vadd.f32 %v1441_v9, %v344_v52  ;;  %v1104_v62 = vunpack.c.h.bf16 %v1331_v41 }
  0x3a   : > { %1358 = vst [vmem:[%s1466_s25 + $0x78] sm:$0xff] %v1231_v55   ;;  %v416_v63 = vadd.f32 %v1441_v9, %v345_v57  ;;  %v417_v1 = vadd.f32 %v1441_v9, %v346_v58  ;;  %v347_v2 = vmul.f32 %v1103_v53, %v1432_v0  ;;  %v1107_v3 = vunpack.c.l.bf16 %v1332_v54 }
  0x3b   : > { %v1236_v5 = vpack.c.bf16 %v477_v59, %v476_v56  ;;  %v478_v6 = vmax.f32 %v414_v60, 0.0  ;;  %v479_v7 = vmax.f32 %v415_v61, 0.0  ;;  %v348_v8 = vmul.f32 %v1104_v62, %v1432_v0 }
  0x3c   : > { %v480_v10 = vmax.f32 %v416_v63, 0.0  ;;  %v481_v11 = vmax.f32 %v417_v1, 0.0  ;;  %v418_v12 = vadd.f32 %v1441_v9, %v347_v2  ;;  %v1108_v13 = vunpack.c.h.bf16 %v1332_v54  ;;  %v1338_v54 = vld [vmem:[%s1427_s18 + $0xd0] sm:$0xff]   ;;  %v1339_v63 = vld [vmem:[%s1427_s18 + $0xd8] sm:$0xff]  }
  0x3d   : > { %1359 = vst [vmem:[%s1466_s25 + $0x80] sm:$0xff] %v1236_v5   ;;  %v1241_v15 = vpack.c.bf16 %v479_v7, %v478_v6  ;;  %v419_v16 = vadd.f32 %v1441_v9, %v348_v8  ;;  %v349_v17 = vmul.f32 %v1107_v3, %v1432_v0  ;;  %v1111_v18 = vunpack.c.l.bf16 %v1333_v4 }
  0x3e   : > { %v1246_v20 = vpack.c.bf16 %v481_v11, %v480_v10  ;;  %v482_v21 = vmax.f32 %v418_v12, 0.0  ;;  %v350_v22 = vmul.f32 %v1108_v13, %v1432_v0  ;;  %v1112_v23 = vunpack.c.h.bf16 %v1333_v4  ;;  %v1340_v10 = vld [vmem:[%s1427_s18 + $0xe0] sm:$0xff]  }
  0x3f   : > { %1360 = vst [vmem:[%s1466_s25 + $0x88] sm:$0xff] %v1241_v15   ;;  %v483_v24 = vmax.f32 %v419_v16, 0.0  ;;  %v420_v25 = vadd.f32 %v1441_v9, %v349_v17  ;;  %v351_v26 = vmul.f32 %v1111_v18, %v1432_v0  ;;  %v1115_v27 = vunpack.c.l.bf16 %v1334_v14 }
  0x40   : > { %1361 = vst [vmem:[%s1466_s25 + $0x90] sm:$0xff] %v1246_v20   ;;  %v421_v28 = vadd.f32 %v1441_v9, %v350_v22  ;;  %v352_v29 = vmul.f32 %v1112_v23, %v1432_v0  ;;  %v1116_v30 = vunpack.c.h.bf16 %v1334_v14  ;;  %v1119_v31 = vunpack.c.l.bf16 %v1335_v19  ;;  %v1341_v23 = vld [vmem:[%s1427_s18 + $0xe8] sm:$0xff]  }
  0x41   : > { %v1251_v33 = vpack.c.bf16 %v483_v24, %v482_v21  ;;  %v484_v34 = vmax.f32 %v420_v25, 0.0  ;;  %v422_v35 = vadd.f32 %v1441_v9, %v351_v26  ;;  %v353_v36 = vmul.f32 %v1115_v27, %v1432_v0 }
  0x42   : > { %v485_v37 = vmax.f32 %v421_v28, 0.0  ;;  %v423_v38 = vadd.f32 %v1441_v9, %v352_v29  ;;  %v354_v39 = vmul.f32 %v1116_v30, %v1432_v0  ;;  %v1120_v40 = vunpack.c.h.bf16 %v1335_v19 }
  0x43   : > { %1362 = vst [vmem:[%s1466_s25 + $0x98] sm:$0xff] %v1251_v33   ;;  %v486_v41 = vmax.f32 %v422_v35, 0.0  ;;  %v424_v42 = vadd.f32 %v1441_v9, %v353_v36  ;;  %v355_v43 = vmul.f32 %v1119_v31, %v1432_v0  ;;  %v1123_v44 = vunpack.c.l.bf16 %v1336_v32 }
  0x44   : > { %v1256_v46 = vpack.c.bf16 %v485_v37, %v484_v34  ;;  %v487_v47 = vmax.f32 %v423_v38, 0.0  ;;  %v425_v48 = vadd.f32 %v1441_v9, %v354_v39  ;;  %v356_v49 = vmul.f32 %v1120_v40, %v1432_v0 }
  0x45   : > { %v488_v50 = vmax.f32 %v424_v42, 0.0  ;;  %v426_v51 = vadd.f32 %v1441_v9, %v355_v43  ;;  %v1124_v52 = vunpack.c.h.bf16 %v1336_v32  ;;  %v357_v53 = vmul.f32 %v1123_v44, %v1432_v0  ;;  %v1342_v32 = vld [vmem:[%s1427_s18 + $0xf0] sm:$0xff]  }
  0x46   : > { %1363 = vst [vmem:[%s1466_s25 + $0xa0] sm:$0xff] %v1256_v46   ;;  %v1261_v55 = vpack.c.bf16 %v487_v47, %v486_v41  ;;  %v489_v56 = vmax.f32 %v425_v48, 0.0  ;;  %v427_v57 = vadd.f32 %v1441_v9, %v356_v49  ;;  %v1127_v58 = vunpack.c.l.bf16 %v1337_v45  ;;  %v1343_v41 = vld [vmem:[%s1427_s18 + $0xf8] sm:$0xff]  }
  0x47   : > { %v490_v59 = vmax.f32 %v426_v51, 0.0  ;;  %v358_v60 = vmul.f32 %v1124_v52, %v1432_v0  ;;  %v428_v61 = vadd.f32 %v1441_v9, %v357_v53  ;;  %v1128_v62 = vunpack.c.h.bf16 %v1337_v45 }
  0x48   : > { %1364 = vst [vmem:[%s1466_s25 + $0xa8] sm:$0xff] %v1261_v55   ;;  %v1266_v1 = vpack.c.bf16 %v489_v56, %v488_v50  ;;  %v491_v2 = vmax.f32 %v427_v57, 0.0  ;;  %v359_v3 = vmul.f32 %v1127_v58, %v1432_v0  ;;  %v1131_v4 = vunpack.c.l.bf16 %v1338_v54 }
  0x49   : > { %v429_v5 = vadd.f32 %v1441_v9, %v358_v60  ;;  %v492_v6 = vmax.f32 %v428_v61, 0.0  ;;  %v360_v7 = vmul.f32 %v1128_v62, %v1432_v0  ;;  %v1132_v8 = vunpack.c.h.bf16 %v1338_v54 }
  0x4a   : > { %1365 = vst [vmem:[%s1466_s25 + $0xb0] sm:$0xff] %v1266_v1   ;;  %v1271_v11 = vpack.c.bf16 %v491_v2, %v490_v59  ;;  %v430_v12 = vadd.f32 %v1441_v9, %v359_v3  ;;  %v361_v13 = vmul.f32 %v1131_v4, %v1432_v0  ;;  %v1135_v14 = vunpack.c.l.bf16 %v1339_v63 }
  0x4b   : > { %v493_v15 = vmax.f32 %v429_v5, 0.0  ;;  %v431_v16 = vadd.f32 %v1441_v9, %v360_v7  ;;  %v362_v17 = vmul.f32 %v1132_v8, %v1432_v0  ;;  %v1136_v18 = vunpack.c.h.bf16 %v1339_v63 }
  0x4c   : > { %1366 = vst [vmem:[%s1466_s25 + $0xb8] sm:$0xff] %v1271_v11   ;;  %v494_v19 = vmax.f32 %v430_v12, 0.0  ;;  %v432_v20 = vadd.f32 %v1441_v9, %v361_v13  ;;  %v363_v21 = vmul.f32 %v1135_v14, %v1432_v0  ;;  %v1139_v22 = vunpack.c.l.bf16 %v1340_v10 }
  0x4d   : > { %v1276_v24 = vpack.c.bf16 %v493_v15, %v492_v6  ;;  %v495_v25 = vmax.f32 %v431_v16, 0.0  ;;  %v433_v26 = vadd.f32 %v1441_v9, %v362_v17  ;;  %v364_v27 = vmul.f32 %v1136_v18, %v1432_v0 }
  0x4e   : > { %v496_v28 = vmax.f32 %v432_v20, 0.0  ;;  %v434_v29 = vadd.f32 %v1441_v9, %v363_v21  ;;  %v1140_v30 = vunpack.c.h.bf16 %v1340_v10  ;;  %v365_v31 = vmul.f32 %v1139_v22, %v1432_v0 }
  0x4f   : > { %1367 = vst [vmem:[%s1466_s25 + $0xc0] sm:$0xff] %v1276_v24   ;;  %v1281_v33 = vpack.c.bf16 %v495_v25, %v494_v19  ;;  %v497_v34 = vmax.f32 %v433_v26, 0.0  ;;  %v435_v35 = vadd.f32 %v1441_v9, %v364_v27  ;;  %v1143_v36 = vunpack.c.l.bf16 %v1341_v23 }
  0x50   : > { %v498_v37 = vmax.f32 %v434_v29, 0.0  ;;  %v366_v38 = vmul.f32 %v1140_v30, %v1432_v0  ;;  %v436_v39 = vadd.f32 %v1441_v9, %v365_v31  ;;  %v1144_v40 = vunpack.c.h.bf16 %v1341_v23 }
  0x51   : > { %1368 = vst [vmem:[%s1466_s25 + $0xc8] sm:$0xff] %v1281_v33   ;;  %v1286_v42 = vpack.c.bf16 %v497_v34, %v496_v28  ;;  %v499_v43 = vmax.f32 %v435_v35, 0.0  ;;  %v367_v44 = vmul.f32 %v1143_v36, %v1432_v0  ;;  %v1147_v45 = vunpack.c.l.bf16 %v1342_v32 }
  0x52   : > { %v437_v46 = vadd.f32 %v1441_v9, %v366_v38  ;;  %v500_v47 = vmax.f32 %v436_v39, 0.0  ;;  %v368_v48 = vmul.f32 %v1144_v40, %v1432_v0  ;;  %v1148_v49 = vunpack.c.h.bf16 %v1342_v32 }
  0x53   : > { %1369 = vst [vmem:[%s1466_s25 + $0xd0] sm:$0xff] %v1286_v42   ;;  %v1291_v50 = vpack.c.bf16 %v499_v43, %v498_v37  ;;  %v438_v51 = vadd.f32 %v1441_v9, %v367_v44  ;;  %v369_v52 = vmul.f32 %v1147_v45, %v1432_v0  ;;  %v1151_v53 = vunpack.c.l.bf16 %v1343_v41 }
  0x54   : > { %v501_v54 = vmax.f32 %v437_v46, 0.0  ;;  %v439_v55 = vadd.f32 %v1441_v9, %v368_v48  ;;  %v370_v56 = vmul.f32 %v1148_v49, %v1432_v0  ;;  %v1152_v57 = vunpack.c.h.bf16 %v1343_v41 }
  0x55   : > { %1370 = vst [vmem:[%s1466_s25 + $0xd8] sm:$0xff] %v1291_v50   ;;  %v502_v58 = vmax.f32 %v438_v51, 0.0  ;;  %v440_v59 = vadd.f32 %v1441_v9, %v369_v52  ;;  %v371_v60 = vmul.f32 %v1151_v53, %v1432_v0 }
  0x56   : > { %v1296_v61 = vpack.c.bf16 %v501_v54, %v500_v47  ;;  %v503_v62 = vmax.f32 %v439_v55, 0.0  ;;  %v441_v63 = vadd.f32 %v1441_v9, %v370_v56  ;;  %v372_v1 = vmul.f32 %v1152_v57, %v1432_v0 }
  0x57   : > { %v504_v2 = vmax.f32 %v440_v59, 0.0  ;;  %v442_v3 = vadd.f32 %v1441_v9, %v371_v60 }
  0x58   : > { %1371 = vst [vmem:[%s1466_s25 + $0xe0] sm:$0xff] %v1296_v61   ;;  %v1301_v4 = vpack.c.bf16 %v503_v62, %v502_v58  ;;  %v505_v5 = vmax.f32 %v441_v63, 0.0  ;;  %v443_v6 = vadd.f32 %v1441_v9, %v372_v1 }
  0x59   : > { %v506_v7 = vmax.f32 %v442_v3, 0.0 }
  0x5a   : > { %1372 = vst [vmem:[%s1466_s25 + $0xe8] sm:$0xff] %v1301_v4   ;;  %v1306_v8 = vpack.c.bf16 %v505_v5, %v504_v2  ;;  %v507_v10 = vmax.f32 %v443_v6, 0.0 }
  0x5c   : > { %1373 = vst [vmem:[%s1466_s25 + $0xf0] sm:$0xff] %v1306_v8   ;;  %v1311_v11 = vpack.c.bf16 %v507_v10, %v506_v7 }
  0x5e   : > { %1374 = vst [vmem:[%s1466_s25 + $0xf8] sm:$0xff] %v1311_v11  }
  0x5f PF: > { %s13_s12 = sadd.s32 1, %s1389_s12  }
  0x60   : > { %p10_p4 = scmp.ge.s32.totalorder %s13_s12, 4  }
  0x62   :  { %12 = sbr.rel (!%p10_p4) target bundleno = 1 (0x1), region = 62 }

// kernel: bottleneck_forward.6
= control target key start
LH: loop header
LB: loop body
LE: loop exit
PB: predicated region body
PF: predicated region fallthrough
CT: control target
= control target key end

     0   :  { %s2095_s12 = smov 0   ;;  %s2097_s13 = smov 0   ;;  %s2427_s0 = inlined_call_operand.vmem [shape: bf16[1024,128], index: 0, kind: input, shape index: {}]   ;;  %s2428_s1 = inlined_call_operand.vmem [shape: bf16[128,128], index: 1, kind: input, shape index: {}]   ;;  %s2429_s2 = inlined_call_operand.vmem [shape: bf16[1024,128], index: 2, kind: output, shape index: {0}]   ;;  %s2430_s3 = inlined_call_operand.vmem [shape: f32[2,2,128], index: 3, kind: output, shape index: {1}]  }
   0x1   :  { %s2099_s14 = smov 0  }
   0x2 LB: > { %s26_s15 = sadd.s32 1, %s2069_s13  ;;  %p1484_p0 = scmp.ge.s32.totalorder %s2073_s14, 1  ;;  %s2073_s14 = sphi %s2099_s14, %s14_s14   ;;  %s2069_s13 = sphi %s2097_s13, %s2432_s13   ;;  %s2065_s12 = sphi %s2095_s12, %s2431_s12  }
   0x3   : > { %p28_p1 = scmp.ge.s32.totalorder %s26_s15, 2  ;;  %p169_p2 = scmp.lt.s32.totalorder %s2073_s14, 3 }
   0x5   : > { %s2434_s15 = smov (%p28_p1, %s26_s15), 0  ;;  %p170_p3 = pnand %p1484_p0, %p169_p2 }
   0x6   : > { %v2011_v0 = vld [vmem:[%s2428_s1] sm:$0xff] (!%p170_p3)   ;;  %s1485_s18 = sshll.u32 (!%p170_p3), %s2065_s12, 6  ;;  %v2012_v1 = vld [vmem:[%s2428_s1 + $0x8] sm:$0xff] (!%p170_p3)   ;;  %v2013_v2 = vld [vmem:[%s2428_s1 + $0x10] sm:$0xff] (!%p170_p3)   ;;  %p226_p5 = scmp.lt.s32.totalorder (!%p170_p3), %s2065_s12, 1  ;;  %vm1362_vm0 = vcmask (!%p170_p3), 1040384  }
   0x7   : > { %173 = sbr.rel (%p170_p3) target bundleno = 396 (0x18c), region = 28  ;;  %p206_p4 = scmp.lt.s32.totalorder (!%p170_p3), %s1485_s18, 127  ;;  %1891 = vmatprep.subr.bf16.mxu0 (!%p170_p3), %v2011_v0  ;;  %1971 = vmatprep.subr.bf16.mxu1 (!%p170_p3), %v2011_v0  ;;  %v2014_v3 = vld [vmem:[%s2428_s1 + $0x18] sm:$0xff] (!%p170_p3)   ;;  %v2015_v5 = vld [vmem:[%s2428_s1 + $0x20] sm:$0xff] (!%p170_p3)   ;;  %v2016_v6 = vld [vmem:[%s2428_s1 + $0x28] sm:$0xff] (!%p170_p3)  }
   0x8   : > { %1892 = vmatpush3.bf16.msra.mxu0 (!%p170_p3), %v2011_v0  ;;  %1979 = vmatpush3.bf16.msra.mxu1 (!%p170_p3), %v2011_v0  ;;  %v2017_v7 = vld [vmem:[%s2428_s1 + $0x30] sm:$0xff] (!%p170_p3)   ;;  %v2018_v8 = vld [vmem:[%s2428_s1 + $0x38] sm:$0xff] (!%p170_p3)  }
   0x9   : > { %1893 = vmatprep.subr.bf16.mxu0 (!%p170_p3), %v2012_v1  ;;  %1972 = vmatprep.subr.bf16.mxu1 (!%p170_p3), %v2012_v1 }
   0xc   : > { %1894 = vmatpush3.bf16.msra.mxu0 (!%p170_p3), %v2012_v1  ;;  %1980 = vmatpush3.bf16.msra.mxu1 (!%p170_p3), %v2012_v1 }
   0xd   : > { %1895 = vmatprep.subr.bf16.mxu0 (!%p170_p3), %v2013_v2  ;;  %1973 = vmatprep.subr.bf16.mxu1 (!%p170_p3), %v2013_v2 }
   0xe   : > { %s2436_s18 = smov (!%p206_p4, %s1485_s18), 127  ;;  %s2438_s12 = smov (!%p226_p5, %s2065_s12), 1 }
   0xf   : > { %s1486_s23 = sshll.u32 %s2436_s18, 2  ;;  %s1489_s17 = sshll.u32 %s2438_s12, 1 }
  0x10   : > { %s2133_s26 = scalar_lea.vmem %s2427_s0, %s1486_s23  ;;  %1896 = vmatpush3.bf16.msra.mxu0 %v2013_v2  ;;  %1981 = vmatpush3.bf16.msra.mxu1 %v2013_v2  ;;  %s2191_s16 = scalar_lea.vmem %s2429_s2, %s1486_s23 }
  0x11   : > { %v2019_v4 = vld [vmem:[%s2133_s26] sm:$0xff]   ;;  %1897 = vmatprep.subr.bf16.mxu0 %v2014_v3  ;;  %1974 = vmatprep.subr.bf16.mxu1 %v2014_v3  ;;  %v2020_v10 = vld [vmem:[%s2133_s26 + $0x8] sm:$0xff]   ;;  %v2021_v11 = vld [vmem:[%s2133_s26 + $0x10] sm:$0xff]   ;;  %s229_s20 = scalar_lea.vmem %s2430_s3, %s1489_s17 }
  0x12   : > { %1907 = vmatprep.mubr.bf16.mxu0 %v2019_v4  ;;  %v2035_v9 = vld [vmem:[%s2133_s26 + $0x80] sm:$0xff]   ;;  %v2036_v12 = vld [vmem:[%s2133_s26 + $0x88] sm:$0xff]   ;;  %v2037_v13 = vld [vmem:[%s2133_s26 + $0x90] sm:$0xff]  }
  0x13   : > { %1939 = vmatprep.mubr.bf16.mxu1 %v2035_v9  ;;  %v2022_v14 = vld [vmem:[%s2133_s26 + $0x18] sm:$0xff]   ;;  %v2023_v15 = vld [vmem:[%s2133_s26 + $0x20] sm:$0xff]   ;;  %v2024_v18 = vld [vmem:[%s2133_s26 + $0x28] sm:$0xff]  }
  0x14   : > { %1898 = vmatpush3.bf16.msra.mxu0 %v2014_v3  ;;  %1982 = vmatpush3.bf16.msra.mxu1 %v2014_v3  ;;  %v2038_v16 = vld [vmem:[%s2133_s26 + $0x98] sm:$0xff]   ;;  %v2039_v17 = vld [vmem:[%s2133_s26 + $0xa0] sm:$0xff]   ;;  %v2040_v19 = vld [vmem:[%s2133_s26 + $0xa8] sm:$0xff]  }
  0x15   : > { %1899 = vmatprep.subr.bf16.mxu0 %v2015_v5  ;;  %1975 = vmatprep.subr.bf16.mxu1 %v2015_v5  ;;  %v2025_v20 = vld [vmem:[%s2133_s26 + $0x30] sm:$0xff]   ;;  %v2026_v22 = vld [vmem:[%s2133_s26 + $0x38] sm:$0xff]   ;;  %v2027_v24 = vld [vmem:[%s2133_s26 + $0x40] sm:$0xff]  }
  0x16   : > { %v2041_v21 = vld [vmem:[%s2133_s26 + $0xb0] sm:$0xff]   ;;  %v2042_v23 = vld [vmem:[%s2133_s26 + $0xb8] sm:$0xff]   ;;  %v2043_v25 = vld [vmem:[%s2133_s26 + $0xc0] sm:$0xff]  }
  0x17   : > { %v2028_v26 = vld [vmem:[%s2133_s26 + $0x48] sm:$0xff]   ;;  %v2029_v28 = vld [vmem:[%s2133_s26 + $0x50] sm:$0xff]   ;;  %v2030_v30 = vld [vmem:[%s2133_s26 + $0x58] sm:$0xff]  }
  0x18   : > { %1900 = vmatpush3.bf16.msra.mxu0 %v2015_v5  ;;  %1983 = vmatpush3.bf16.msra.mxu1 %v2015_v5  ;;  %v2044_v27 = vld [vmem:[%s2133_s26 + $0xc8] sm:$0xff]   ;;  %v2045_v29 = vld [vmem:[%s2133_s26 + $0xd0] sm:$0xff]   ;;  %v2046_v31 = vld [vmem:[%s2133_s26 + $0xd8] sm:$0xff]  }
  0x19   : > { %1901 = vmatprep.subr.bf16.mxu0 %v2016_v6  ;;  %1976 = vmatprep.subr.bf16.mxu1 %v2016_v6  ;;  %v2031_v32 = vld [vmem:[%s2133_s26 + $0x60] sm:$0xff]   ;;  %v2032_v34 = vld [vmem:[%s2133_s26 + $0x68] sm:$0xff]   ;;  %v2033_v36 = vld [vmem:[%s2133_s26 + $0x70] sm:$0xff]  }
  0x1a   : > { %v2047_v33 = vld [vmem:[%s2133_s26 + $0xe0] sm:$0xff]   ;;  %v2048_v35 = vld [vmem:[%s2133_s26 + $0xe8] sm:$0xff]   ;;  %v2049_v37 = vld [vmem:[%s2133_s26 + $0xf0] sm:$0xff]  }
  0x1b   : > { %v2034_v38 = vld [vmem:[%s2133_s26 + $0x78] sm:$0xff]  }
  0x1c   : > { %1902 = vmatpush3.bf16.msra.mxu0 %v2016_v6  ;;  %1984 = vmatpush3.bf16.msra.mxu1 %v2016_v6  ;;  %v2050_v39 = vld [vmem:[%s2133_s26 + $0xf8] sm:$0xff]  }
  0x1d   : > { %1903 = vmatprep.subr.bf16.mxu0 %v2017_v7  ;;  %1977 = vmatprep.subr.bf16.mxu1 %v2017_v7 }
  0x20   : > { %1904 = vmatpush3.bf16.msra.mxu0 %v2017_v7  ;;  %1985 = vmatpush3.bf16.msra.mxu1 %v2017_v7 }
  0x21   : > { %1905 = vmatprep.subr.bf16.mxu0 %v2018_v8  ;;  %1978 = vmatprep.subr.bf16.mxu1 %v2018_v8 }
  0x24   : > { %1906 = vmatpush3.bf16.msra.mxu0 %v2018_v8  ;;  %1986 = vmatpush3.bf16.msra.mxu1 %v2018_v8 }
  0x27   : > { %1908 = vmatmul.mubr.bf16.vlgmr.msra.gmra.mrb[0].mxu0 %v2020_v10  ;;  %1940 = vmatmul.mubr.bf16.vlgmr.msra.gmra.mrb[0].mxu1 %v2036_v12 }
  0x28   : > { %1911 = vmatprep.mubr.bf16.mxu0 %v2021_v11  ;;  %1943 = vmatprep.mubr.bf16.mxu1 %v2037_v13 }
  0x2f   : > { %1912 = vmatmul.mubr.bf16.gmra.mrb[4].mxu0 %v2022_v14  ;;  %1944 = vmatmul.mubr.bf16.gmra.mrb[4].mxu1 %v2038_v16 }
  0x30   : > { %1915 = vmatprep.mubr.bf16.mxu0 %v2023_v15  ;;  %1947 = vmatprep.mubr.bf16.mxu1 %v2039_v17 }
  0x37   : > { %1916 = vmatmul.mubr.bf16.gmra.mrb[8].mxu0 %v2024_v18  ;;  %1948 = vmatmul.mubr.bf16.gmra.mrb[8].mxu1 %v2040_v19 }
  0x38   : > { %1919 = vmatprep.mubr.bf16.mxu0 %v2025_v20  ;;  %1951 = vmatprep.mubr.bf16.mxu1 %v2041_v21 }
  0x3f   : > { %1920 = vmatmul.mubr.bf16.gmra.mrb[12].mxu0 %v2026_v22  ;;  %1952 = vmatmul.mubr.bf16.gmra.mrb[12].mxu1 %v2042_v23 }
  0x40   : > { %1923 = vmatprep.mubr.bf16.mxu0 %v2027_v24  ;;  %1955 = vmatprep.mubr.bf16.mxu1 %v2043_v25 }
  0x47   : > { %1924 = vmatmul.mubr.bf16.gmra.mrb[16].mxu0 %v2028_v26  ;;  %1956 = vmatmul.mubr.bf16.gmra.mrb[16].mxu1 %v2044_v27 }
  0x48   : > { %1927 = vmatprep.mubr.bf16.mxu0 %v2029_v28  ;;  %1959 = vmatprep.mubr.bf16.mxu1 %v2045_v29 }
  0x4f   : > { %1928 = vmatmul.mubr.bf16.gmra.mrb[20].mxu0 %v2030_v30  ;;  %1960 = vmatmul.mubr.bf16.gmra.mrb[20].mxu1 %v2046_v31 }
  0x50   : > { %1931 = vmatprep.mubr.bf16.mxu0 %v2031_v32  ;;  %1963 = vmatprep.mubr.bf16.mxu1 %v2047_v33 }
  0x57   : > { %1932 = vmatmul.mubr.bf16.gmra.mrb[24].mxu0 %v2032_v34  ;;  %1964 = vmatmul.mubr.bf16.gmra.mrb[24].mxu1 %v2048_v35 }
  0x58   : > { %1935 = vmatprep.mubr.bf16.mxu0 %v2033_v36  ;;  %1967 = vmatprep.mubr.bf16.mxu1 %v2049_v37 }
  0x5f   : > { %1936 = vmatmul.mubr.bf16.gmra.mrb[28].mxu0 %v2034_v38  ;;  %1968 = vmatmul.mubr.bf16.gmra.mrb[28].mxu1 %v2050_v39 }
  0xfa   : > { %v1909_v40 = vpop.f32.mrb[0].mxu0  ;;  %v2182_v41 = vpop.f32.mrb[0].mxu1 }
  0xfb   : > { %v585_v42 = vpop.f32.mrb[1].mxu0  ;;  %v2184_v43 = vpop.f32.mrb[1].mxu1  ;;  %v1231_v55 = vmul.f32 %v1909_v40, %v1909_v40 }
  0xfc   : > { %v1910_v44 = vpop.f32.mrb[2].mxu0  ;;  %v2193_v45 = vpop.f32.mrb[2].mxu1  ;;  %v1229_v46 = vmul.f32 %v585_v42, %v585_v42 }
  0xfd   : > { %v1668_v47 = vpack.c.bf16 %v1910_v44, %v1909_v40  ;;  %v588_v48 = vpop.f32.mrb[3].mxu0  ;;  %v1748_v49 = vpack.c.bf16 %v2193_v45, %v2182_v41  ;;  %v2197_v50 = vpop.f32.mrb[3].mxu1  ;;  %v1232_v58 = vmul.f32 %v1910_v44, %v1910_v44 }
  0xfe   : > { %v1663_v51 = vpack.c.bf16 %v588_v48, %v585_v42  ;;  %v1160_v52 = vadd.f32 %v588_v48, %v585_v42  ;;  %v1230_v53 = vmul.f32 %v588_v48, %v588_v48  ;;  %v1743_v54 = vpack.c.bf16 %v2197_v50, %v2184_v43 }
  0xff   : > { %1820 = vst [vmem:[%s2191_s16 + $0x8] sm:$0xff] %v1668_v47   ;;  %1836 = vst [vmem:[%s2191_s16 + $0x88] sm:$0xff] %v1748_v49  }
 0x100   : > { %1664 = vst [vmem:[%s2191_s16] sm:$0xff] %v1663_v51   ;;  %v1161_v56 = vadd.f32 %v1909_v40, %v1160_v52  ;;  %v1293_v57 = vadd.f32 %v1230_v53, %v1229_v46  ;;  %1835 = vst [vmem:[%s2191_s16 + $0x80] sm:$0xff] %v1743_v54  }
 0x102   : > { %v1294_v59 = vadd.f32 %v1293_v57, %v1231_v55  ;;  %v1913_v60 = vpop.f32.mrb[4].mxu0  ;;  %v1162_v61 = vadd.f32 %v1910_v44, %v1161_v56  ;;  %v2205_v62 = vpop.f32.mrb[4].mxu1 }
 0x103   : > { %v601_v63 = vpop.f32.mrb[5].mxu0  ;;  %v2207_v0 = vpop.f32.mrb[5].mxu1  ;;  %v1235_v15 = vmul.f32 %v1913_v60, %v1913_v60 }
 0x104   : > { %v1163_v1 = vadd.f32 %v1162_v61, %v601_v63  ;;  %v1233_v2 = vmul.f32 %v601_v63, %v601_v63  ;;  %v1295_v3 = vadd.f32 %v1294_v59, %v1232_v58  ;;  %v1914_v4 = vpop.f32.mrb[6].mxu0  ;;  %v2209_v5 = vpop.f32.mrb[6].mxu1 }
 0x105   : > { %v1678_v6 = vpack.c.bf16 %v1914_v4, %v1913_v60  ;;  %v604_v7 = vpop.f32.mrb[7].mxu0  ;;  %v1758_v8 = vpack.c.bf16 %v2209_v5, %v2205_v62  ;;  %v2213_v9 = vpop.f32.mrb[7].mxu1  ;;  %v1236_v18 = vmul.f32 %v1914_v4, %v1914_v4 }
 0x106   : > { %v1296_v10 = vadd.f32 %v1295_v3, %v1233_v2  ;;  %v1673_v11 = vpack.c.bf16 %v604_v7, %v601_v63  ;;  %v1164_v12 = vadd.f32 %v1163_v1, %v604_v7  ;;  %v1234_v13 = vmul.f32 %v604_v7, %v604_v7 }
 0x107   : > { %1822 = vst [vmem:[%s2191_s16 + $0x18] sm:$0xff] %v1678_v6   ;;  %1838 = vst [vmem:[%s2191_s16 + $0x98] sm:$0xff] %v1758_v8   ;;  %v1753_v14 = vpack.c.bf16 %v2213_v9, %v2207_v0 }
 0x108   : > { %1821 = vst [vmem:[%s2191_s16 + $0x10] sm:$0xff] %v1673_v11   ;;  %v1165_v16 = vadd.f32 %v1913_v60, %v1164_v12  ;;  %v1297_v17 = vadd.f32 %v1296_v10, %v1234_v13 }
 0x109   : > { %1837 = vst [vmem:[%s2191_s16 + $0x90] sm:$0xff] %v1753_v14  }
 0x10a   : > { %v1298_v19 = vadd.f32 %v1297_v17, %v1235_v15  ;;  %v1917_v20 = vpop.f32.mrb[8].mxu0  ;;  %v1166_v21 = vadd.f32 %v1914_v4, %v1165_v16  ;;  %v2221_v22 = vpop.f32.mrb[8].mxu1 }
 0x10b   : > { %v617_v23 = vpop.f32.mrb[9].mxu0  ;;  %v2223_v24 = vpop.f32.mrb[9].mxu1  ;;  %v1239_v39 = vmul.f32 %v1917_v20, %v1917_v20 }
 0x10c   : > { %v1167_v25 = vadd.f32 %v1166_v21, %v617_v23  ;;  %v1237_v26 = vmul.f32 %v617_v23, %v617_v23  ;;  %v1299_v27 = vadd.f32 %v1298_v19, %v1236_v18  ;;  %v1918_v28 = vpop.f32.mrb[10].mxu0  ;;  %v2225_v29 = vpop.f32.mrb[10].mxu1 }
 0x10d   : > { %v1688_v30 = vpack.c.bf16 %v1918_v28, %v1917_v20  ;;  %v620_v31 = vpop.f32.mrb[11].mxu0  ;;  %v1768_v32 = vpack.c.bf16 %v2225_v29, %v2221_v22  ;;  %v2229_v33 = vpop.f32.mrb[11].mxu1  ;;  %v1240_v44 = vmul.f32 %v1918_v28, %v1918_v28 }
 0x10e   : > { %v1300_v34 = vadd.f32 %v1299_v27, %v1237_v26  ;;  %v1683_v35 = vpack.c.bf16 %v620_v31, %v617_v23  ;;  %v1168_v36 = vadd.f32 %v1167_v25, %v620_v31  ;;  %v1238_v37 = vmul.f32 %v620_v31, %v620_v31 }
 0x10f   : > { %1824 = vst [vmem:[%s2191_s16 + $0x28] sm:$0xff] %v1688_v30   ;;  %1840 = vst [vmem:[%s2191_s16 + $0xa8] sm:$0xff] %v1768_v32   ;;  %v1763_v38 = vpack.c.bf16 %v2229_v33, %v2223_v24 }
 0x110   : > { %1823 = vst [vmem:[%s2191_s16 + $0x20] sm:$0xff] %v1683_v35   ;;  %v1169_v40 = vadd.f32 %v1917_v20, %v1168_v36  ;;  %v1301_v42 = vadd.f32 %v1300_v34, %v1238_v37 }
 0x111   : > { %1839 = vst [vmem:[%s2191_s16 + $0xa0] sm:$0xff] %v1763_v38  }
 0x112   : > { %v1302_v46 = vadd.f32 %v1301_v42, %v1239_v39  ;;  %v1921_v47 = vpop.f32.mrb[12].mxu0  ;;  %v1170_v48 = vadd.f32 %v1918_v28, %v1169_v40  ;;  %v2237_v49 = vpop.f32.mrb[12].mxu1 }
 0x113   : > { %v633_v51 = vpop.f32.mrb[13].mxu0  ;;  %v2239_v52 = vpop.f32.mrb[13].mxu1  ;;  %v1243_v6 = vmul.f32 %v1921_v47, %v1921_v47 }
 0x114   : > { %v1171_v53 = vadd.f32 %v1170_v48, %v633_v51  ;;  %v1241_v54 = vmul.f32 %v633_v51, %v633_v51  ;;  %v1303_v55 = vadd.f32 %v1302_v46, %v1240_v44  ;;  %v1922_v56 = vpop.f32.mrb[14].mxu0  ;;  %v2241_v57 = vpop.f32.mrb[14].mxu1 }
 0x115   : > { %v1698_v58 = vpack.c.bf16 %v1922_v56, %v1921_v47  ;;  %v636_v59 = vpop.f32.mrb[15].mxu0  ;;  %v1778_v60 = vpack.c.bf16 %v2241_v57, %v2237_v49  ;;  %v2245_v61 = vpop.f32.mrb[15].mxu1  ;;  %v1244_v10 = vmul.f32 %v1922_v56, %v1922_v56 }
 0x116   : > { %v1304_v63 = vadd.f32 %v1303_v55, %v1241_v54  ;;  %v1693_v1 = vpack.c.bf16 %v636_v59, %v633_v51  ;;  %v1172_v2 = vadd.f32 %v1171_v53, %v636_v59  ;;  %v1242_v3 = vmul.f32 %v636_v59, %v636_v59 }
 0x117   : > { %1826 = vst [vmem:[%s2191_s16 + $0x38] sm:$0xff] %v1698_v58   ;;  %1842 = vst [vmem:[%s2191_s16 + $0xb8] sm:$0xff] %v1778_v60   ;;  %v1773_v4 = vpack.c.bf16 %v2245_v61, %v2239_v52 }
 0x118   : > { %1825 = vst [vmem:[%s2191_s16 + $0x30] sm:$0xff] %v1693_v1   ;;  %v1173_v7 = vadd.f32 %v1921_v47, %v1172_v2  ;;  %v1305_v8 = vadd.f32 %v1304_v63, %v1242_v3 }
 0x119   : > { %1841 = vst [vmem:[%s2191_s16 + $0xb0] sm:$0xff] %v1773_v4  }
 0x11a   : > { %v1306_v11 = vadd.f32 %v1305_v8, %v1243_v6  ;;  %v1925_v12 = vpop.f32.mrb[16].mxu0  ;;  %v1174_v13 = vadd.f32 %v1922_v56, %v1173_v7  ;;  %v2253_v14 = vpop.f32.mrb[16].mxu1 }
 0x11b   : > { %v649_v15 = vpop.f32.mrb[17].mxu0  ;;  %v2255_v16 = vpop.f32.mrb[17].mxu1  ;;  %v1247_v35 = vmul.f32 %v1925_v12, %v1925_v12 }
 0x11c   : > { %v1175_v17 = vadd.f32 %v1174_v13, %v649_v15  ;;  %v1245_v18 = vmul.f32 %v649_v15, %v649_v15  ;;  %v1307_v19 = vadd.f32 %v1306_v11, %v1244_v10  ;;  %v1926_v20 = vpop.f32.mrb[18].mxu0  ;;  %v2257_v21 = vpop.f32.mrb[18].mxu1 }
 0x11d   : > { %v1708_v23 = vpack.c.bf16 %v1926_v20, %v1925_v12  ;;  %v652_v25 = vpop.f32.mrb[19].mxu0  ;;  %v1788_v26 = vpack.c.bf16 %v2257_v21, %v2253_v14  ;;  %v2261_v27 = vpop.f32.mrb[19].mxu1  ;;  %v1248_v38 = vmul.f32 %v1926_v20, %v1926_v20 }
 0x11e   : > { %v1308_v28 = vadd.f32 %v1307_v19, %v1245_v18  ;;  %v1703_v30 = vpack.c.bf16 %v652_v25, %v649_v15  ;;  %v1176_v31 = vadd.f32 %v1175_v17, %v652_v25  ;;  %v1246_v32 = vmul.f32 %v652_v25, %v652_v25 }
 0x11f   : > { %1828 = vst [vmem:[%s2191_s16 + $0x48] sm:$0xff] %v1708_v23   ;;  %1844 = vst [vmem:[%s2191_s16 + $0xc8] sm:$0xff] %v1788_v26   ;;  %v1783_v34 = vpack.c.bf16 %v2261_v27, %v2255_v16 }
 0x120   : > { %1827 = vst [vmem:[%s2191_s16 + $0x40] sm:$0xff] %v1703_v30   ;;  %v1177_v36 = vadd.f32 %v1925_v12, %v1176_v31  ;;  %v1309_v37 = vadd.f32 %v1308_v28, %v1246_v32 }
 0x121   : > { %1843 = vst [vmem:[%s2191_s16 + $0xc0] sm:$0xff] %v1783_v34  }
 0x122   : > { %v1310_v39 = vadd.f32 %v1309_v37, %v1247_v35  ;;  %v1929_v40 = vpop.f32.mrb[20].mxu0  ;;  %v1178_v42 = vadd.f32 %v1926_v20, %v1177_v36  ;;  %v2269_v44 = vpop.f32.mrb[20].mxu1 }
 0x123   : > { %v665_v46 = vpop.f32.mrb[21].mxu0  ;;  %v2271_v47 = vpop.f32.mrb[21].mxu1  ;;  %v1251_v6 = vmul.f32 %v1929_v40, %v1929_v40 }
 0x124   : > { %v1179_v48 = vadd.f32 %v1178_v42, %v665_v46  ;;  %v1249_v51 = vmul.f32 %v665_v46, %v665_v46  ;;  %v1311_v53 = vadd.f32 %v1310_v39, %v1248_v38  ;;  %v1930_v54 = vpop.f32.mrb[22].mxu0  ;;  %v2273_v55 = vpop.f32.mrb[22].mxu1 }
 0x125   : > { %v1718_v56 = vpack.c.bf16 %v1930_v54, %v1929_v40  ;;  %v668_v58 = vpop.f32.mrb[23].mxu0  ;;  %v1798_v59 = vpack.c.bf16 %v2273_v55, %v2269_v44  ;;  %v2277_v60 = vpop.f32.mrb[23].mxu1  ;;  %v1252_v10 = vmul.f32 %v1930_v54, %v1930_v54 }
 0x126   : > { %v1312_v63 = vadd.f32 %v1311_v53, %v1249_v51  ;;  %v1713_v1 = vpack.c.bf16 %v668_v58, %v665_v46  ;;  %v1180_v2 = vadd.f32 %v1179_v48, %v668_v58  ;;  %v1250_v3 = vmul.f32 %v668_v58, %v668_v58 }
 0x127   : > { %1830 = vst [vmem:[%s2191_s16 + $0x58] sm:$0xff] %v1718_v56   ;;  %1846 = vst [vmem:[%s2191_s16 + $0xd8] sm:$0xff] %v1798_v59   ;;  %v1793_v4 = vpack.c.bf16 %v2277_v60, %v2271_v47 }
 0x128   : > { %1829 = vst [vmem:[%s2191_s16 + $0x50] sm:$0xff] %v1713_v1   ;;  %v1181_v7 = vadd.f32 %v1929_v40, %v1180_v2  ;;  %v1313_v8 = vadd.f32 %v1312_v63, %v1250_v3 }
 0x129   : > { %1845 = vst [vmem:[%s2191_s16 + $0xd0] sm:$0xff] %v1793_v4  }
 0x12a   : > { %v1314_v11 = vadd.f32 %v1313_v8, %v1251_v6  ;;  %v1933_v12 = vpop.f32.mrb[24].mxu0  ;;  %v1182_v13 = vadd.f32 %v1930_v54, %v1181_v7  ;;  %v2285_v15 = vpop.f32.mrb[24].mxu1 }
 0x12b   : > { %v681_v17 = vpop.f32.mrb[25].mxu0  ;;  %v2287_v18 = vpop.f32.mrb[25].mxu1  ;;  %v1255_v39 = vmul.f32 %v1933_v12, %v1933_v12 }
 0x12c   : > { %v1183_v19 = vadd.f32 %v1182_v13, %v681_v17  ;;  %v1253_v20 = vmul.f32 %v681_v17, %v681_v17  ;;  %v1315_v23 = vadd.f32 %v1314_v11, %v1252_v10  ;;  %v1934_v25 = vpop.f32.mrb[26].mxu0  ;;  %v2289_v26 = vpop.f32.mrb[26].mxu1 }
 0x12d   : > { %v1728_v28 = vpack.c.bf16 %v1934_v25, %v1933_v12  ;;  %v684_v30 = vpop.f32.mrb[27].mxu0  ;;  %v1808_v31 = vpack.c.bf16 %v2289_v26, %v2285_v15  ;;  %v2293_v32 = vpop.f32.mrb[27].mxu1  ;;  %v1256_v46 = vmul.f32 %v1934_v25, %v1934_v25 }
 0x12e   : > { %v1316_v34 = vadd.f32 %v1315_v23, %v1253_v20  ;;  %v1723_v35 = vpack.c.bf16 %v684_v30, %v681_v17  ;;  %v1184_v36 = vadd.f32 %v1183_v19, %v684_v30  ;;  %v1254_v37 = vmul.f32 %v684_v30, %v684_v30 }
 0x12f   : > { %1832 = vst [vmem:[%s2191_s16 + $0x68] sm:$0xff] %v1728_v28   ;;  %1848 = vst [vmem:[%s2191_s16 + $0xe8] sm:$0xff] %v1808_v31   ;;  %v1803_v38 = vpack.c.bf16 %v2293_v32, %v2287_v18  ;;  %v1261_v31 = vmul.f32 %v2184_v43, %v2184_v43 }
 0x130   : > { %1831 = vst [vmem:[%s2191_s16 + $0x60] sm:$0xff] %v1723_v35   ;;  %v1185_v40 = vadd.f32 %v1933_v12, %v1184_v36  ;;  %v1317_v42 = vadd.f32 %v1316_v34, %v1254_v37 }
 0x131   : > { %1847 = vst [vmem:[%s2191_s16 + $0xe0] sm:$0xff] %v1803_v38   ;;  %v1262_v38 = vmul.f32 %v2197_v50, %v2197_v50 }
 0x132   : > { %v1318_v48 = vadd.f32 %v1317_v42, %v1255_v39  ;;  %v1937_v51 = vpop.f32.mrb[28].mxu0  ;;  %v1186_v53 = vadd.f32 %v1934_v25, %v1185_v40  ;;  %v2301_v54 = vpop.f32.mrb[28].mxu1  ;;  %v1263_v39 = vmul.f32 %v2182_v41, %v2182_v41 }
 0x133   : > { %v697_v56 = vpop.f32.mrb[29].mxu0  ;;  %v2303_v58 = vpop.f32.mrb[29].mxu1  ;;  %v1259_v19 = vmul.f32 %v1937_v51, %v1937_v51 }
 0x134   : > { %v1187_v59 = vadd.f32 %v1186_v53, %v697_v56  ;;  %v1257_v63 = vmul.f32 %v697_v56, %v697_v56  ;;  %v1319_v1 = vadd.f32 %v1318_v48, %v1256_v46  ;;  %v1938_v2 = vpop.f32.mrb[30].mxu0  ;;  %v2305_v3 = vpop.f32.mrb[30].mxu1  ;;  %v1264_v46 = vmul.f32 %v2193_v45, %v2193_v45 }
 0x135   : > { %v1738_v4 = vpack.c.bf16 %v1938_v2, %v1937_v51  ;;  %v700_v6 = vpop.f32.mrb[31].mxu0  ;;  %v1818_v7 = vpack.c.bf16 %v2305_v3, %v2301_v54  ;;  %v2309_v8 = vpop.f32.mrb[31].mxu1  ;;  %v1260_v25 = vmul.f32 %v1938_v2, %v1938_v2 }
 0x136   : > { %v1320_v10 = vadd.f32 %v1319_v1, %v1257_v63  ;;  %v1733_v11 = vpack.c.bf16 %v700_v6, %v697_v56  ;;  %v1188_v12 = vadd.f32 %v1187_v59, %v700_v6  ;;  %v1258_v13 = vmul.f32 %v700_v6, %v700_v6 }
 0x137   : > { %1834 = vst [vmem:[%s2191_s16 + $0x78] sm:$0xff] %v1738_v4   ;;  %1850 = vst [vmem:[%s2191_s16 + $0xf8] sm:$0xff] %v1818_v7   ;;  %v1813_v17 = vpack.c.bf16 %v2309_v8, %v2303_v58  ;;  %v1266_v63 = vmul.f32 %v2213_v9, %v2213_v9 }
 0x138   : > { %1833 = vst [vmem:[%s2191_s16 + $0x70] sm:$0xff] %v1733_v11   ;;  %v1189_v20 = vadd.f32 %v1937_v51, %v1188_v12  ;;  %v1321_v23 = vadd.f32 %v1320_v10, %v1258_v13  ;;  %v1270_v12 = vmul.f32 %v2229_v33, %v2229_v33 }
 0x139   : > { %1849 = vst [vmem:[%s2191_s16 + $0xf0] sm:$0xff] %v1813_v17  }
 0x13a   : > { %v1322_v28 = vadd.f32 %v1321_v23, %v1259_v19  ;;  %v1190_v30 = vadd.f32 %v1938_v2, %v1189_v20 }
 0x13c   : > { %v1191_v34 = vadd.f32 %v1190_v30, %v2184_v43  ;;  %v1323_v35 = vadd.f32 %v1322_v28, %v1260_v25  ;;  %v1265_v43 = vmul.f32 %v2207_v0, %v2207_v0  ;;  %v1274_v30 = vmul.f32 %v2245_v61, %v2245_v61 }
 0x13e   : > { %v1324_v36 = vadd.f32 %v1323_v35, %v1261_v31  ;;  %v1192_v37 = vadd.f32 %v1191_v34, %v2197_v50 }
 0x140   : > { %v1193_v40 = vadd.f32 %v2182_v41, %v1192_v37  ;;  %v1325_v42 = vadd.f32 %v1324_v36, %v1262_v38  ;;  %v1267_v41 = vmul.f32 %v2205_v62, %v2205_v62 }
 0x142   : > { %v1326_v48 = vadd.f32 %v1325_v42, %v1263_v39  ;;  %v1194_v51 = vadd.f32 %v2193_v45, %v1193_v40  ;;  %v1268_v45 = vmul.f32 %v2209_v5, %v2209_v5  ;;  %v1278_v40 = vmul.f32 %v2261_v27, %v2261_v27 }
 0x144   : > { %v1195_v53 = vadd.f32 %v1194_v51, %v2207_v0  ;;  %v1327_v56 = vadd.f32 %v1326_v48, %v1264_v46  ;;  %v1269_v0 = vmul.f32 %v2223_v24, %v2223_v24 }
 0x146   : > { %v1328_v59 = vadd.f32 %v1327_v56, %v1265_v43  ;;  %v1196_v50 = vadd.f32 %v1195_v53, %v2213_v9 }
 0x148   : > { %v1197_v1 = vadd.f32 %v2205_v62, %v1196_v50  ;;  %v1329_v2 = vadd.f32 %v1328_v59, %v1266_v63  ;;  %v1271_v62 = vmul.f32 %v2221_v22, %v2221_v22  ;;  %v1282_v59 = vmul.f32 %v2277_v60, %v2277_v60 }
 0x14a   : > { %v1330_v4 = vadd.f32 %v1329_v2, %v1267_v41  ;;  %v1198_v6 = vadd.f32 %v2209_v5, %v1197_v1  ;;  %v1272_v5 = vmul.f32 %v2225_v29, %v2225_v29 }
 0x14c   : > { %v1199_v7 = vadd.f32 %v1198_v6, %v2223_v24  ;;  %v1331_v10 = vadd.f32 %v1330_v4, %v1268_v45  ;;  %v1273_v24 = vmul.f32 %v2239_v52, %v2239_v52  ;;  %v1286_v6 = vmul.f32 %v2293_v32, %v2293_v32 }
 0x14e   : > { %v1332_v11 = vadd.f32 %v1331_v10, %v1269_v0  ;;  %v1200_v9 = vadd.f32 %v1199_v7, %v2229_v33 }
 0x150   : > { %v1201_v13 = vadd.f32 %v2221_v22, %v1200_v9  ;;  %v1333_v17 = vadd.f32 %v1332_v11, %v1270_v12  ;;  %v1275_v22 = vmul.f32 %v2237_v49, %v2237_v49  ;;  %v1289_v11 = vmul.f32 %v2303_v58, %v2303_v58 }
 0x152   : > { %v1334_v19 = vadd.f32 %v1333_v17, %v1271_v62  ;;  %v1202_v20 = vadd.f32 %v2225_v29, %v1201_v13  ;;  %v1276_v29 = vmul.f32 %v2241_v57, %v2241_v57  ;;  %v1291_v13 = vmul.f32 %v2301_v54, %v2301_v54 }
 0x154   : > { %v1203_v23 = vadd.f32 %v1202_v20, %v2239_v52  ;;  %v1335_v25 = vadd.f32 %v1334_v19, %v1272_v5  ;;  %v1277_v52 = vmul.f32 %v2255_v16, %v2255_v16 }
 0x156   : > { %v1336_v28 = vadd.f32 %v1335_v25, %v1273_v24  ;;  %v1204_v33 = vadd.f32 %v1203_v23, %v2245_v61 }
 0x158   : > { %v1205_v31 = vadd.f32 %v2237_v49, %v1204_v33  ;;  %v1337_v34 = vadd.f32 %v1336_v28, %v1274_v30  ;;  %v1279_v49 = vmul.f32 %v2253_v14, %v2253_v14 }
 0x15a   : > { %v1338_v35 = vadd.f32 %v1337_v34, %v1275_v22  ;;  %v1206_v36 = vadd.f32 %v2241_v57, %v1205_v31  ;;  %v1280_v57 = vmul.f32 %v2257_v21, %v2257_v21 }
 0x15c   : > { %v1207_v37 = vadd.f32 %v1206_v36, %v2255_v16  ;;  %v1339_v38 = vadd.f32 %v1338_v35, %v1276_v29  ;;  %v1281_v16 = vmul.f32 %v2271_v47, %v2271_v47 }
 0x15e   : > { %v1340_v39 = vadd.f32 %v1339_v38, %v1277_v52  ;;  %v1208_v61 = vadd.f32 %v1207_v37, %v2261_v27 }
 0x160   : > { %v1209_v42 = vadd.f32 %v2253_v14, %v1208_v61  ;;  %v1341_v46 = vadd.f32 %v1340_v39, %v1278_v40  ;;  %v1283_v14 = vmul.f32 %v2269_v44, %v2269_v44 }
 0x162   : > { %v1342_v48 = vadd.f32 %v1341_v46, %v1279_v49  ;;  %v1210_v51 = vadd.f32 %v2257_v21, %v1209_v42  ;;  %v1284_v21 = vmul.f32 %v2273_v55, %v2273_v55 }
 0x164   : > { %v1211_v43 = vadd.f32 %v1210_v51, %v2271_v47  ;;  %v1343_v53 = vadd.f32 %v1342_v48, %v1280_v57  ;;  %v1285_v47 = vmul.f32 %v2287_v18, %v2287_v18 }
 0x166   : > { %v1344_v56 = vadd.f32 %v1343_v53, %v1281_v16  ;;  %v1212_v27 = vadd.f32 %v1211_v43, %v2277_v60 }
 0x168   : > { %v1213_v50 = vadd.f32 %v2269_v44, %v1212_v27  ;;  %v1345_v63 = vadd.f32 %v1344_v56, %v1282_v59  ;;  %v1287_v44 = vmul.f32 %v2285_v15, %v2285_v15 }
 0x16a   : > { %v1346_v41 = vadd.f32 %v1345_v63, %v1283_v14  ;;  %v1214_v1 = vadd.f32 %v2273_v55, %v1213_v50  ;;  %v1288_v55 = vmul.f32 %v2289_v26, %v2289_v26 }
 0x16c   : > { %v1215_v2 = vadd.f32 %v1214_v1, %v2287_v18  ;;  %v1347_v45 = vadd.f32 %v1346_v41, %v1284_v21 }
 0x16e   : > { %v1348_v4 = vadd.f32 %v1347_v45, %v1285_v47  ;;  %v1216_v60 = vadd.f32 %v1215_v2, %v2293_v32 }
 0x170   : > { %v1217_v0 = vadd.f32 %v2285_v15, %v1216_v60  ;;  %v1349_v7 = vadd.f32 %v1348_v4, %v1286_v6  ;;  %v1290_v15 = vmul.f32 %v2309_v8, %v2309_v8 }
 0x172   : > { %v1350_v10 = vadd.f32 %v1349_v7, %v1287_v44  ;;  %v1218_v18 = vadd.f32 %v2289_v26, %v1217_v0  ;;  %v1292_v26 = vmul.f32 %v2305_v3, %v2305_v3 }
 0x174   : > { %v1219_v9 = vadd.f32 %v1218_v18, %v2303_v58  ;;  %v1351_v12 = vadd.f32 %v1350_v10, %v1288_v55 }
 0x176   : > { %v1352_v32 = vadd.f32 %v1351_v12, %v1289_v11  ;;  %v1220_v62 = vadd.f32 %v1219_v9, %v2309_v8 }
 0x178   : > { %v1221_v17 = vadd.f32 %v2301_v54, %v1220_v62  ;;  %v1353_v5 = vadd.f32 %v1352_v32, %v1290_v15 }
 0x17a   : > { %v1222_v19 = vadd.f32 %v2305_v3, %v1221_v17  ;;  %v1354_v58 = vadd.f32 %v1353_v5, %v1291_v13 }
 0x17c   : > { %v1223_v20 = vrot.slane %v1222_v19, 4  ;;  %v1355_v24 = vadd.f32 %v1354_v58, %v1292_v26 }
 0x17e   : > { %v1224_v23 = vadd.f32 %v1223_v20, %v1222_v19  ;;  %v1356_v25 = vrot.slane %v1355_v24, 4 }
 0x180   : > { %v1225_v28 = vrot.slane %v1224_v23, 2  ;;  %v1357_v33 = vadd.f32 %v1356_v25, %v1355_v24 }
 0x182   : > { %v1226_v8 = vadd.f32 %v1225_v28, %v1224_v23  ;;  %v1358_v30 = vrot.slane %v1357_v33, 2 }
 0x184   : > { %v1227_v22 = vrot.slane %v1226_v8, 1  ;;  %v1359_v31 = vadd.f32 %v1358_v30, %v1357_v33 }
 0x186   : > { %v1360_v54 = vrot.slane %v1359_v31, 1  ;;  %v1228_v3 = vadd.f32 %v1227_v22, %v1226_v8 }
 0x188   : > { %v1361_v34 = vadd.f32 %v1360_v54, %v1359_v31 }
 0x18a   : > { %v1363_v29 = vsel %vm1362_vm0, %v1228_v3, %v1361_v34 }
 0x18b   : > { %1364 = vst [vmem:[%s229_s20] sm:$0x3] %v1363_v29 }
 0x18c PF: > { %s14_s14 = sadd.s32 1, %s2073_s14   ;;  %s2431_s12 = smov %s2069_s13 }
 0x18d   : > { %p11_p6 = scmp.ge.s32.totalorder %s14_s14, 4   ;;  %s2432_s13 = smov %s2434_s15 }
 0x18f   :  { %13 = sbr.rel (!%p11_p6) target bundleno = 2 (0x2), region = 73 }

// kernel: bottleneck_forward.9
= control target key start
LH: loop header
LB: loop body
LE: loop exit
PB: predicated region body
PF: predicated region fallthrough
CT: control target
= control target key end

     0   :  { %s2420_s18 = smov 0   ;;  %s2422_s19 = smov 0   ;;  %s2924_s0 = inlined_call_operand.vmem [shape: bf16[1024,128], index: 0, kind: input, shape index: {}]   ;;  %s2925_s1 = inlined_call_operand.vmem [shape: bf16[128,128], index: 1, kind: input, shape index: {}]   ;;  %s2926_s2 = inlined_call_operand.vmem [shape: f32[1,128], index: 2, kind: input, shape index: {}]   ;;  %s2927_s3 = inlined_call_operand.vmem [shape: f32[1,128], index: 3, kind: input, shape index: {}]   ;;  %s2928_s4 = inlined_call_operand.vmem [shape: bf16[1024,128], index: 4, kind: output, shape index: {0}]   ;;  %s2929_s5 = inlined_call_operand.vmem [shape: f32[2,2,128], index: 5, kind: output, shape index: {1}]  }
   0x1   :  { %s2424_s20 = smov 0  }
   0x2 LB: > { %s28_s21 = sadd.s32 1, %s2384_s19  ;;  %p1702_p0 = scmp.ge.s32.totalorder %s2388_s20, 1  ;;  %s2388_s20 = sphi %s2424_s20, %s16_s20   ;;  %s2384_s19 = sphi %s2422_s19, %s2931_s19   ;;  %s2380_s18 = sphi %s2420_s18, %s2930_s18  }
   0x3   : > { %p30_p1 = scmp.ge.s32.totalorder %s28_s21, 2  ;;  %p235_p2 = scmp.lt.s32.totalorder %s2388_s20, 3 }
   0x5   : > { %s2933_s21 = smov (%p30_p1, %s28_s21), 0  ;;  %p236_p3 = pnand %p1702_p0, %p235_p2 }
   0x6   : > { %v2358_v0 = vld [vmem:[%s2925_s1] sm:$0xff] (!%p236_p3)   ;;  %s1703_s24 = sshll.u32 (!%p236_p3), %s2380_s18, 6  ;;  %v2359_v1 = vld [vmem:[%s2925_s1 + $0x8] sm:$0xff] (!%p236_p3)   ;;  %v2360_v2 = vld [vmem:[%s2925_s1 + $0x10] sm:$0xff] (!%p236_p3)   ;;  %p308_p5 = scmp.lt.s32.totalorder (!%p236_p3), %s2380_s18, 1  ;;  %vm1554_vm0 = vcmask (!%p236_p3), 1040384  }
   0x7   : > { %239 = sbr.rel (%p236_p3) target bundleno = 396 (0x18c), region = 36  ;;  %p282_p4 = scmp.lt.s32.totalorder (!%p236_p3), %s1703_s24, 127  ;;  %2238 = vmatprep.subr.bf16.mxu0 (!%p236_p3), %v2358_v0  ;;  %2318 = vmatprep.subr.bf16.mxu1 (!%p236_p3), %v2358_v0  ;;  %v2361_v3 = vld [vmem:[%s2925_s1 + $0x18] sm:$0xff] (!%p236_p3)   ;;  %v2467_v5 = vld [vmem:[%s2926_s2] ss:$0 sm:$0xff] (!%p236_p3)  ;;  %v2363_v22 = vld [vmem:[%s2925_s1 + $0x28] sm:$0xff] (!%p236_p3)  }
   0x8   : > { %2239 = vmatpush3.bf16.msra.mxu0 (!%p236_p3), %v2358_v0  ;;  %2326 = vmatpush3.bf16.msra.mxu1 (!%p236_p3), %v2358_v0  ;;  %v2474_v10 = vld [vmem:[%s2927_s3] ss:$0 sm:$0xff] (!%p236_p3)  ;;  %v2364_v31 = vld [vmem:[%s2925_s1 + $0x30] sm:$0xff] (!%p236_p3)   ;;  %v2365_v43 = vld [vmem:[%s2925_s1 + $0x38] sm:$0xff] (!%p236_p3)  }
   0x9   : > { %2240 = vmatprep.subr.bf16.mxu0 (!%p236_p3), %v2359_v1  ;;  %2319 = vmatprep.subr.bf16.mxu1 (!%p236_p3), %v2359_v1  ;;  %v2362_v13 = vld [vmem:[%s2925_s1 + $0x20] sm:$0xff] (!%p236_p3)  }
   0xc   : > { %2241 = vmatpush3.bf16.msra.mxu0 (!%p236_p3), %v2359_v1  ;;  %2327 = vmatpush3.bf16.msra.mxu1 (!%p236_p3), %v2359_v1 }
   0xd   : > { %2242 = vmatprep.subr.bf16.mxu0 (!%p236_p3), %v2360_v2  ;;  %2320 = vmatprep.subr.bf16.mxu1 (!%p236_p3), %v2360_v2 }
   0xe   : > { %s2935_s24 = smov (!%p282_p4, %s1703_s24), 127  ;;  %s2937_s18 = smov (!%p308_p5, %s2380_s18), 1 }
   0xf   : > { %s1704_s29 = sshll.u32 %s2935_s24, 2  ;;  %s1707_s24 = sshll.u32 %s2937_s18, 1 }
  0x10   : > { %s2458_s7 = scalar_lea.vmem %s2924_s0, %s1704_s29  ;;  %2243 = vmatpush3.bf16.msra.mxu0 %v2360_v2  ;;  %2328 = vmatpush3.bf16.msra.mxu1 %v2360_v2  ;;  %s2684_s30 = scalar_lea.vmem %s2928_s4, %s1704_s29 }
  0x11   : > { %v1849_v4 = vld [vmem:[%s2458_s7] sm:$0xff]   ;;  %v2136_v8 = vld [vmem:[%s2458_s7 + $0x8] sm:$0xff]   ;;  %v2137_v9 = vld [vmem:[%s2458_s7 + $0x10] sm:$0xff]   ;;  %2244 = vmatprep.subr.bf16.mxu0 %v2361_v3  ;;  %2321 = vmatprep.subr.bf16.mxu1 %v2361_v3 }
  0x12   : > { %v1850_v6 = vunpack.c.l.bf16 %v1849_v4  ;;  %v1851_v7 = vunpack.c.h.bf16 %v1849_v4  ;;  %v1854_v14 = vunpack.c.l.bf16 %v2136_v8  ;;  %v1855_v15 = vunpack.c.h.bf16 %v2136_v8  ;;  %v2138_v26 = vld [vmem:[%s2458_s7 + $0x18] sm:$0xff]   ;;  %v2139_v29 = vld [vmem:[%s2458_s7 + $0x20] sm:$0xff]   ;;  %v2140_v38 = vld [vmem:[%s2458_s7 + $0x28] sm:$0xff]  }
  0x13   : > { %v1858_v16 = vunpack.c.l.bf16 %v2137_v9  ;;  %v1859_v19 = vunpack.c.h.bf16 %v2137_v9  ;;  %v1862_v30 = vunpack.c.l.bf16 %v2138_v26  ;;  %v1863_v35 = vunpack.c.h.bf16 %v2138_v26  ;;  %v2141_v41 = vld [vmem:[%s2458_s7 + $0x30] sm:$0xff]   ;;  %v2142_v42 = vld [vmem:[%s2458_s7 + $0x38] sm:$0xff]   ;;  %v2143_v48 = vld [vmem:[%s2458_s7 + $0x40] sm:$0xff]  }
  0x14   : > { %v448_v11 = vmul.f32 %v1850_v6, %v2467_v5  ;;  %v449_v12 = vmul.f32 %v1851_v7, %v2467_v5  ;;  %2245 = vmatpush3.bf16.msra.mxu0 %v2361_v3  ;;  %2329 = vmatpush3.bf16.msra.mxu1 %v2361_v3  ;;  %v450_v23 = vmul.f32 %v1854_v14, %v2467_v5  ;;  %v1866_v37 = vunpack.c.l.bf16 %v2139_v29  ;;  %v2144_v63 = vld [vmem:[%s2458_s7 + $0x48] sm:$0xff]   ;;  %v2145_v4 = vld [vmem:[%s2458_s7 + $0x50] sm:$0xff]  }
  0x15   : > { %2246 = vmatprep.subr.bf16.mxu0 %v2362_v13  ;;  %v451_v24 = vmul.f32 %v1855_v15, %v2467_v5  ;;  %v452_v25 = vmul.f32 %v1858_v16, %v2467_v5  ;;  %2322 = vmatprep.subr.bf16.mxu1 %v2362_v13  ;;  %v453_v28 = vmul.f32 %v1859_v19, %v2467_v5  ;;  %v1867_v40 = vunpack.c.h.bf16 %v2139_v29 }
  0x16   : > { %v519_v17 = vadd.f32 %v2474_v10, %v448_v11  ;;  %v520_v18 = vadd.f32 %v2474_v10, %v449_v12  ;;  %v521_v32 = vadd.f32 %v2474_v10, %v450_v23  ;;  %v454_v39 = vmul.f32 %v1862_v30, %v2467_v5  ;;  %v2146_v23 = vld [vmem:[%s2458_s7 + $0x58] sm:$0xff]  }
  0x17   : > { %v522_v33 = vadd.f32 %v2474_v10, %v451_v24  ;;  %v523_v34 = vadd.f32 %v2474_v10, %v452_v25  ;;  %v524_v36 = vadd.f32 %v2474_v10, %v453_v28  ;;  %v455_v47 = vmul.f32 %v1863_v35, %v2467_v5 }
  0x18   : > { %v583_v20 = vmax.f32 %v519_v17, 0.0  ;;  %v584_v21 = vmax.f32 %v520_v18, 0.0  ;;  %2247 = vmatpush3.bf16.msra.mxu0 %v2362_v13  ;;  %2330 = vmatpush3.bf16.msra.mxu1 %v2362_v13  ;;  %v585_v44 = vmax.f32 %v521_v32, 0.0  ;;  %v456_v50 = vmul.f32 %v1866_v37, %v2467_v5 }
  0x19   : > { %2248 = vmatprep.subr.bf16.mxu0 %v2363_v22  ;;  %2323 = vmatprep.subr.bf16.mxu1 %v2363_v22  ;;  %v586_v45 = vmax.f32 %v522_v33, 0.0  ;;  %v587_v46 = vmax.f32 %v523_v34, 0.0  ;;  %v588_v49 = vmax.f32 %v524_v36, 0.0  ;;  %v1870_v51 = vunpack.c.l.bf16 %v2140_v38 }
  0x1a   : > { %v647_v27 = vpack.c.bf16 %v584_v21, %v583_v20  ;;  %v1871_v52 = vunpack.c.h.bf16 %v2140_v38  ;;  %v1874_v53 = vunpack.c.l.bf16 %v2141_v41  ;;  %v1875_v54 = vunpack.c.h.bf16 %v2141_v41 }
  0x1b   : > { %v1878_v55 = vunpack.c.l.bf16 %v2142_v42  ;;  %v1879_v56 = vunpack.c.h.bf16 %v2142_v42  ;;  %v457_v57 = vmul.f32 %v1867_v40, %v2467_v5  ;;  %v1882_v58 = vunpack.c.l.bf16 %v2143_v48 }
  0x1c   : > { %2254 = vmatprep.mubr.bf16.mxu0 %v647_v27  ;;  %2249 = vmatpush3.bf16.msra.mxu0 %v2363_v22  ;;  %v1883_v59 = vunpack.c.h.bf16 %v2143_v48  ;;  %v648_v60 = vpack.c.bf16 %v586_v45, %v585_v44  ;;  %v525_v61 = vadd.f32 %v2474_v10, %v454_v39  ;;  %v526_v62 = vadd.f32 %v2474_v10, %v455_v47  ;;  %v2151_v44 = vld [vmem:[%s2458_s7 + $0x80] sm:$0xff]  }
  0x1d   : > { %2250 = vmatprep.subr.bf16.mxu0 %v2364_v31  ;;  %2331 = vmatpush3.bf16.msra.mxu1 %v2363_v22  ;;  %v649_v0 = vpack.c.bf16 %v588_v49, %v587_v46  ;;  %v527_v1 = vadd.f32 %v2474_v10, %v456_v50  ;;  %v458_v2 = vmul.f32 %v1870_v51, %v2467_v5  ;;  %v1886_v14 = vunpack.c.l.bf16 %v2144_v63 }
  0x1e   : > { %2324 = vmatprep.subr.bf16.mxu1 %v2364_v31  ;;  %v459_v3 = vmul.f32 %v1871_v52, %v2467_v5  ;;  %v460_v6 = vmul.f32 %v1874_v53, %v2467_v5  ;;  %v461_v7 = vmul.f32 %v1875_v54, %v2467_v5  ;;  %v462_v8 = vmul.f32 %v1878_v55, %v2467_v5  ;;  %v2545_v52 = vld [vmem:[%s2458_s7 + $0x60] sm:$0xff]  }
  0x1f   : > { %v463_v9 = vmul.f32 %v1879_v56, %v2467_v5  ;;  %v528_v11 = vadd.f32 %v2474_v10, %v457_v57  ;;  %v464_v12 = vmul.f32 %v1882_v58, %v2467_v5  ;;  %v465_v13 = vmul.f32 %v1883_v59, %v2467_v5  ;;  %v2152_v59 = vld [vmem:[%s2458_s7 + $0x88] sm:$0xff]  }
  0x20   : > { %2251 = vmatpush3.bf16.msra.mxu0 %v2364_v31  ;;  %v589_v15 = vmax.f32 %v525_v61, 0.0  ;;  %v590_v16 = vmax.f32 %v526_v62, 0.0  ;;  %v1887_v17 = vunpack.c.h.bf16 %v2144_v63  ;;  %v1890_v18 = vunpack.c.l.bf16 %v2145_v4 }
  0x21   : > { %2252 = vmatprep.subr.bf16.mxu0 %v2365_v43  ;;  %2332 = vmatpush3.bf16.msra.mxu1 %v2364_v31  ;;  %v591_v19 = vmax.f32 %v527_v1, 0.0  ;;  %v529_v20 = vadd.f32 %v2474_v10, %v458_v2  ;;  %v530_v21 = vadd.f32 %v2474_v10, %v459_v3  ;;  %v1891_v22 = vunpack.c.h.bf16 %v2145_v4 }
  0x22   : > { %2325 = vmatprep.subr.bf16.mxu1 %v2365_v43  ;;  %v531_v24 = vadd.f32 %v2474_v10, %v460_v6  ;;  %v532_v25 = vadd.f32 %v2474_v10, %v461_v7  ;;  %v533_v26 = vadd.f32 %v2474_v10, %v462_v8  ;;  %v534_v27 = vadd.f32 %v2474_v10, %v463_v9 }
  0x23   : > { %v592_v28 = vmax.f32 %v528_v11, 0.0  ;;  %v535_v29 = vadd.f32 %v2474_v10, %v464_v12  ;;  %v536_v30 = vadd.f32 %v2474_v10, %v465_v13  ;;  %v466_v31 = vmul.f32 %v1886_v14, %v2467_v5  ;;  %v2154_v11 = vld [vmem:[%s2458_s7 + $0x98] sm:$0xff]  }
  0x24   : > { %2253 = vmatpush3.bf16.msra.mxu0 %v2365_v43  ;;  %v650_v32 = vpack.c.bf16 %v590_v16, %v589_v15  ;;  %v467_v33 = vmul.f32 %v1887_v17, %v2467_v5  ;;  %v468_v34 = vmul.f32 %v1890_v18, %v2467_v5  ;;  %v1894_v35 = vunpack.c.l.bf16 %v2146_v23 }
  0x25   : > { %2333 = vmatpush3.bf16.msra.mxu1 %v2365_v43  ;;  %v593_v36 = vmax.f32 %v529_v20, 0.0  ;;  %v594_v37 = vmax.f32 %v530_v21, 0.0  ;;  %v469_v38 = vmul.f32 %v1891_v22, %v2467_v5  ;;  %v1895_v39 = vunpack.c.h.bf16 %v2146_v23 }
  0x26   : > { %v595_v40 = vmax.f32 %v531_v24, 0.0  ;;  %v596_v41 = vmax.f32 %v532_v25, 0.0  ;;  %v597_v42 = vmax.f32 %v533_v26, 0.0  ;;  %v598_v43 = vmax.f32 %v534_v27, 0.0  ;;  %v2155_v24 = vld [vmem:[%s2458_s7 + $0xa0] sm:$0xff]  }
  0x27   : > { %2255 = vmatmul.mubr.bf16.vlgmr.msra.gmra.mrb[0].mxu0 %v648_v60  ;;  %v651_v45 = vpack.c.bf16 %v592_v28, %v591_v19  ;;  %v599_v46 = vmax.f32 %v535_v29, 0.0  ;;  %v600_v47 = vmax.f32 %v536_v30, 0.0  ;;  %v537_v48 = vadd.f32 %v2474_v10, %v466_v31 }
  0x28   : > { %2258 = vmatprep.mubr.bf16.mxu0 %v649_v0  ;;  %v538_v49 = vadd.f32 %v2474_v10, %v467_v33  ;;  %v2541_v50 = vadd.f32 %v2474_v10, %v468_v34  ;;  %v470_v51 = vmul.f32 %v1894_v35, %v2467_v5  ;;  %v2548_v53 = vadd.f32 %v2474_v10, %v469_v38  ;;  %v2153_v0 = vld [vmem:[%s2458_s7 + $0x90] sm:$0xff]   ;;  %v2156_v33 = vld [vmem:[%s2458_s7 + $0xa8] sm:$0xff]  }
  0x29   : > { %v471_v54 = vmul.f32 %v1895_v39, %v2467_v5  ;;  %v1914_v55 = vunpack.c.l.bf16 %v2151_v44  ;;  %v652_v56 = vpack.c.bf16 %v594_v37, %v593_v36  ;;  %v653_v57 = vpack.c.bf16 %v596_v41, %v595_v40 }
  0x2a   : > { %v2551_v58 = vpack.c.bf16 %v598_v43, %v597_v42  ;;  %v2554_v60 = vpack.c.bf16 %v600_v47, %v599_v46  ;;  %v601_v61 = vmax.f32 %v537_v48, 0.0  ;;  %v1898_v62 = vunpack.c.l.bf16 %v2545_v52  ;;  %v2157_v46 = vld [vmem:[%s2458_s7 + $0xb0] sm:$0xff]   ;;  %v2148_v47 = vld [vmem:[%s2458_s7 + $0x68] sm:$0xff]  }
  0x2b   : > { %v1915_v63 = vunpack.c.h.bf16 %v2151_v44  ;;  %v602_v1 = vmax.f32 %v538_v49, 0.0  ;;  %v603_v2 = vmax.f32 %v2541_v50, 0.0  ;;  %v2560_v3 = vadd.f32 %v2474_v10, %v470_v51 }
  0x2c   : > { %v480_v4 = vmul.f32 %v1914_v55, %v2467_v5  ;;  %v604_v6 = vmax.f32 %v2548_v53, 0.0  ;;  %v2565_v7 = vadd.f32 %v2474_v10, %v471_v54  ;;  %v1918_v9 = vunpack.c.l.bf16 %v2152_v59 }
  0x2d   : > { %v481_v8 = vmul.f32 %v1915_v63, %v2467_v5  ;;  %v1899_v12 = vunpack.c.h.bf16 %v2545_v52  ;;  %v1919_v14 = vunpack.c.h.bf16 %v2152_v59  ;;  %v1922_v15 = vunpack.c.l.bf16 %v2153_v0 }
  0x2e   : > { %v551_v13 = vadd.f32 %v2474_v10, %v480_v4  ;;  %v2572_v16 = vmul.f32 %v1898_v62, %v2467_v5  ;;  %v482_v18 = vmul.f32 %v1918_v9, %v2467_v5  ;;  %v1923_v19 = vunpack.c.h.bf16 %v2153_v0 }
  0x2f   : > { %2259 = vmatmul.mubr.bf16.gmra.mrb[4].mxu0 %v650_v32  ;;  %v552_v17 = vadd.f32 %v2474_v10, %v481_v8  ;;  %v483_v21 = vmul.f32 %v1919_v14, %v2467_v5  ;;  %v484_v22 = vmul.f32 %v1922_v15, %v2467_v5  ;;  %v1926_v23 = vunpack.c.l.bf16 %v2154_v11 }
  0x30   : > { %2262 = vmatprep.mubr.bf16.mxu0 %v651_v45  ;;  %v615_v20 = vmax.f32 %v551_v13, 0.0  ;;  %v2579_v25 = vpack.c.bf16 %v602_v1, %v601_v61  ;;  %v553_v27 = vadd.f32 %v2474_v10, %v482_v18  ;;  %v485_v28 = vmul.f32 %v1923_v19, %v2467_v5  ;;  %v2158_v1 = vld [vmem:[%s2458_s7 + $0xb8] sm:$0xff]   ;;  %v2159_v18 = vld [vmem:[%s2458_s7 + $0xc0] sm:$0xff]   ;;  %v2149_v19 = vld [vmem:[%s2458_s7 + $0x70] sm:$0xff]  }
  0x31   : > { %v616_v26 = vmax.f32 %v552_v17, 0.0  ;;  %v554_v29 = vadd.f32 %v2474_v10, %v483_v21  ;;  %v555_v30 = vadd.f32 %v2474_v10, %v484_v22  ;;  %v1927_v31 = vunpack.c.h.bf16 %v2154_v11 }
  0x32   : > { %v486_v32 = vmul.f32 %v1926_v23, %v2467_v5  ;;  %v617_v35 = vmax.f32 %v553_v27, 0.0  ;;  %v556_v36 = vadd.f32 %v2474_v10, %v485_v28  ;;  %v1930_v37 = vunpack.c.l.bf16 %v2155_v24 }
  0x33   : > { %v663_v34 = vpack.c.bf16 %v616_v26, %v615_v20  ;;  %v618_v38 = vmax.f32 %v554_v29, 0.0  ;;  %v619_v39 = vmax.f32 %v555_v30, 0.0  ;;  %v487_v40 = vmul.f32 %v1927_v31, %v2467_v5 }
  0x34   : > { %v557_v41 = vadd.f32 %v2474_v10, %v486_v32  ;;  %v620_v42 = vmax.f32 %v556_v36, 0.0  ;;  %v1931_v43 = vunpack.c.h.bf16 %v2155_v24  ;;  %v488_v44 = vmul.f32 %v1930_v37, %v2467_v5 }
  0x35   : > { %2286 = vmatprep.mubr.bf16.mxu1 %v663_v34  ;;  %v1934_v45 = vunpack.c.l.bf16 %v2156_v33  ;;  %v664_v48 = vpack.c.bf16 %v618_v38, %v617_v35  ;;  %v558_v49 = vadd.f32 %v2474_v10, %v487_v40  ;;  %v1935_v54 = vunpack.c.h.bf16 %v2156_v33  ;;  %v2150_v33 = vld [vmem:[%s2458_s7 + $0x78] sm:$0xff]   ;;  %v2161_v40 = vld [vmem:[%s2458_s7 + $0xd0] sm:$0xff]  }
  0x36   : > { %v621_v51 = vmax.f32 %v557_v41, 0.0  ;;  %v665_v55 = vpack.c.bf16 %v620_v42, %v619_v39  ;;  %v1938_v63 = vunpack.c.l.bf16 %v2157_v46  ;;  %v1939_v0 = vunpack.c.h.bf16 %v2157_v46 }
  0x37   : > { %2263 = vmatmul.mubr.bf16.gmra.mrb[8].mxu0 %v652_v56  ;;  %v489_v56 = vmul.f32 %v1931_v43, %v2467_v5  ;;  %v490_v59 = vmul.f32 %v1934_v45, %v2467_v5  ;;  %2287 = vmatmul.mubr.bf16.vlgmr.msra.gmra.mrb[0].mxu1 %v664_v48  ;;  %v622_v61 = vmax.f32 %v558_v49, 0.0  ;;  %v491_v62 = vmul.f32 %v1935_v54, %v2467_v5 }
  0x38   : > { %2266 = vmatprep.mubr.bf16.mxu0 %v653_v57  ;;  %v559_v57 = vadd.f32 %v2474_v10, %v488_v44  ;;  %v605_v4 = vmax.f32 %v2560_v3, 0.0  ;;  %v1902_v8 = vunpack.c.l.bf16 %v2148_v47  ;;  %2290 = vmatprep.mubr.bf16.mxu1 %v665_v55  ;;  %v606_v13 = vmax.f32 %v2565_v7, 0.0 }
  0x39   : > { %v560_v9 = vadd.f32 %v2474_v10, %v489_v56  ;;  %v1903_v14 = vunpack.c.h.bf16 %v2148_v47  ;;  %v492_v15 = vmul.f32 %v1938_v63, %v2467_v5  ;;  %v493_v17 = vmul.f32 %v1939_v0, %v2467_v5 }
  0x3a   : > { %v623_v11 = vmax.f32 %v559_v57, 0.0  ;;  %v473_v3 = vmul.f32 %v1899_v12, %v2467_v5  ;;  %v1942_v21 = vunpack.c.l.bf16 %v2158_v1  ;;  %v1943_v22 = vunpack.c.h.bf16 %v2158_v1 }
  0x3b   : > { %v624_v20 = vmax.f32 %v560_v9, 0.0  ;;  %v561_v7 = vadd.f32 %v2474_v10, %v490_v59  ;;  %v562_v23 = vadd.f32 %v2474_v10, %v491_v62  ;;  %v563_v24 = vadd.f32 %v2474_v10, %v492_v15  ;;  %v2162_v15 = vld [vmem:[%s2458_s7 + $0xd8] sm:$0xff]  }
  0x3c   : > { %v564_v27 = vadd.f32 %v2474_v10, %v493_v17  ;;  %v1947_v28 = vunpack.c.h.bf16 %v2159_v18  ;;  %v657_v52 = vpack.c.bf16 %v604_v6, %v603_v2  ;;  %v543_v12 = vadd.f32 %v2474_v10, %v2572_v16  ;;  %v2160_v6 = vld [vmem:[%s2458_s7 + $0xc8] sm:$0xff]  }
  0x3d   : > { %v667_v26 = vpack.c.bf16 %v624_v20, %v623_v11  ;;  %v1906_v29 = vunpack.c.l.bf16 %v2149_v19  ;;  %v1907_v30 = vunpack.c.h.bf16 %v2149_v19  ;;  %v544_v31 = vadd.f32 %v2474_v10, %v473_v3 }
  0x3e   : > { %v474_v32 = vmul.f32 %v1902_v8, %v2467_v5  ;;  %v494_v34 = vmul.f32 %v1942_v21, %v2467_v5  ;;  %v495_v35 = vmul.f32 %v1943_v22, %v2467_v5  ;;  %v658_v36 = vpack.c.bf16 %v606_v13, %v605_v4 }
  0x3f   : > { %2267 = vmatmul.mubr.bf16.gmra.mrb[12].mxu0 %v2551_v58  ;;  %v666_v58 = vpack.c.bf16 %v622_v61, %v621_v51  ;;  %v475_v50 = vmul.f32 %v1903_v14, %v2467_v5  ;;  %v625_v53 = vmax.f32 %v561_v7, 0.0  ;;  %v626_v2 = vmax.f32 %v562_v23, 0.0 }
  0x40   : > { %2270 = vmatprep.mubr.bf16.mxu0 %v2554_v60  ;;  %v1946_v60 = vunpack.c.l.bf16 %v2159_v18  ;;  %v627_v16 = vmax.f32 %v563_v24, 0.0  ;;  %v628_v37 = vmax.f32 %v564_v27, 0.0  ;;  %v497_v39 = vmul.f32 %v1947_v28, %v2467_v5 }
  0x41   : > { %2291 = vmatmul.mubr.bf16.gmra.mrb[4].mxu1 %v666_v58  ;;  %v607_v41 = vmax.f32 %v543_v12, 0.0  ;;  %v476_v42 = vmul.f32 %v1906_v29, %v2467_v5  ;;  %v477_v43 = vmul.f32 %v1907_v30, %v2467_v5  ;;  %v1910_v44 = vunpack.c.l.bf16 %v2150_v33  ;;  %v2163_v58 = vld [vmem:[%s2458_s7 + $0xe0] sm:$0xff]  }
  0x42   : > { %2294 = vmatprep.mubr.bf16.mxu1 %v667_v26  ;;  %v496_v38 = vmul.f32 %v1946_v60, %v2467_v5  ;;  %v608_v45 = vmax.f32 %v544_v31, 0.0  ;;  %v565_v46 = vadd.f32 %v2474_v10, %v494_v34  ;;  %v566_v47 = vadd.f32 %v2474_v10, %v495_v35 }
  0x43   : > { %v1950_v48 = vunpack.c.l.bf16 %v2160_v6  ;;  %v668_v49 = vpack.c.bf16 %v626_v2, %v625_v53  ;;  %v1951_v51 = vunpack.c.h.bf16 %v2160_v6  ;;  %v1954_v54 = vunpack.c.l.bf16 %v2161_v40 }
  0x44   : > { %v1955_v55 = vunpack.c.h.bf16 %v2161_v40  ;;  %v545_v56 = vadd.f32 %v2474_v10, %v474_v32  ;;  %v567_v57 = vadd.f32 %v2474_v10, %v496_v38  ;;  %v568_v59 = vadd.f32 %v2474_v10, %v497_v39 }
  0x45   : > { %v546_v61 = vadd.f32 %v2474_v10, %v475_v50  ;;  %v547_v62 = vadd.f32 %v2474_v10, %v476_v42  ;;  %v548_v63 = vadd.f32 %v2474_v10, %v477_v43  ;;  %v1911_v0 = vunpack.c.h.bf16 %v2150_v33 }
  0x46   : > { %v659_v1 = vpack.c.bf16 %v608_v45, %v607_v41  ;;  %v629_v4 = vmax.f32 %v565_v46, 0.0  ;;  %v630_v8 = vmax.f32 %v566_v47, 0.0  ;;  %v498_v9 = vmul.f32 %v1950_v48, %v2467_v5  ;;  %v2165_v41 = vld [vmem:[%s2458_s7 + $0xf0] sm:$0xff]  }
  0x47   : > { %2271 = vmatmul.mubr.bf16.gmra.mrb[16].mxu0 %v2579_v25  ;;  %v669_v25 = vpack.c.bf16 %v628_v37, %v627_v16  ;;  %v499_v11 = vmul.f32 %v1951_v51, %v2467_v5  ;;  %v500_v13 = vmul.f32 %v1954_v54, %v2467_v5  ;;  %v501_v14 = vmul.f32 %v1955_v55, %v2467_v5  ;;  %v2164_v16 = vld [vmem:[%s2458_s7 + $0xe8] sm:$0xff]  }
  0x48   : > { %2274 = vmatprep.mubr.bf16.mxu0 %v657_v52  ;;  %v478_v17 = vmul.f32 %v1910_v44, %v2467_v5  ;;  %v631_v18 = vmax.f32 %v567_v57, 0.0  ;;  %v632_v3 = vmax.f32 %v568_v59, 0.0  ;;  %v609_v19 = vmax.f32 %v545_v56, 0.0 }
  0x49   : > { %2295 = vmatmul.mubr.bf16.gmra.mrb[8].mxu1 %v668_v49  ;;  %v610_v20 = vmax.f32 %v546_v61, 0.0  ;;  %v611_v21 = vmax.f32 %v547_v62, 0.0  ;;  %v479_v22 = vmul.f32 %v1911_v0, %v2467_v5  ;;  %v612_v7 = vmax.f32 %v548_v63, 0.0 }
  0x4a   : > { %2298 = vmatprep.mubr.bf16.mxu1 %v669_v25  ;;  %v670_v23 = vpack.c.bf16 %v630_v8, %v629_v4  ;;  %v569_v24 = vadd.f32 %v2474_v10, %v498_v9  ;;  %v1958_v26 = vunpack.c.l.bf16 %v2162_v15  ;;  %v570_v27 = vadd.f32 %v2474_v10, %v499_v11 }
  0x4b   : > { %v571_v60 = vadd.f32 %v2474_v10, %v500_v13  ;;  %v572_v28 = vadd.f32 %v2474_v10, %v501_v14  ;;  %v1959_v52 = vunpack.c.h.bf16 %v2162_v15  ;;  %v671_v12 = vpack.c.bf16 %v632_v3, %v631_v18 }
  0x4c   : > { %v1962_v29 = vunpack.c.l.bf16 %v2163_v58  ;;  %v1963_v30 = vunpack.c.h.bf16 %v2163_v58  ;;  %v660_v31 = vpack.c.bf16 %v610_v20, %v609_v19  ;;  %v549_v32 = vadd.f32 %v2474_v10, %v478_v17 }
  0x4d   : > { %v550_v33 = vadd.f32 %v2474_v10, %v479_v22  ;;  %v661_v34 = vpack.c.bf16 %v612_v7, %v611_v21  ;;  %v633_v35 = vmax.f32 %v569_v24, 0.0  ;;  %v634_v50 = vmax.f32 %v570_v27, 0.0 }
  0x4e   : > { %v635_v53 = vmax.f32 %v571_v60, 0.0  ;;  %v636_v2 = vmax.f32 %v572_v28, 0.0  ;;  %v503_v6 = vmul.f32 %v1959_v52, %v2467_v5  ;;  %v504_v37 = vmul.f32 %v1962_v29, %v2467_v5 }
  0x4f   : > { %2275 = vmatmul.mubr.bf16.gmra.mrb[20].mxu0 %v658_v36  ;;  %v502_v36 = vmul.f32 %v1958_v26, %v2467_v5  ;;  %v505_v38 = vmul.f32 %v1963_v30, %v2467_v5  ;;  %v613_v39 = vmax.f32 %v549_v32, 0.0  ;;  %v614_v40 = vmax.f32 %v550_v33, 0.0 }
  0x50   : > { %2278 = vmatprep.mubr.bf16.mxu0 %v659_v1  ;;  %v1966_v43 = vunpack.c.l.bf16 %v2164_v16  ;;  %v672_v44 = vpack.c.bf16 %v634_v50, %v633_v35  ;;  %v673_v45 = vpack.c.bf16 %v636_v2, %v635_v53  ;;  %v574_v46 = vadd.f32 %v2474_v10, %v503_v6  ;;  %v2166_v1 = vld [vmem:[%s2458_s7 + $0xf8] sm:$0xff]   ;;  %s311_s7 = scalar_lea.vmem %s2929_s5, %s1707_s24 }
  0x51   : > { %2299 = vmatmul.mubr.bf16.gmra.mrb[12].mxu1 %v670_v23  ;;  %v573_v42 = vadd.f32 %v2474_v10, %v502_v36  ;;  %v1967_v47 = vunpack.c.h.bf16 %v2164_v16  ;;  %v575_v48 = vadd.f32 %v2474_v10, %v504_v37  ;;  %v576_v49 = vadd.f32 %v2474_v10, %v505_v38 }
  0x52   : > { %2302 = vmatprep.mubr.bf16.mxu1 %v671_v12  ;;  %v1970_v51 = vunpack.c.l.bf16 %v2165_v41  ;;  %v1971_v54 = vunpack.c.h.bf16 %v2165_v41  ;;  %v662_v55 = vpack.c.bf16 %v614_v40, %v613_v39  ;;  %v506_v56 = vmul.f32 %v1966_v43, %v2467_v5 }
  0x53   : > { %v637_v25 = vmax.f32 %v573_v42, 0.0  ;;  %v638_v57 = vmax.f32 %v574_v46, 0.0  ;;  %v507_v59 = vmul.f32 %v1967_v47, %v2467_v5  ;;  %v639_v61 = vmax.f32 %v575_v48, 0.0 }
  0x54   : > { %v640_v62 = vmax.f32 %v576_v49, 0.0  ;;  %v508_v63 = vmul.f32 %v1970_v51, %v2467_v5  ;;  %v509_v0 = vmul.f32 %v1971_v54, %v2467_v5  ;;  %v577_v4 = vadd.f32 %v2474_v10, %v506_v56 }
  0x55   : > { %v674_v8 = vpack.c.bf16 %v638_v57, %v637_v25  ;;  %v578_v9 = vadd.f32 %v2474_v10, %v507_v59  ;;  %v1974_v11 = vunpack.c.l.bf16 %v2166_v1  ;;  %v1975_v13 = vunpack.c.h.bf16 %v2166_v1 }
  0x56   : > { %v675_v14 = vpack.c.bf16 %v640_v62, %v639_v61  ;;  %v579_v15 = vadd.f32 %v2474_v10, %v508_v63  ;;  %v580_v17 = vadd.f32 %v2474_v10, %v509_v0  ;;  %v641_v18 = vmax.f32 %v577_v4, 0.0 }
  0x57   : > { %2279 = vmatmul.mubr.bf16.gmra.mrb[24].mxu0 %v660_v31  ;;  %v642_v3 = vmax.f32 %v578_v9, 0.0  ;;  %v510_v19 = vmul.f32 %v1974_v11, %v2467_v5  ;;  %v511_v20 = vmul.f32 %v1975_v13, %v2467_v5 }
  0x58   : > { %2282 = vmatprep.mubr.bf16.mxu0 %v661_v34  ;;  %v643_v21 = vmax.f32 %v579_v15, 0.0  ;;  %v644_v22 = vmax.f32 %v580_v17, 0.0 }
  0x59   : > { %2303 = vmatmul.mubr.bf16.gmra.mrb[16].mxu1 %v672_v44  ;;  %v676_v58 = vpack.c.bf16 %v642_v3, %v641_v18  ;;  %v581_v7 = vadd.f32 %v2474_v10, %v510_v19  ;;  %v582_v23 = vadd.f32 %v2474_v10, %v511_v20 }
  0x5a   : > { %2306 = vmatprep.mubr.bf16.mxu1 %v673_v45  ;;  %v677_v24 = vpack.c.bf16 %v644_v22, %v643_v21 }
  0x5b   : > { %v645_v26 = vmax.f32 %v581_v7, 0.0  ;;  %v646_v27 = vmax.f32 %v582_v23, 0.0 }
  0x5d   : > { %v678_v60 = vpack.c.bf16 %v646_v27, %v645_v26 }
  0x5f   : > { %2283 = vmatmul.mubr.bf16.gmra.mrb[28].mxu0 %v662_v55 }
  0x61   : > { %2307 = vmatmul.mubr.bf16.gmra.mrb[20].mxu1 %v674_v8 }
  0x62   : > { %2310 = vmatprep.mubr.bf16.mxu1 %v675_v14 }
  0x69   : > { %2311 = vmatmul.mubr.bf16.gmra.mrb[24].mxu1 %v676_v58 }
  0x6a   : > { %2314 = vmatprep.mubr.bf16.mxu1 %v677_v24 }
  0x71   : > { %2315 = vmatmul.mubr.bf16.gmra.mrb[28].mxu1 %v678_v60 }
  0xfa   : > { %v2256_v28 = vpop.f32.mrb[0].mxu0 }
  0xfb   : > { %v777_v52 = vpop.f32.mrb[1].mxu0  ;;  %v1423_v33 = vmul.f32 %v2256_v28, %v2256_v28 }
  0xfc   : > { %v2257_v5 = vpop.f32.mrb[2].mxu0  ;;  %v1421_v29 = vmul.f32 %v777_v52, %v777_v52 }
  0xfd   : > { %v1984_v12 = vpack.c.bf16 %v2257_v5, %v2256_v28  ;;  %v780_v10 = vpop.f32.mrb[3].mxu0  ;;  %v1424_v36 = vmul.f32 %v2257_v5, %v2257_v5 }
  0xfe   : > { %v1979_v30 = vpack.c.bf16 %v780_v10, %v777_v52  ;;  %v1352_v31 = vadd.f32 %v780_v10, %v777_v52  ;;  %v1422_v32 = vmul.f32 %v780_v10, %v780_v10 }
  0xff   : > { %2167 = vst [vmem:[%s2684_s30 + $0x8] sm:$0xff] %v1984_v12  }
 0x100   : > { %1980 = vst [vmem:[%s2684_s30] sm:$0xff] %v1979_v30   ;;  %v1353_v34 = vadd.f32 %v2256_v28, %v1352_v31  ;;  %v1485_v35 = vadd.f32 %v1422_v32, %v1421_v29 }
 0x102   : > { %v1486_v50 = vadd.f32 %v1485_v35, %v1423_v33  ;;  %v2260_v53 = vpop.f32.mrb[4].mxu0  ;;  %v1354_v2 = vadd.f32 %v2257_v5, %v1353_v34 }
 0x103   : > { %v793_v6 = vpop.f32.mrb[5].mxu0  ;;  %v1427_v46 = vmul.f32 %v2260_v53, %v2260_v53 }
 0x104   : > { %v1355_v16 = vadd.f32 %v1354_v2, %v793_v6  ;;  %v1425_v37 = vmul.f32 %v793_v6, %v793_v6  ;;  %v1487_v38 = vadd.f32 %v1486_v50, %v1424_v36  ;;  %v2261_v39 = vpop.f32.mrb[6].mxu0 }
 0x105   : > { %v1994_v40 = vpack.c.bf16 %v2261_v39, %v2260_v53  ;;  %v796_v41 = vpop.f32.mrb[7].mxu0  ;;  %v1428_v49 = vmul.f32 %v2261_v39, %v2261_v39 }
 0x106   : > { %v1488_v42 = vadd.f32 %v1487_v38, %v1425_v37  ;;  %v1989_v43 = vpack.c.bf16 %v796_v41, %v793_v6  ;;  %v1356_v44 = vadd.f32 %v1355_v16, %v796_v41  ;;  %v1426_v45 = vmul.f32 %v796_v41, %v796_v41 }
 0x107   : > { %2169 = vst [vmem:[%s2684_s30 + $0x18] sm:$0xff] %v1994_v40  }
 0x108   : > { %2168 = vst [vmem:[%s2684_s30 + $0x10] sm:$0xff] %v1989_v43   ;;  %v1357_v47 = vadd.f32 %v2260_v53, %v1356_v44  ;;  %v1489_v48 = vadd.f32 %v1488_v42, %v1426_v45 }
 0x10a   : > { %v1490_v51 = vadd.f32 %v1489_v48, %v1427_v46  ;;  %v2264_v54 = vpop.f32.mrb[8].mxu0  ;;  %v1358_v55 = vadd.f32 %v2261_v39, %v1357_v47  ;;  %v2692_v14 = vpop.f32.mrb[0].mxu1 }
 0x10b   : > { %v809_v56 = vpop.f32.mrb[9].mxu0  ;;  %v1431_v9 = vmul.f32 %v2264_v54, %v2264_v54  ;;  %v2694_v15 = vpop.f32.mrb[1].mxu1 }
 0x10c   : > { %v1359_v25 = vadd.f32 %v1358_v55, %v809_v56  ;;  %v1429_v57 = vmul.f32 %v809_v56, %v809_v56  ;;  %v1491_v59 = vadd.f32 %v1490_v51, %v1428_v49  ;;  %v2265_v61 = vpop.f32.mrb[10].mxu0  ;;  %v2696_v20 = vpop.f32.mrb[2].mxu1 }
 0x10d   : > { %v2004_v62 = vpack.c.bf16 %v2265_v61, %v2264_v54  ;;  %v812_v63 = vpop.f32.mrb[11].mxu0  ;;  %v1432_v17 = vmul.f32 %v2265_v61, %v2265_v61  ;;  %v2064_v22 = vpack.c.bf16 %v2696_v20, %v2692_v14  ;;  %v2700_v58 = vpop.f32.mrb[3].mxu1 }
 0x10e   : > { %v1492_v0 = vadd.f32 %v1491_v59, %v1429_v57  ;;  %v1999_v1 = vpack.c.bf16 %v812_v63, %v809_v56  ;;  %v1360_v4 = vadd.f32 %v1359_v25, %v812_v63  ;;  %v1430_v8 = vmul.f32 %v812_v63, %v812_v63 }
 0x10f   : > { %2171 = vst [vmem:[%s2684_s30 + $0x28] sm:$0xff] %v2004_v62   ;;  %v2059_v27 = vpack.c.bf16 %v2700_v58, %v2694_v15  ;;  %2183 = vst [vmem:[%s2684_s30 + $0x88] sm:$0xff] %v2064_v22  }
 0x110   : > { %2170 = vst [vmem:[%s2684_s30 + $0x20] sm:$0xff] %v1999_v1   ;;  %v1361_v11 = vadd.f32 %v2264_v54, %v1360_v4  ;;  %v1493_v13 = vadd.f32 %v1492_v0, %v1430_v8 }
 0x111   : > { %2182 = vst [vmem:[%s2684_s30 + $0x80] sm:$0xff] %v2059_v27  }
 0x112   : > { %v1494_v18 = vadd.f32 %v1493_v13, %v1431_v9  ;;  %v2268_v3 = vpop.f32.mrb[12].mxu0  ;;  %v1362_v19 = vadd.f32 %v2265_v61, %v1361_v11 }
 0x113   : > { %v825_v21 = vpop.f32.mrb[13].mxu0  ;;  %v1435_v29 = vmul.f32 %v2268_v3, %v2268_v3 }
 0x114   : > { %v1363_v7 = vadd.f32 %v1362_v19, %v825_v21  ;;  %v1433_v23 = vmul.f32 %v825_v21, %v825_v21  ;;  %v1495_v24 = vadd.f32 %v1494_v18, %v1432_v17  ;;  %v2269_v26 = vpop.f32.mrb[14].mxu0  ;;  %v2708_v32 = vpop.f32.mrb[4].mxu1 }
 0x115   : > { %v2014_v60 = vpack.c.bf16 %v2269_v26, %v2268_v3  ;;  %v828_v28 = vpop.f32.mrb[15].mxu0  ;;  %v2710_v33 = vpop.f32.mrb[5].mxu1  ;;  %v1436_v34 = vmul.f32 %v2269_v26, %v2269_v26 }
 0x116   : > { %v1496_v52 = vadd.f32 %v1495_v24, %v1433_v23  ;;  %v2009_v5 = vpack.c.bf16 %v828_v28, %v825_v21  ;;  %v1364_v12 = vadd.f32 %v1363_v7, %v828_v28  ;;  %v1434_v10 = vmul.f32 %v828_v28, %v828_v28  ;;  %v2712_v53 = vpop.f32.mrb[6].mxu1 }
 0x117   : > { %2173 = vst [vmem:[%s2684_s30 + $0x38] sm:$0xff] %v2014_v60   ;;  %v2074_v6 = vpack.c.bf16 %v2712_v53, %v2708_v32  ;;  %v2716_v16 = vpop.f32.mrb[7].mxu1 }
 0x118   : > { %2172 = vst [vmem:[%s2684_s30 + $0x30] sm:$0xff] %v2009_v5   ;;  %v1365_v30 = vadd.f32 %v2268_v3, %v1364_v12  ;;  %v1497_v31 = vadd.f32 %v1496_v52, %v1434_v10  ;;  %v2069_v41 = vpack.c.bf16 %v2716_v16, %v2710_v33 }
 0x119   : > { %2185 = vst [vmem:[%s2684_s30 + $0x98] sm:$0xff] %v2074_v6  }
 0x11a   : > { %v1498_v35 = vadd.f32 %v1497_v31, %v1435_v29  ;;  %v2272_v36 = vpop.f32.mrb[16].mxu0  ;;  %v1366_v50 = vadd.f32 %v2269_v26, %v1365_v30  ;;  %2184 = vst [vmem:[%s2684_s30 + $0x90] sm:$0xff] %v2069_v41  }
 0x11b   : > { %v841_v2 = vpop.f32.mrb[17].mxu0  ;;  %v1439_v48 = vmul.f32 %v2272_v36, %v2272_v36 }
 0x11c   : > { %v1367_v37 = vadd.f32 %v1366_v50, %v841_v2  ;;  %v1437_v38 = vmul.f32 %v841_v2, %v841_v2  ;;  %v1499_v39 = vadd.f32 %v1498_v35, %v1436_v34  ;;  %v2273_v40 = vpop.f32.mrb[18].mxu0  ;;  %v2724_v54 = vpop.f32.mrb[8].mxu1 }
 0x11d   : > { %v2024_v42 = vpack.c.bf16 %v2273_v40, %v2272_v36  ;;  %v844_v43 = vpop.f32.mrb[19].mxu0  ;;  %v2726_v55 = vpop.f32.mrb[9].mxu1  ;;  %v1440_v56 = vmul.f32 %v2273_v40, %v2273_v40 }
 0x11e   : > { %v1500_v44 = vadd.f32 %v1499_v39, %v1437_v38  ;;  %v2019_v45 = vpack.c.bf16 %v844_v43, %v841_v2  ;;  %v1368_v46 = vadd.f32 %v1367_v37, %v844_v43  ;;  %v1438_v47 = vmul.f32 %v844_v43, %v844_v43  ;;  %v2728_v61 = vpop.f32.mrb[10].mxu1 }
 0x11f   : > { %2175 = vst [vmem:[%s2684_s30 + $0x48] sm:$0xff] %v2024_v42   ;;  %v2084_v63 = vpack.c.bf16 %v2728_v61, %v2724_v54  ;;  %v2732_v0 = vpop.f32.mrb[11].mxu1 }
 0x120   : > { %2174 = vst [vmem:[%s2684_s30 + $0x40] sm:$0xff] %v2019_v45   ;;  %v1369_v49 = vadd.f32 %v2272_v36, %v1368_v46  ;;  %v1501_v51 = vadd.f32 %v1500_v44, %v1438_v47  ;;  %v2079_v11 = vpack.c.bf16 %v2732_v0, %v2726_v55 }
 0x121   : > { %2187 = vst [vmem:[%s2684_s30 + $0xa8] sm:$0xff] %v2084_v63  }
 0x122   : > { %v1502_v25 = vadd.f32 %v1501_v51, %v1439_v48  ;;  %v2276_v57 = vpop.f32.mrb[20].mxu0  ;;  %v1370_v59 = vadd.f32 %v2273_v40, %v1369_v49  ;;  %2186 = vst [vmem:[%s2684_s30 + $0xa0] sm:$0xff] %v2079_v11  }
 0x123   : > { %v857_v62 = vpop.f32.mrb[21].mxu0  ;;  %v1443_v22 = vmul.f32 %v2276_v57, %v2276_v57 }
 0x124   : > { %v1371_v1 = vadd.f32 %v1370_v59, %v857_v62  ;;  %v1441_v4 = vmul.f32 %v857_v62, %v857_v62  ;;  %v1503_v8 = vadd.f32 %v1502_v25, %v1440_v56  ;;  %v2277_v9 = vpop.f32.mrb[22].mxu0  ;;  %v2740_v24 = vpop.f32.mrb[12].mxu1 }
 0x125   : > { %v2034_v13 = vpack.c.bf16 %v2277_v9, %v2276_v57  ;;  %v860_v17 = vpop.f32.mrb[23].mxu0  ;;  %v2742_v26 = vpop.f32.mrb[13].mxu1  ;;  %v1444_v27 = vmul.f32 %v2277_v9, %v2277_v9 }
 0x126   : > { %v1504_v18 = vadd.f32 %v1503_v8, %v1441_v4  ;;  %v2029_v3 = vpack.c.bf16 %v860_v17, %v857_v62  ;;  %v1372_v19 = vadd.f32 %v1371_v1, %v860_v17  ;;  %v1442_v21 = vmul.f32 %v860_v17, %v860_v17  ;;  %v2744_v5 = vpop.f32.mrb[14].mxu1 }
 0x127   : > { %2177 = vst [vmem:[%s2684_s30 + $0x58] sm:$0xff] %v2034_v13   ;;  %v2094_v10 = vpack.c.bf16 %v2744_v5, %v2740_v24  ;;  %v2748_v29 = vpop.f32.mrb[15].mxu1 }
 0x128   : > { %2176 = vst [vmem:[%s2684_s30 + $0x50] sm:$0xff] %v2029_v3   ;;  %v1373_v7 = vadd.f32 %v2276_v57, %v1372_v19  ;;  %v1505_v23 = vadd.f32 %v1504_v18, %v1442_v21  ;;  %v2089_v36 = vpack.c.bf16 %v2748_v29, %v2742_v26 }
 0x129   : > { %2189 = vst [vmem:[%s2684_s30 + $0xb8] sm:$0xff] %v2094_v10  }
 0x12a   : > { %v1506_v60 = vadd.f32 %v1505_v23, %v1443_v22  ;;  %v2280_v28 = vpop.f32.mrb[24].mxu0  ;;  %v1374_v52 = vadd.f32 %v2277_v9, %v1373_v7  ;;  %2188 = vst [vmem:[%s2684_s30 + $0xb0] sm:$0xff] %v2089_v36   ;;  %v1454_v36 = vmul.f32 %v2700_v58, %v2700_v58 }
 0x12b   : > { %v873_v12 = vpop.f32.mrb[25].mxu0  ;;  %v1447_v40 = vmul.f32 %v2280_v28, %v2280_v28 }
 0x12c   : > { %v1375_v30 = vadd.f32 %v1374_v52, %v873_v12  ;;  %v1445_v31 = vmul.f32 %v873_v12, %v873_v12  ;;  %v1507_v34 = vadd.f32 %v1506_v60, %v1444_v27  ;;  %v2281_v35 = vpop.f32.mrb[26].mxu0  ;;  %v2756_v43 = vpop.f32.mrb[16].mxu1  ;;  %v1453_v60 = vmul.f32 %v2694_v15, %v2694_v15 }
 0x12d   : > { %v2044_v50 = vpack.c.bf16 %v2281_v35, %v2280_v28  ;;  %v876_v2 = vpop.f32.mrb[27].mxu0  ;;  %v2758_v44 = vpop.f32.mrb[17].mxu1  ;;  %v1448_v45 = vmul.f32 %v2281_v35, %v2281_v35 }
 0x12e   : > { %v1508_v6 = vadd.f32 %v1507_v34, %v1445_v31  ;;  %v2039_v37 = vpack.c.bf16 %v876_v2, %v873_v12  ;;  %v1376_v38 = vadd.f32 %v1375_v30, %v876_v2  ;;  %v1446_v39 = vmul.f32 %v876_v2, %v876_v2  ;;  %v2760_v49 = vpop.f32.mrb[18].mxu1 }
 0x12f   : > { %2179 = vst [vmem:[%s2684_s30 + $0x68] sm:$0xff] %v2044_v50   ;;  %v2104_v56 = vpack.c.bf16 %v2760_v49, %v2756_v43  ;;  %v2764_v25 = vpop.f32.mrb[19].mxu1  ;;  %v1455_v50 = vmul.f32 %v2692_v14, %v2692_v14 }
 0x130   : > { %2178 = vst [vmem:[%s2684_s30 + $0x60] sm:$0xff] %v2039_v37   ;;  %v1377_v41 = vadd.f32 %v2280_v28, %v1376_v38  ;;  %v1509_v42 = vadd.f32 %v1508_v6, %v1446_v39  ;;  %v2099_v1 = vpack.c.bf16 %v2764_v25, %v2758_v44  ;;  %v1456_v38 = vmul.f32 %v2696_v20, %v2696_v20 }
 0x131   : > { %2191 = vst [vmem:[%s2684_s30 + $0xc8] sm:$0xff] %v2104_v56   ;;  %v1459_v56 = vmul.f32 %v2708_v32, %v2708_v32 }
 0x132   : > { %v1510_v46 = vadd.f32 %v1509_v42, %v1447_v40  ;;  %v2284_v47 = vpop.f32.mrb[28].mxu0  ;;  %v1378_v48 = vadd.f32 %v2281_v35, %v1377_v41  ;;  %2190 = vst [vmem:[%s2684_s30 + $0xc0] sm:$0xff] %v2099_v1  }
 0x133   : > { %v889_v51 = vpop.f32.mrb[29].mxu0  ;;  %v1451_v18 = vmul.f32 %v2284_v47, %v2284_v47 }
 0x134   : > { %v1379_v57 = vadd.f32 %v1378_v48, %v889_v51  ;;  %v1449_v59 = vmul.f32 %v889_v51, %v889_v51  ;;  %v1511_v62 = vadd.f32 %v1510_v46, %v1448_v45  ;;  %v2285_v63 = vpop.f32.mrb[30].mxu0  ;;  %v2772_v21 = vpop.f32.mrb[20].mxu1 }
 0x135   : > { %v2054_v4 = vpack.c.bf16 %v2285_v63, %v2284_v47  ;;  %v892_v8 = vpop.f32.mrb[31].mxu0  ;;  %v2774_v22 = vpop.f32.mrb[21].mxu1  ;;  %v1452_v7 = vmul.f32 %v2285_v63, %v2285_v63 }
 0x136   : > { %v1512_v9 = vadd.f32 %v1511_v62, %v1449_v59  ;;  %v2049_v11 = vpack.c.bf16 %v892_v8, %v889_v51  ;;  %v1380_v13 = vadd.f32 %v1379_v57, %v892_v8  ;;  %v1450_v17 = vmul.f32 %v892_v8, %v892_v8  ;;  %v2778_v28 = vpop.f32.mrb[22].mxu1 }
 0x137   : > { %2181 = vst [vmem:[%s2684_s30 + $0x78] sm:$0xff] %v2054_v4   ;;  %v2114_v52 = vpack.c.bf16 %v2778_v28, %v2772_v21  ;;  %v2782_v12 = vpop.f32.mrb[23].mxu1  ;;  %v1458_v51 = vmul.f32 %v2716_v16, %v2716_v16 }
 0x138   : > { %2180 = vst [vmem:[%s2684_s30 + $0x70] sm:$0xff] %v2049_v11   ;;  %v1381_v3 = vadd.f32 %v2284_v47, %v1380_v13  ;;  %v1513_v19 = vadd.f32 %v1512_v9, %v1450_v17  ;;  %v2109_v31 = vpack.c.bf16 %v2782_v12, %v2774_v22 }
 0x139   : > { %2193 = vst [vmem:[%s2684_s30 + $0xd8] sm:$0xff] %v2114_v52   ;;  %v1465_v52 = vmul.f32 %v2742_v26, %v2742_v26 }
 0x13a   : > { %v1514_v23 = vadd.f32 %v1513_v19, %v1451_v18  ;;  %v1382_v27 = vadd.f32 %v2285_v63, %v1381_v3  ;;  %2192 = vst [vmem:[%s2684_s30 + $0xd0] sm:$0xff] %v2109_v31   ;;  %v1460_v63 = vmul.f32 %v2712_v53, %v2712_v53  ;;  %v1462_v3 = vmul.f32 %v2732_v0, %v2732_v0 }
 0x13b   : > { %v1463_v19 = vmul.f32 %v2724_v54, %v2724_v54 }
 0x13c   : > { %v1383_v10 = vadd.f32 %v1382_v27, %v2694_v15  ;;  %v1515_v30 = vadd.f32 %v1514_v23, %v1452_v7  ;;  %v2795_v15 = vpop.f32.mrb[24].mxu1 }
 0x13d   : > { %v2797_v37 = vpop.f32.mrb[25].mxu1 }
 0x13e   : > { %v1516_v34 = vadd.f32 %v1515_v30, %v1453_v60  ;;  %v1384_v35 = vadd.f32 %v1383_v10, %v2700_v58  ;;  %v1457_v58 = vmul.f32 %v2710_v33, %v2710_v33  ;;  %v2804_v41 = vpop.f32.mrb[26].mxu1 }
 0x13f   : > { %v2808_v42 = vpop.f32.mrb[27].mxu1 }
 0x140   : > { %v1385_v2 = vadd.f32 %v2692_v14, %v1384_v35  ;;  %v1517_v6 = vadd.f32 %v1516_v34, %v1454_v36  ;;  %v2124_v14 = vpack.c.bf16 %v2804_v41, %v2795_v15  ;;  %v2119_v47 = vpack.c.bf16 %v2808_v42, %v2797_v37 }
 0x141   : > { %v1466_v34 = vmul.f32 %v2748_v29, %v2748_v29 }
 0x142   : > { %v1518_v39 = vadd.f32 %v1517_v6, %v1455_v50  ;;  %v1386_v40 = vadd.f32 %v2696_v20, %v1385_v2  ;;  %2195 = vst [vmem:[%s2684_s30 + $0xe8] sm:$0xff] %v2124_v14   ;;  %2194 = vst [vmem:[%s2684_s30 + $0xe0] sm:$0xff] %v2119_v47  }
 0x144   : > { %v1387_v45 = vadd.f32 %v1386_v40, %v2710_v33  ;;  %v1519_v46 = vadd.f32 %v1518_v39, %v1456_v38  ;;  %v2821_v33 = vpop.f32.mrb[28].mxu1  ;;  %v1470_v40 = vmul.f32 %v2764_v25, %v2764_v25 }
 0x145   : > { %v2823_v62 = vpop.f32.mrb[29].mxu1 }
 0x146   : > { %v1520_v48 = vadd.f32 %v1519_v46, %v1457_v58  ;;  %v1388_v20 = vadd.f32 %v1387_v45, %v2716_v16  ;;  %v1461_v16 = vmul.f32 %v2726_v55, %v2726_v55  ;;  %v2830_v8 = vpop.f32.mrb[30].mxu1 }
 0x147   : > { %v2834_v9 = vpop.f32.mrb[31].mxu1 }
 0x148   : > { %v1389_v57 = vadd.f32 %v2708_v32, %v1388_v20  ;;  %v1521_v59 = vadd.f32 %v1520_v48, %v1458_v51  ;;  %v2134_v32 = vpack.c.bf16 %v2830_v8, %v2821_v33  ;;  %v2129_v17 = vpack.c.bf16 %v2834_v9, %v2823_v62 }
 0x149   : > { %v1474_v51 = vmul.f32 %v2782_v12, %v2782_v12 }
 0x14a   : > { %v1522_v1 = vadd.f32 %v1521_v59, %v1459_v56  ;;  %v1390_v4 = vadd.f32 %v2712_v53, %v1389_v57  ;;  %2197 = vst [vmem:[%s2684_s30 + $0xf8] sm:$0xff] %v2134_v32   ;;  %2196 = vst [vmem:[%s2684_s30 + $0xf0] sm:$0xff] %v2129_v17   ;;  %v1478_v32 = vmul.f32 %v2808_v42, %v2808_v42 }
 0x14c   : > { %v1391_v11 = vadd.f32 %v1390_v4, %v2726_v55  ;;  %v1523_v13 = vadd.f32 %v1522_v1, %v1460_v63  ;;  %v1464_v55 = vmul.f32 %v2728_v61, %v2728_v61 }
 0x14e   : > { %v1524_v18 = vadd.f32 %v1523_v13, %v1461_v16  ;;  %v1392_v53 = vadd.f32 %v1391_v11, %v2732_v0 }
 0x150   : > { %v1393_v7 = vadd.f32 %v2724_v54, %v1392_v53  ;;  %v1525_v23 = vadd.f32 %v1524_v18, %v1462_v3  ;;  %v1467_v54 = vmul.f32 %v2740_v24, %v2740_v24  ;;  %v1481_v18 = vmul.f32 %v2823_v62, %v2823_v62 }
 0x152   : > { %v1526_v27 = vadd.f32 %v1525_v23, %v1463_v19  ;;  %v1394_v60 = vadd.f32 %v2728_v61, %v1393_v7  ;;  %v1468_v61 = vmul.f32 %v2744_v5, %v2744_v5  ;;  %v1483_v7 = vmul.f32 %v2821_v33, %v2821_v33 }
 0x154   : > { %v1395_v10 = vadd.f32 %v1394_v60, %v2742_v26  ;;  %v1527_v30 = vadd.f32 %v1526_v27, %v1464_v55  ;;  %v1469_v26 = vmul.f32 %v2758_v44, %v2758_v44 }
 0x156   : > { %v1528_v0 = vadd.f32 %v1527_v30, %v1465_v52  ;;  %v1396_v31 = vadd.f32 %v1395_v10, %v2748_v29 }
 0x158   : > { %v1397_v35 = vadd.f32 %v2740_v24, %v1396_v31  ;;  %v1529_v36 = vadd.f32 %v1528_v0, %v1466_v34  ;;  %v1471_v24 = vmul.f32 %v2756_v43, %v2756_v43 }
 0x15a   : > { %v1530_v50 = vadd.f32 %v1529_v36, %v1467_v54  ;;  %v1398_v2 = vadd.f32 %v2744_v5, %v1397_v35  ;;  %v1472_v5 = vmul.f32 %v2760_v49, %v2760_v49 }
 0x15c   : > { %v1399_v6 = vadd.f32 %v1398_v2, %v2758_v44  ;;  %v1531_v38 = vadd.f32 %v1530_v50, %v1468_v61  ;;  %v1473_v44 = vmul.f32 %v2774_v22, %v2774_v22 }
 0x15e   : > { %v1532_v39 = vadd.f32 %v1531_v38, %v1469_v26  ;;  %v1400_v29 = vadd.f32 %v1399_v6, %v2764_v25 }
 0x160   : > { %v1401_v58 = vadd.f32 %v2756_v43, %v1400_v29  ;;  %v1533_v14 = vadd.f32 %v1532_v39, %v1470_v40  ;;  %v1475_v43 = vmul.f32 %v2772_v21, %v2772_v21 }
 0x162   : > { %v1534_v45 = vadd.f32 %v1533_v14, %v1471_v24  ;;  %v1402_v46 = vadd.f32 %v2760_v49, %v1401_v58  ;;  %v1476_v49 = vmul.f32 %v2778_v28, %v2778_v28 }
 0x164   : > { %v1403_v47 = vadd.f32 %v1402_v46, %v2774_v22  ;;  %v1535_v48 = vadd.f32 %v1534_v45, %v1472_v5  ;;  %v1477_v22 = vmul.f32 %v2797_v37, %v2797_v37 }
 0x166   : > { %v1536_v20 = vadd.f32 %v1535_v48, %v1473_v44  ;;  %v1404_v25 = vadd.f32 %v1403_v47, %v2782_v12 }
 0x168   : > { %v1405_v56 = vadd.f32 %v2772_v21, %v1404_v25  ;;  %v1537_v57 = vadd.f32 %v1536_v20, %v1474_v51  ;;  %v1479_v21 = vmul.f32 %v2795_v15, %v2795_v15 }
 0x16a   : > { %v1538_v59 = vadd.f32 %v1537_v57, %v1475_v43  ;;  %v1406_v63 = vadd.f32 %v2778_v28, %v1405_v56  ;;  %v1480_v28 = vmul.f32 %v2804_v41, %v2804_v41 }
 0x16c   : > { %v1407_v1 = vadd.f32 %v1406_v63, %v2797_v37  ;;  %v1539_v4 = vadd.f32 %v1538_v59, %v1476_v49 }
 0x16e   : > { %v1540_v16 = vadd.f32 %v1539_v4, %v1477_v22  ;;  %v1408_v12 = vadd.f32 %v1407_v1, %v2808_v42 }
 0x170   : > { %v1409_v11 = vadd.f32 %v2795_v15, %v1408_v12  ;;  %v1541_v13 = vadd.f32 %v1540_v16, %v1478_v32  ;;  %v1482_v15 = vmul.f32 %v2834_v9, %v2834_v9 }
 0x172   : > { %v1542_v17 = vadd.f32 %v1541_v13, %v1479_v21  ;;  %v1410_v37 = vadd.f32 %v2804_v41, %v1409_v11  ;;  %v1484_v41 = vmul.f32 %v2830_v8, %v2830_v8 }
 0x174   : > { %v1411_v53 = vadd.f32 %v1410_v37, %v2823_v62  ;;  %v1543_v3 = vadd.f32 %v1542_v17, %v1480_v28 }
 0x176   : > { %v1544_v42 = vadd.f32 %v1543_v3, %v1481_v18  ;;  %v1412_v19 = vadd.f32 %v1411_v53, %v2834_v9 }
 0x178   : > { %v1413_v23 = vadd.f32 %v2821_v33, %v1412_v19  ;;  %v1545_v55 = vadd.f32 %v1544_v42, %v1482_v15 }
 0x17a   : > { %v1414_v27 = vadd.f32 %v2830_v8, %v1413_v23  ;;  %v1546_v62 = vadd.f32 %v1545_v55, %v1483_v7 }
 0x17c   : > { %v1415_v60 = vrot.slane %v1414_v27, 4  ;;  %v1547_v52 = vadd.f32 %v1546_v62, %v1484_v41 }
 0x17e   : > { %v1416_v10 = vadd.f32 %v1415_v60, %v1414_v27  ;;  %v1548_v30 = vrot.slane %v1547_v52, 4 }
 0x180   : > { %v1417_v0 = vrot.slane %v1416_v10, 2  ;;  %v1549_v31 = vadd.f32 %v1548_v30, %v1547_v52 }
 0x182   : > { %v1418_v9 = vadd.f32 %v1417_v0, %v1416_v10  ;;  %v1550_v34 = vrot.slane %v1549_v31, 2 }
 0x184   : > { %v1419_v54 = vrot.slane %v1418_v9, 1  ;;  %v1551_v35 = vadd.f32 %v1550_v34, %v1549_v31 }
 0x186   : > { %v1552_v33 = vrot.slane %v1551_v35, 1  ;;  %v1420_v8 = vadd.f32 %v1419_v54, %v1418_v9 }
 0x188   : > { %v1553_v36 = vadd.f32 %v1552_v33, %v1551_v35 }
 0x18a   : > { %v1555_v61 = vsel %vm1554_vm0, %v1420_v8, %v1553_v36 }
 0x18b   : > { %1556 = vst [vmem:[%s311_s7] sm:$0x3] %v1555_v61 }
 0x18c PF: > { %s16_s20 = sadd.s32 1, %s2388_s20   ;;  %s2930_s18 = smov %s2384_s19 }
 0x18d   : > { %p13_p6 = scmp.ge.s32.totalorder %s16_s20, 4   ;;  %s2931_s19 = smov %s2933_s21 }
 0x18f   :  { %15 = sbr.rel (!%p13_p6) target bundleno = 2 (0x2), region = 87 }

// kernel: bottleneck_forward.8
= control target key start
LH: loop header
LB: loop body
LE: loop exit
PB: predicated region body
PF: predicated region fallthrough
CT: control target
= control target key end

     0   :  { %s3335_s12 = smov 0   ;;  %s3337_s13 = smov 0   ;;  %s3672_s0 = inlined_call_operand.vmem [shape: bf16[1024,512], index: 0, kind: input, shape index: {}]   ;;  %s3673_s1 = inlined_call_operand.vmem [shape: bf16[512,128], index: 1, kind: input, shape index: {}]   ;;  %s3674_s2 = inlined_call_operand.vmem [shape: bf16[1024,128], index: 2, kind: output, shape index: {0}]   ;;  %s3675_s3 = inlined_call_operand.vmem [shape: f32[2,2,128], index: 3, kind: output, shape index: {1}]  }
   0x1   :  { %s3339_s14 = smov 0  }
   0x2 LB: > { %s26_s15 = sadd.s32 1, %s3308_s13  ;;  %p2488_p0 = scmp.ge.s32.totalorder %s3312_s14, 1  ;;  %s3312_s14 = sphi %s3339_s14, %s14_s14   ;;  %s3308_s13 = sphi %s3337_s13, %s3677_s13   ;;  %s3304_s12 = sphi %s3335_s12, %s3676_s12  }
   0x3   : > { %p28_p1 = scmp.ge.s32.totalorder %s26_s15, 2  ;;  %p172_p2 = scmp.lt.s32.totalorder %s3312_s14, 3 }
   0x5   : > { %s3679_s15 = smov (%p28_p1, %s26_s15), 0  ;;  %p173_p3 = pnand %p2488_p0, %p172_p2 }
   0x6   : > { %v3066_v0 = vld [vmem:[%s3673_s1] sm:$0xff] (!%p173_p3)   ;;  %v3314_v1 = vmov (!%p173_p3), 0   ;;  %v3068_v3 = vld [vmem:[%s3673_s1 + $0x8] sm:$0xff] (!%p173_p3)   ;;  %v3070_v5 = vld [vmem:[%s3673_s1 + $0x10] sm:$0xff] (!%p173_p3)   ;;  %s2489_s9 = sshll.u32 (!%p173_p3), %s3304_s12, 6  ;;  %p234_p5 = scmp.lt.s32.totalorder (!%p173_p3), %s3304_s12, 1 }
   0x7   : > { %176 = sbr.rel (%p173_p3) target bundleno = 554 (0x22a), region = 28  ;;  %1263 = vmatprep.subr.bf16.mxu1 (!%p173_p3), %v3314_v1  ;;  %1552 = vmatprep.subr.bf16.mxu0 (!%p173_p3), %v3314_v1  ;;  %v3067_v2 = vld [vmem:[%s3673_s1 + $0x80] sm:$0xff] (!%p173_p3)   ;;  %v3069_v4 = vld [vmem:[%s3673_s1 + $0x88] sm:$0xff] (!%p173_p3)   ;;  %v3071_v6 = vld [vmem:[%s3673_s1 + $0x90] sm:$0xff] (!%p173_p3)   ;;  %p212_p4 = scmp.lt.s32.totalorder (!%p173_p3), %s2489_s9, 127  ;;  %vm2363_vm0 = vcmask (!%p173_p3), 1040384  }
   0x8   : > { %1264 = vmatpush1.bf16.msra.mxu1 (!%p173_p3), %v3066_v0  ;;  %1553 = vmatpush1.bf16.msra.mxu0 (!%p173_p3), %v3067_v2  ;;  %v3072_v7 = vld [vmem:[%s3673_s1 + $0x18] sm:$0xff] (!%p173_p3)   ;;  %v3074_v9 = vld [vmem:[%s3673_s1 + $0x20] sm:$0xff] (!%p173_p3)   ;;  %v3076_v11 = vld [vmem:[%s3673_s1 + $0x28] sm:$0xff] (!%p173_p3)  }
   0x9   : > { %1265 = vmatprep.subr.bf16.mxu1 (!%p173_p3), %v3314_v1  ;;  %1554 = vmatprep.subr.bf16.mxu0 (!%p173_p3), %v3314_v1  ;;  %v3073_v8 = vld [vmem:[%s3673_s1 + $0x98] sm:$0xff] (!%p173_p3)   ;;  %v3075_v10 = vld [vmem:[%s3673_s1 + $0xa0] sm:$0xff] (!%p173_p3)   ;;  %v3077_v12 = vld [vmem:[%s3673_s1 + $0xa8] sm:$0xff] (!%p173_p3)  }
   0xa   : > { %v3078_v13 = vld [vmem:[%s3673_s1 + $0x30] sm:$0xff] (!%p173_p3)   ;;  %v3080_v15 = vld [vmem:[%s3673_s1 + $0x38] sm:$0xff] (!%p173_p3)   ;;  %v3082_v17 = vld [vmem:[%s3673_s1 + $0x40] sm:$0xff] (!%p173_p3)  }
   0xb   : > { %v3079_v14 = vld [vmem:[%s3673_s1 + $0xb0] sm:$0xff] (!%p173_p3)   ;;  %v3081_v16 = vld [vmem:[%s3673_s1 + $0xb8] sm:$0xff] (!%p173_p3)   ;;  %v3083_v18 = vld [vmem:[%s3673_s1 + $0xc0] sm:$0xff] (!%p173_p3)  }
   0xc   : > { %1266 = vmatpush1.bf16.msra.mxu1 (!%p173_p3), %v3068_v3  ;;  %1555 = vmatpush1.bf16.msra.mxu0 (!%p173_p3), %v3069_v4  ;;  %v3084_v20 = vld [vmem:[%s3673_s1 + $0x48] sm:$0xff] (!%p173_p3)   ;;  %v3086_v23 = vld [vmem:[%s3673_s1 + $0x50] sm:$0xff] (!%p173_p3)   ;;  %v3088_v25 = vld [vmem:[%s3673_s1 + $0x58] sm:$0xff] (!%p173_p3)  }
   0xd   : > { %1267 = vmatprep.subr.bf16.mxu1 (!%p173_p3), %v3314_v1  ;;  %1556 = vmatprep.subr.bf16.mxu0 (!%p173_p3), %v3314_v1  ;;  %v3085_v22 = vld [vmem:[%s3673_s1 + $0xc8] sm:$0xff] (!%p173_p3)   ;;  %v3087_v24 = vld [vmem:[%s3673_s1 + $0xd0] sm:$0xff] (!%p173_p3)   ;;  %v3089_v26 = vld [vmem:[%s3673_s1 + $0xd8] sm:$0xff] (!%p173_p3)  }
   0xe   : > { %s3681_s9 = smov (!%p212_p4, %s2489_s9), 127  ;;  %v3090_v27 = vld [vmem:[%s3673_s1 + $0x60] sm:$0xff]   ;;  %v3092_v29 = vld [vmem:[%s3673_s1 + $0x68] sm:$0xff]   ;;  %v3094_v31 = vld [vmem:[%s3673_s1 + $0x70] sm:$0xff]   ;;  %s3683_s12 = smov (!%p234_p5, %s3304_s12), 1 }
   0xf   : > { %s2721_s26 = sshll.u32 %s3681_s9, 4  ;;  %v3091_v28 = vld [vmem:[%s3673_s1 + $0xe0] sm:$0xff]   ;;  %v3093_v30 = vld [vmem:[%s3673_s1 + $0xe8] sm:$0xff]   ;;  %v3095_v32 = vld [vmem:[%s3673_s1 + $0xf0] sm:$0xff]   ;;  %s2493_s19 = sshll.u32 %s3681_s9, 2 }
  0x10   : > { %1268 = vmatpush1.bf16.msra.mxu1 %v3070_v5  ;;  %1557 = vmatpush1.bf16.msra.mxu0 %v3071_v6  ;;  %s3429_s4 = scalar_lea.vmem %s3672_s0, %s2721_s26  ;;  %v3096_v33 = vld [vmem:[%s3673_s1 + $0x78] sm:$0xff]   ;;  %s3610_s22 = scalar_lea.vmem %s3674_s2, %s2493_s19 }
  0x11   : > { %1269 = vmatprep.subr.bf16.mxu1 %v3314_v1  ;;  %1558 = vmatprep.subr.bf16.mxu0 %v3314_v1  ;;  %v3100_v19 = vld [vmem:[%s3429_s4 + $0x4] ss:$16 sps:$4 sm:$0xff]   ;;  %v3103_v21 = vld [vmem:[%s3429_s4 + $0xc] ss:$16 sps:$4 sm:$0xff]   ;;  %v3098_v35 = vld [vmem:[%s3429_s4] ss:$16 sps:$4 sm:$0xff]  }
  0x12   : > { %1295 = vmatprep.mubr.bf16.mxu1 %v3100_v19  ;;  %1584 = vmatprep.mubr.bf16.mxu0 %v3103_v21  ;;  %v3097_v34 = vld [vmem:[%s3673_s1 + $0xf8] sm:$0xff]   ;;  %v3104_v37 = vld [vmem:[%s3429_s4 + $0x24] ss:$16 sps:$4 sm:$0xff]   ;;  %v3108_v39 = vld [vmem:[%s3429_s4 + $0x20] ss:$16 sps:$4 sm:$0xff]   ;;  %s2494_s9 = sshll.u32 %s3683_s12, 1 }
  0x13   : > { %v3101_v36 = vld [vmem:[%s3429_s4 + $0x8] ss:$16 sps:$4 sm:$0xff]   ;;  %v3106_v38 = vld [vmem:[%s3429_s4 + $0x2c] ss:$16 sps:$4 sm:$0xff]   ;;  %v3110_v41 = vld [vmem:[%s3429_s4 + $0x44] ss:$16 sps:$4 sm:$0xff]   ;;  %s237_s24 = scalar_lea.vmem %s3675_s3, %s2494_s9 }
  0x14   : > { %1270 = vmatpush1.bf16.msra.mxu1 %v3072_v7  ;;  %1559 = vmatpush1.bf16.msra.mxu0 %v3073_v8  ;;  %v3109_v40 = vld [vmem:[%s3429_s4 + $0x28] ss:$16 sps:$4 sm:$0xff]   ;;  %v3112_v42 = vld [vmem:[%s3429_s4 + $0x4c] ss:$16 sps:$4 sm:$0xff]   ;;  %v3114_v43 = vld [vmem:[%s3429_s4 + $0x40] ss:$16 sps:$4 sm:$0xff]  }
  0x15   : > { %1271 = vmatprep.subr.bf16.mxu1 %v3314_v1  ;;  %1560 = vmatprep.subr.bf16.mxu0 %v3314_v1  ;;  %v3115_v44 = vld [vmem:[%s3429_s4 + $0x48] ss:$16 sps:$4 sm:$0xff]   ;;  %v3116_v45 = vld [vmem:[%s3429_s4 + $0x64] ss:$16 sps:$4 sm:$0xff]   ;;  %v3118_v46 = vld [vmem:[%s3429_s4 + $0x6c] ss:$16 sps:$4 sm:$0xff]  }
  0x16   : > { %v3120_v47 = vld [vmem:[%s3429_s4 + $0x60] ss:$16 sps:$4 sm:$0xff]   ;;  %v3121_v48 = vld [vmem:[%s3429_s4 + $0x68] ss:$16 sps:$4 sm:$0xff]   ;;  %v3122_v49 = vld [vmem:[%s3429_s4 + $0x84] ss:$16 sps:$4 sm:$0xff]  }
  0x17   : > { %v3124_v50 = vld [vmem:[%s3429_s4 + $0x8c] ss:$16 sps:$4 sm:$0xff]   ;;  %v3126_v51 = vld [vmem:[%s3429_s4 + $0x80] ss:$16 sps:$4 sm:$0xff]   ;;  %v3127_v52 = vld [vmem:[%s3429_s4 + $0x88] ss:$16 sps:$4 sm:$0xff]  }
  0x18   : > { %1272 = vmatpush1.bf16.msra.mxu1 %v3074_v9  ;;  %1561 = vmatpush1.bf16.msra.mxu0 %v3075_v10  ;;  %v3128_v53 = vld [vmem:[%s3429_s4 + $0xa4] ss:$16 sps:$4 sm:$0xff]   ;;  %v3130_v54 = vld [vmem:[%s3429_s4 + $0xac] ss:$16 sps:$4 sm:$0xff]   ;;  %v3132_v55 = vld [vmem:[%s3429_s4 + $0xa0] ss:$16 sps:$4 sm:$0xff]  }
  0x19   : > { %1273 = vmatprep.subr.bf16.mxu1 %v3314_v1  ;;  %1562 = vmatprep.subr.bf16.mxu0 %v3314_v1  ;;  %v3133_v56 = vld [vmem:[%s3429_s4 + $0xa8] ss:$16 sps:$4 sm:$0xff]   ;;  %v3134_v57 = vld [vmem:[%s3429_s4 + $0xc4] ss:$16 sps:$4 sm:$0xff]   ;;  %v3136_v58 = vld [vmem:[%s3429_s4 + $0xcc] ss:$16 sps:$4 sm:$0xff]  }
  0x1a   : > { %v3138_v59 = vld [vmem:[%s3429_s4 + $0xc0] ss:$16 sps:$4 sm:$0xff]   ;;  %v3139_v60 = vld [vmem:[%s3429_s4 + $0xc8] ss:$16 sps:$4 sm:$0xff]   ;;  %v3140_v61 = vld [vmem:[%s3429_s4 + $0xe4] ss:$16 sps:$4 sm:$0xff]  }
  0x1b   : > { %v3142_v62 = vld [vmem:[%s3429_s4 + $0xec] ss:$16 sps:$4 sm:$0xff]   ;;  %v3144_v63 = vld [vmem:[%s3429_s4 + $0xe0] ss:$16 sps:$4 sm:$0xff]   ;;  %v3145_v0 = vld [vmem:[%s3429_s4 + $0xe8] ss:$16 sps:$4 sm:$0xff]  }
  0x1c   : > { %1274 = vmatpush1.bf16.msra.mxu1 %v3076_v11  ;;  %1563 = vmatpush1.bf16.msra.mxu0 %v3077_v12  ;;  %v3148_v2 = vld [vmem:[%s3429_s4 + $0x10c] ss:$16 sps:$4 sm:$0xff]   ;;  %v3150_v3 = vld [vmem:[%s3429_s4 + $0x100] ss:$16 sps:$4 sm:$0xff]   ;;  %v3151_v4 = vld [vmem:[%s3429_s4 + $0x108] ss:$16 sps:$4 sm:$0xff]  }
  0x1d   : > { %1275 = vmatprep.subr.bf16.mxu1 %v3314_v1  ;;  %1564 = vmatprep.subr.bf16.mxu0 %v3314_v1  ;;  %v3152_v5 = vld [vmem:[%s3429_s4 + $0x124] ss:$16 sps:$4 sm:$0xff]   ;;  %v3154_v6 = vld [vmem:[%s3429_s4 + $0x12c] ss:$16 sps:$4 sm:$0xff]   ;;  %v3156_v7 = vld [vmem:[%s3429_s4 + $0x120] ss:$16 sps:$4 sm:$0xff]  }
  0x1e   : > { %v3157_v8 = vld [vmem:[%s3429_s4 + $0x128] ss:$16 sps:$4 sm:$0xff]   ;;  %v3158_v9 = vld [vmem:[%s3429_s4 + $0x144] ss:$16 sps:$4 sm:$0xff]   ;;  %v3160_v10 = vld [vmem:[%s3429_s4 + $0x14c] ss:$16 sps:$4 sm:$0xff]  }
  0x1f   : > { %v3162_v11 = vld [vmem:[%s3429_s4 + $0x140] ss:$16 sps:$4 sm:$0xff]   ;;  %v3163_v12 = vld [vmem:[%s3429_s4 + $0x148] ss:$16 sps:$4 sm:$0xff]   ;;  %v3176_v21 = vld [vmem:[%s3429_s4 + $0x1a4] ss:$16 sps:$4 sm:$0xff]  }
  0x20   : > { %1276 = vmatpush1.bf16.msra.mxu1 %v3078_v13  ;;  %1565 = vmatpush1.bf16.msra.mxu0 %v3079_v14  ;;  %v3164_v13 = vld [vmem:[%s3429_s4 + $0x164] ss:$16 sps:$4 sm:$0xff]   ;;  %v3166_v14 = vld [vmem:[%s3429_s4 + $0x16c] ss:$16 sps:$4 sm:$0xff]   ;;  %v3174_v19 = vld [vmem:[%s3429_s4 + $0x180] ss:$16 sps:$4 sm:$0xff]  }
  0x21   : > { %1277 = vmatprep.subr.bf16.mxu1 %v3314_v1  ;;  %1566 = vmatprep.subr.bf16.mxu0 %v3314_v1 }
  0x24   : > { %1278 = vmatpush1.bf16.msra.mxu1 %v3080_v15  ;;  %1567 = vmatpush1.bf16.msra.mxu0 %v3081_v16  ;;  %v3168_v15 = vld [vmem:[%s3429_s4 + $0x160] ss:$16 sps:$4 sm:$0xff]   ;;  %v3169_v16 = vld [vmem:[%s3429_s4 + $0x168] ss:$16 sps:$4 sm:$0xff]  }
  0x25   : > { %1279 = vmatprep.subr.bf16.mxu1 %v3314_v1  ;;  %1568 = vmatprep.subr.bf16.mxu0 %v3314_v1 }
  0x28   : > { %1280 = vmatpush1.bf16.msra.mxu1 %v3082_v17  ;;  %1569 = vmatpush1.bf16.msra.mxu0 %v3083_v18  ;;  %v3170_v17 = vld [vmem:[%s3429_s4 + $0x184] ss:$16 sps:$4 sm:$0xff]   ;;  %v3172_v18 = vld [vmem:[%s3429_s4 + $0x18c] ss:$16 sps:$4 sm:$0xff]  }
  0x29   : > { %1281 = vmatprep.subr.bf16.mxu1 %v3314_v1  ;;  %1570 = vmatprep.subr.bf16.mxu0 %v3314_v1 }
  0x2c   : > { %1282 = vmatpush1.bf16.msra.mxu1 %v3084_v20  ;;  %1571 = vmatpush1.bf16.msra.mxu0 %v3085_v22  ;;  %v3175_v20 = vld [vmem:[%s3429_s4 + $0x188] ss:$16 sps:$4 sm:$0xff]   ;;  %v3178_v22 = vld [vmem:[%s3429_s4 + $0x1ac] ss:$16 sps:$4 sm:$0xff]  }
  0x2d   : > { %1283 = vmatprep.subr.bf16.mxu1 %v3314_v1  ;;  %1572 = vmatprep.subr.bf16.mxu0 %v3314_v1 }
  0x30   : > { %1284 = vmatpush1.bf16.msra.mxu1 %v3086_v23  ;;  %1573 = vmatpush1.bf16.msra.mxu0 %v3087_v24  ;;  %v3180_v23 = vld [vmem:[%s3429_s4 + $0x1a0] ss:$16 sps:$4 sm:$0xff]   ;;  %v3181_v24 = vld [vmem:[%s3429_s4 + $0x1a8] ss:$16 sps:$4 sm:$0xff]  }
  0x31   : > { %1285 = vmatprep.subr.bf16.mxu1 %v3314_v1  ;;  %1574 = vmatprep.subr.bf16.mxu0 %v3314_v1 }
  0x34   : > { %1286 = vmatpush1.bf16.msra.mxu1 %v3088_v25  ;;  %1575 = vmatpush1.bf16.msra.mxu0 %v3089_v26  ;;  %v3182_v25 = vld [vmem:[%s3429_s4 + $0x1c4] ss:$16 sps:$4 sm:$0xff]   ;;  %v3184_v26 = vld [vmem:[%s3429_s4 + $0x1cc] ss:$16 sps:$4 sm:$0xff]  }
  0x35   : > { %1287 = vmatprep.subr.bf16.mxu1 %v3314_v1  ;;  %1576 = vmatprep.subr.bf16.mxu0 %v3314_v1 }
  0x38   : > { %1288 = vmatpush1.bf16.msra.mxu1 %v3090_v27  ;;  %1577 = vmatpush1.bf16.msra.mxu0 %v3091_v28  ;;  %v3186_v27 = vld [vmem:[%s3429_s4 + $0x1c0] ss:$16 sps:$4 sm:$0xff]   ;;  %v3187_v28 = vld [vmem:[%s3429_s4 + $0x1c8] ss:$16 sps:$4 sm:$0xff]  }
  0x39   : > { %1289 = vmatprep.subr.bf16.mxu1 %v3314_v1  ;;  %1578 = vmatprep.subr.bf16.mxu0 %v3314_v1 }
  0x3c   : > { %1290 = vmatpush1.bf16.msra.mxu1 %v3092_v29  ;;  %1579 = vmatpush1.bf16.msra.mxu0 %v3093_v30  ;;  %v3188_v29 = vld [vmem:[%s3429_s4 + $0x1e4] ss:$16 sps:$4 sm:$0xff]   ;;  %v3190_v30 = vld [vmem:[%s3429_s4 + $0x1ec] ss:$16 sps:$4 sm:$0xff]  }
  0x3d   : > { %1291 = vmatprep.subr.bf16.mxu1 %v3314_v1  ;;  %1580 = vmatprep.subr.bf16.mxu0 %v3314_v1 }
  0x40   : > { %1292 = vmatpush1.bf16.msra.mxu1 %v3094_v31  ;;  %1581 = vmatpush1.bf16.msra.mxu0 %v3095_v32  ;;  %v3192_v31 = vld [vmem:[%s3429_s4 + $0x1e0] ss:$16 sps:$4 sm:$0xff]   ;;  %v3193_v32 = vld [vmem:[%s3429_s4 + $0x1e8] ss:$16 sps:$4 sm:$0xff]  }
  0x41   : > { %1293 = vmatprep.subr.bf16.mxu1 %v3314_v1  ;;  %1582 = vmatprep.subr.bf16.mxu0 %v3314_v1  ;;  %v3146_v1 = vld [vmem:[%s3429_s4 + $0x104] ss:$16 sps:$4 sm:$0xff]  }
  0x44   : > { %1294 = vmatpush1.bf16.msra.mxu1 %v3096_v33  ;;  %1583 = vmatpush1.bf16.msra.mxu0 %v3097_v34  ;;  %v3194_v33 = vld [vmem:[%s3429_s4 + $0x204] ss:$16 sps:$4 sm:$0xff]   ;;  %v3196_v34 = vld [vmem:[%s3429_s4 + $0x20c] ss:$16 sps:$4 sm:$0xff]  }
  0x47   : > { %1296 = vmatmul.mubr.bf16.vlgmr.msra.gmra.mrb[0].mxu1 %v3098_v35  ;;  %1585 = vmatmul.mubr.bf16.vlgmr.msra.gmra.mrb[0].mxu0 %v3101_v36  ;;  %v3198_v35 = vld [vmem:[%s3429_s4 + $0x200] ss:$16 sps:$4 sm:$0xff]   ;;  %v3199_v36 = vld [vmem:[%s3429_s4 + $0x208] ss:$16 sps:$4 sm:$0xff]  }
  0x48   : > { %1303 = vmatprep.mubr.bf16.mxu1 %v3104_v37  ;;  %1592 = vmatprep.mubr.bf16.mxu0 %v3106_v38  ;;  %v3200_v37 = vld [vmem:[%s3429_s4 + $0x224] ss:$16 sps:$4 sm:$0xff]   ;;  %v3202_v38 = vld [vmem:[%s3429_s4 + $0x22c] ss:$16 sps:$4 sm:$0xff]  }
  0x4f   : > { %1304 = vmatmul.mubr.bf16.gmra.mrb[4].mxu1 %v3108_v39  ;;  %1593 = vmatmul.mubr.bf16.gmra.mrb[4].mxu0 %v3109_v40  ;;  %v3204_v39 = vld [vmem:[%s3429_s4 + $0x220] ss:$16 sps:$4 sm:$0xff]   ;;  %v3205_v40 = vld [vmem:[%s3429_s4 + $0x228] ss:$16 sps:$4 sm:$0xff]  }
  0x50   : > { %1311 = vmatprep.mubr.bf16.mxu1 %v3110_v41  ;;  %1600 = vmatprep.mubr.bf16.mxu0 %v3112_v42  ;;  %v3206_v41 = vld [vmem:[%s3429_s4 + $0x244] ss:$16 sps:$4 sm:$0xff]   ;;  %v3208_v42 = vld [vmem:[%s3429_s4 + $0x24c] ss:$16 sps:$4 sm:$0xff]  }
  0x57   : > { %1312 = vmatmul.mubr.bf16.gmra.mrb[8].mxu1 %v3114_v43  ;;  %1601 = vmatmul.mubr.bf16.gmra.mrb[8].mxu0 %v3115_v44  ;;  %v3210_v43 = vld [vmem:[%s3429_s4 + $0x240] ss:$16 sps:$4 sm:$0xff]   ;;  %v3211_v44 = vld [vmem:[%s3429_s4 + $0x248] ss:$16 sps:$4 sm:$0xff]  }
  0x58   : > { %1319 = vmatprep.mubr.bf16.mxu1 %v3116_v45  ;;  %1608 = vmatprep.mubr.bf16.mxu0 %v3118_v46  ;;  %v3212_v45 = vld [vmem:[%s3429_s4 + $0x264] ss:$16 sps:$4 sm:$0xff]   ;;  %v3214_v46 = vld [vmem:[%s3429_s4 + $0x26c] ss:$16 sps:$4 sm:$0xff]  }
  0x5f   : > { %1320 = vmatmul.mubr.bf16.gmra.mrb[12].mxu1 %v3120_v47  ;;  %1609 = vmatmul.mubr.bf16.gmra.mrb[12].mxu0 %v3121_v48  ;;  %v3216_v47 = vld [vmem:[%s3429_s4 + $0x260] ss:$16 sps:$4 sm:$0xff]   ;;  %v3217_v48 = vld [vmem:[%s3429_s4 + $0x268] ss:$16 sps:$4 sm:$0xff]  }
  0x60   : > { %1327 = vmatprep.mubr.bf16.mxu1 %v3122_v49  ;;  %1616 = vmatprep.mubr.bf16.mxu0 %v3124_v50  ;;  %v3218_v49 = vld [vmem:[%s3429_s4 + $0x284] ss:$16 sps:$4 sm:$0xff]   ;;  %v3220_v50 = vld [vmem:[%s3429_s4 + $0x28c] ss:$16 sps:$4 sm:$0xff]  }
  0x67   : > { %1328 = vmatmul.mubr.bf16.gmra.mrb[16].mxu1 %v3126_v51  ;;  %1617 = vmatmul.mubr.bf16.gmra.mrb[16].mxu0 %v3127_v52  ;;  %v3222_v51 = vld [vmem:[%s3429_s4 + $0x280] ss:$16 sps:$4 sm:$0xff]   ;;  %v3223_v52 = vld [vmem:[%s3429_s4 + $0x288] ss:$16 sps:$4 sm:$0xff]  }
  0x68   : > { %1335 = vmatprep.mubr.bf16.mxu1 %v3128_v53  ;;  %1624 = vmatprep.mubr.bf16.mxu0 %v3130_v54  ;;  %v3224_v53 = vld [vmem:[%s3429_s4 + $0x2a4] ss:$16 sps:$4 sm:$0xff]   ;;  %v3226_v54 = vld [vmem:[%s3429_s4 + $0x2ac] ss:$16 sps:$4 sm:$0xff]  }
  0x6f   : > { %1336 = vmatmul.mubr.bf16.gmra.mrb[20].mxu1 %v3132_v55  ;;  %1625 = vmatmul.mubr.bf16.gmra.mrb[20].mxu0 %v3133_v56  ;;  %v3228_v55 = vld [vmem:[%s3429_s4 + $0x2a0] ss:$16 sps:$4 sm:$0xff]   ;;  %v3229_v56 = vld [vmem:[%s3429_s4 + $0x2a8] ss:$16 sps:$4 sm:$0xff]  }
  0x70   : > { %1343 = vmatprep.mubr.bf16.mxu1 %v3134_v57  ;;  %1632 = vmatprep.mubr.bf16.mxu0 %v3136_v58  ;;  %v3230_v57 = vld [vmem:[%s3429_s4 + $0x2c4] ss:$16 sps:$4 sm:$0xff]   ;;  %v3232_v58 = vld [vmem:[%s3429_s4 + $0x2cc] ss:$16 sps:$4 sm:$0xff]  }
  0x77   : > { %1344 = vmatmul.mubr.bf16.gmra.mrb[24].mxu1 %v3138_v59  ;;  %1633 = vmatmul.mubr.bf16.gmra.mrb[24].mxu0 %v3139_v60  ;;  %v3234_v59 = vld [vmem:[%s3429_s4 + $0x2c0] ss:$16 sps:$4 sm:$0xff]   ;;  %v3235_v60 = vld [vmem:[%s3429_s4 + $0x2c8] ss:$16 sps:$4 sm:$0xff]  }
  0x78   : > { %1351 = vmatprep.mubr.bf16.mxu1 %v3140_v61  ;;  %1640 = vmatprep.mubr.bf16.mxu0 %v3142_v62  ;;  %v3236_v61 = vld [vmem:[%s3429_s4 + $0x2e4] ss:$16 sps:$4 sm:$0xff]   ;;  %v3238_v62 = vld [vmem:[%s3429_s4 + $0x2ec] ss:$16 sps:$4 sm:$0xff]  }
  0x7f   : > { %1352 = vmatmul.mubr.bf16.gmra.mrb[28].mxu1 %v3144_v63  ;;  %1641 = vmatmul.mubr.bf16.gmra.mrb[28].mxu0 %v3145_v0  ;;  %v3240_v63 = vld [vmem:[%s3429_s4 + $0x2e0] ss:$16 sps:$4 sm:$0xff]   ;;  %v3241_v0 = vld [vmem:[%s3429_s4 + $0x2e8] ss:$16 sps:$4 sm:$0xff]  }
  0x80   : > { %1359 = vmatprep.mubr.bf16.mxu1 %v3146_v1  ;;  %1648 = vmatprep.mubr.bf16.mxu0 %v3148_v2  ;;  %v3242_v1 = vld [vmem:[%s3429_s4 + $0x304] ss:$16 sps:$4 sm:$0xff]   ;;  %v3244_v2 = vld [vmem:[%s3429_s4 + $0x30c] ss:$16 sps:$4 sm:$0xff]  }
  0x87   : > { %1360 = vmatmul.mubr.bf16.gmra.mrb[32].mxu1 %v3150_v3  ;;  %1649 = vmatmul.mubr.bf16.gmra.mrb[32].mxu0 %v3151_v4  ;;  %v3246_v3 = vld [vmem:[%s3429_s4 + $0x300] ss:$16 sps:$4 sm:$0xff]   ;;  %v3247_v4 = vld [vmem:[%s3429_s4 + $0x308] ss:$16 sps:$4 sm:$0xff]  }
  0x88   : > { %1367 = vmatprep.mubr.bf16.mxu1 %v3152_v5  ;;  %1656 = vmatprep.mubr.bf16.mxu0 %v3154_v6  ;;  %v3248_v5 = vld [vmem:[%s3429_s4 + $0x324] ss:$16 sps:$4 sm:$0xff]   ;;  %v3250_v6 = vld [vmem:[%s3429_s4 + $0x32c] ss:$16 sps:$4 sm:$0xff]  }
  0x8f   : > { %1368 = vmatmul.mubr.bf16.gmra.mrb[36].mxu1 %v3156_v7  ;;  %1657 = vmatmul.mubr.bf16.gmra.mrb[36].mxu0 %v3157_v8  ;;  %v3252_v7 = vld [vmem:[%s3429_s4 + $0x320] ss:$16 sps:$4 sm:$0xff]   ;;  %v3253_v8 = vld [vmem:[%s3429_s4 + $0x328] ss:$16 sps:$4 sm:$0xff]  }
  0x90   : > { %1375 = vmatprep.mubr.bf16.mxu1 %v3158_v9  ;;  %1664 = vmatprep.mubr.bf16.mxu0 %v3160_v10  ;;  %v3254_v9 = vld [vmem:[%s3429_s4 + $0x344] ss:$16 sps:$4 sm:$0xff]   ;;  %v3256_v10 = vld [vmem:[%s3429_s4 + $0x34c] ss:$16 sps:$4 sm:$0xff]  }
  0x97   : > { %1376 = vmatmul.mubr.bf16.gmra.mrb[40].mxu1 %v3162_v11  ;;  %1665 = vmatmul.mubr.bf16.gmra.mrb[40].mxu0 %v3163_v12  ;;  %v3258_v11 = vld [vmem:[%s3429_s4 + $0x340] ss:$16 sps:$4 sm:$0xff]   ;;  %v3259_v12 = vld [vmem:[%s3429_s4 + $0x348] ss:$16 sps:$4 sm:$0xff]  }
  0x98   : > { %1383 = vmatprep.mubr.bf16.mxu1 %v3164_v13  ;;  %1672 = vmatprep.mubr.bf16.mxu0 %v3166_v14  ;;  %v3260_v13 = vld [vmem:[%s3429_s4 + $0x364] ss:$16 sps:$4 sm:$0xff]   ;;  %v3262_v14 = vld [vmem:[%s3429_s4 + $0x36c] ss:$16 sps:$4 sm:$0xff]  }
  0x9f   : > { %1384 = vmatmul.mubr.bf16.gmra.mrb[44].mxu1 %v3168_v15  ;;  %1673 = vmatmul.mubr.bf16.gmra.mrb[44].mxu0 %v3169_v16 }
  0xa0   : > { %1391 = vmatprep.mubr.bf16.mxu1 %v3170_v17  ;;  %1680 = vmatprep.mubr.bf16.mxu0 %v3172_v18  ;;  %v3264_v18 = vld [vmem:[%s3429_s4 + $0x360] ss:$16 sps:$4 sm:$0xff]  }
  0xa7   : > { %1392 = vmatmul.mubr.bf16.gmra.mrb[48].mxu1 %v3174_v19  ;;  %1681 = vmatmul.mubr.bf16.gmra.mrb[48].mxu0 %v3175_v20 }
  0xa8   : > { %1399 = vmatprep.mubr.bf16.mxu1 %v3176_v21  ;;  %1688 = vmatprep.mubr.bf16.mxu0 %v3178_v22  ;;  %v3265_v22 = vld [vmem:[%s3429_s4 + $0x368] ss:$16 sps:$4 sm:$0xff]  }
  0xaf   : > { %1400 = vmatmul.mubr.bf16.gmra.mrb[52].mxu1 %v3180_v23  ;;  %1689 = vmatmul.mubr.bf16.gmra.mrb[52].mxu0 %v3181_v24  ;;  %v3266_v23 = vld [vmem:[%s3429_s4 + $0x384] ss:$16 sps:$4 sm:$0xff]  }
  0xb0   : > { %1407 = vmatprep.mubr.bf16.mxu1 %v3182_v25  ;;  %1696 = vmatprep.mubr.bf16.mxu0 %v3184_v26  ;;  %v3268_v26 = vld [vmem:[%s3429_s4 + $0x38c] ss:$16 sps:$4 sm:$0xff]  }
  0xb7   : > { %1408 = vmatmul.mubr.bf16.gmra.mrb[56].mxu1 %v3186_v27  ;;  %1697 = vmatmul.mubr.bf16.gmra.mrb[56].mxu0 %v3187_v28 }
  0xb8   : > { %1415 = vmatprep.mubr.bf16.mxu1 %v3188_v29  ;;  %1704 = vmatprep.mubr.bf16.mxu0 %v3190_v30 }
  0xbf   : > { %1416 = vmatmul.mubr.bf16.gmra.mrb[60].mxu1 %v3192_v31  ;;  %1705 = vmatmul.mubr.bf16.gmra.mrb[60].mxu0 %v3193_v32 }
  0xc0   : > { %1423 = vmatprep.mubr.bf16.mxu1 %v3194_v33  ;;  %1712 = vmatprep.mubr.bf16.mxu0 %v3196_v34 }
  0xc7   : > { %1424 = vmatmul.mubr.bf16.gmra.mrb[64].mxu1 %v3198_v35  ;;  %1713 = vmatmul.mubr.bf16.gmra.mrb[64].mxu0 %v3199_v36 }
  0xc8   : > { %1431 = vmatprep.mubr.bf16.mxu1 %v3200_v37  ;;  %1720 = vmatprep.mubr.bf16.mxu0 %v3202_v38  ;;  %v3270_v37 = vld [vmem:[%s3429_s4 + $0x380] ss:$16 sps:$4 sm:$0xff]  }
  0xcf   : > { %1432 = vmatmul.mubr.bf16.gmra.mrb[68].mxu1 %v3204_v39  ;;  %1721 = vmatmul.mubr.bf16.gmra.mrb[68].mxu0 %v3205_v40 }
  0xd0   : > { %1439 = vmatprep.mubr.bf16.mxu1 %v3206_v41  ;;  %1728 = vmatprep.mubr.bf16.mxu0 %v3208_v42  ;;  %v3271_v41 = vld [vmem:[%s3429_s4 + $0x388] ss:$16 sps:$4 sm:$0xff]  }
  0xd7   : > { %1440 = vmatmul.mubr.bf16.gmra.mrb[72].mxu1 %v3210_v43  ;;  %1729 = vmatmul.mubr.bf16.gmra.mrb[72].mxu0 %v3211_v44  ;;  %v3272_v44 = vld [vmem:[%s3429_s4 + $0x3a4] ss:$16 sps:$4 sm:$0xff]  }
  0xd8   : > { %1447 = vmatprep.mubr.bf16.mxu1 %v3212_v45  ;;  %1736 = vmatprep.mubr.bf16.mxu0 %v3214_v46  ;;  %v3274_v45 = vld [vmem:[%s3429_s4 + $0x3ac] ss:$16 sps:$4 sm:$0xff]  }
  0xdf   : > { %1448 = vmatmul.mubr.bf16.gmra.mrb[76].mxu1 %v3216_v47  ;;  %1737 = vmatmul.mubr.bf16.gmra.mrb[76].mxu0 %v3217_v48 }
  0xe0   : > { %1455 = vmatprep.mubr.bf16.mxu1 %v3218_v49  ;;  %1744 = vmatprep.mubr.bf16.mxu0 %v3220_v50 }
  0xe7   : > { %1456 = vmatmul.mubr.bf16.gmra.mrb[80].mxu1 %v3222_v51  ;;  %1745 = vmatmul.mubr.bf16.gmra.mrb[80].mxu0 %v3223_v52 }
  0xe8   : > { %1463 = vmatprep.mubr.bf16.mxu1 %v3224_v53  ;;  %1752 = vmatprep.mubr.bf16.mxu0 %v3226_v54 }
  0xef   : > { %1464 = vmatmul.mubr.bf16.gmra.mrb[84].mxu1 %v3228_v55  ;;  %1753 = vmatmul.mubr.bf16.gmra.mrb[84].mxu0 %v3229_v56 }
  0xf0   : > { %1471 = vmatprep.mubr.bf16.mxu1 %v3230_v57  ;;  %1760 = vmatprep.mubr.bf16.mxu0 %v3232_v58  ;;  %v3276_v58 = vld [vmem:[%s3429_s4 + $0x3a0] ss:$16 sps:$4 sm:$0xff]  }
  0xf7   : > { %1472 = vmatmul.mubr.bf16.gmra.mrb[88].mxu1 %v3234_v59  ;;  %1761 = vmatmul.mubr.bf16.gmra.mrb[88].mxu0 %v3235_v60 }
  0xf8   : > { %1479 = vmatprep.mubr.bf16.mxu1 %v3236_v61  ;;  %1768 = vmatprep.mubr.bf16.mxu0 %v3238_v62  ;;  %v3277_v62 = vld [vmem:[%s3429_s4 + $0x3a8] ss:$16 sps:$4 sm:$0xff]  }
  0xff   : > { %1480 = vmatmul.mubr.bf16.gmra.mrb[92].mxu1 %v3240_v63  ;;  %1769 = vmatmul.mubr.bf16.gmra.mrb[92].mxu0 %v3241_v0 }
 0x100   : > { %1487 = vmatprep.mubr.bf16.mxu1 %v3242_v1  ;;  %1776 = vmatprep.mubr.bf16.mxu0 %v3244_v2  ;;  %v3278_v1 = vld [vmem:[%s3429_s4 + $0x3c4] ss:$16 sps:$4 sm:$0xff]   ;;  %v3280_v2 = vld [vmem:[%s3429_s4 + $0x3cc] ss:$16 sps:$4 sm:$0xff]  }
 0x107   : > { %1488 = vmatmul.mubr.bf16.gmra.mrb[96].mxu1 %v3246_v3  ;;  %1777 = vmatmul.mubr.bf16.gmra.mrb[96].mxu0 %v3247_v4 }
 0x108   : > { %1495 = vmatprep.mubr.bf16.mxu1 %v3248_v5  ;;  %1784 = vmatprep.mubr.bf16.mxu0 %v3250_v6 }
 0x10f   : > { %1496 = vmatmul.mubr.bf16.gmra.mrb[100].mxu1 %v3252_v7  ;;  %1785 = vmatmul.mubr.bf16.gmra.mrb[100].mxu0 %v3253_v8 }
 0x110   : > { %1503 = vmatprep.mubr.bf16.mxu1 %v3254_v9  ;;  %1792 = vmatprep.mubr.bf16.mxu0 %v3256_v10 }
 0x117   : > { %1504 = vmatmul.mubr.bf16.gmra.mrb[104].mxu1 %v3258_v11  ;;  %1793 = vmatmul.mubr.bf16.gmra.mrb[104].mxu0 %v3259_v12 }
 0x118   : > { %1511 = vmatprep.mubr.bf16.mxu1 %v3260_v13  ;;  %1800 = vmatprep.mubr.bf16.mxu0 %v3262_v14 }
 0x11a   : > { %v1297_v15 = vpop.f32.mrb[0].mxu1  ;;  %v1586_v16 = vpop.f32.mrb[0].mxu0 }
 0x11b   : > { %v1299_v17 = vpop.f32.mrb[1].mxu1  ;;  %v1587_v19 = vadd.f32 %v1586_v16, %v1297_v15  ;;  %v1588_v20 = vpop.f32.mrb[1].mxu0  ;;  %v3282_v15 = vld [vmem:[%s3429_s4 + $0x3c0] ss:$16 sps:$4 sm:$0xff]  }
 0x11c   : > { %v1300_v21 = vpop.f32.mrb[2].mxu1  ;;  %v1589_v24 = vpop.f32.mrb[2].mxu0 }
 0x11d   : > { %v1302_v25 = vpop.f32.mrb[3].mxu1  ;;  %v1590_v27 = vadd.f32 %v1589_v24, %v1300_v21  ;;  %v1591_v28 = vpop.f32.mrb[3].mxu0  ;;  %v2230_v29 = vmul.f32 %v1587_v19, %v1587_v19 }
 0x11f   : > { %1512 = vmatmul.mubr.bf16.gmra.mrb[108].mxu1 %v3264_v18  ;;  %v2789_v30 = vpack.c.bf16 %v1590_v27, %v1587_v19  ;;  %v2161_v31 = vadd.f32 %v1590_v27, %v1587_v19  ;;  %v2231_v32 = vmul.f32 %v1590_v27, %v1590_v27  ;;  %1801 = vmatmul.mubr.bf16.gmra.mrb[108].mxu0 %v3265_v22  ;;  %v3283_v19 = vld [vmem:[%s3429_s4 + $0x3c8] ss:$16 sps:$4 sm:$0xff]   ;;  %v3284_v22 = vld [vmem:[%s3429_s4 + $0x3e4] ss:$16 sps:$4 sm:$0xff]  }
 0x120   : > { %1519 = vmatprep.mubr.bf16.mxu1 %v3266_v23  ;;  %1808 = vmatprep.mubr.bf16.mxu0 %v3268_v26  ;;  %v3286_v23 = vld [vmem:[%s3429_s4 + $0x3ec] ss:$16 sps:$4 sm:$0xff]  }
 0x121   : > { %2790 = vst [vmem:[%s3610_s22] sm:$0xff] %v2789_v30   ;;  %v2294_v33 = vadd.f32 %v2231_v32, %v2230_v29 }
 0x122   : > { %v1305_v34 = vpop.f32.mrb[4].mxu1  ;;  %v1594_v35 = vpop.f32.mrb[4].mxu0 }
 0x123   : > { %v1307_v36 = vpop.f32.mrb[5].mxu1  ;;  %v1595_v38 = vadd.f32 %v1594_v35, %v1305_v34  ;;  %v1596_v39 = vpop.f32.mrb[5].mxu0 }
 0x124   : > { %v1308_v40 = vpop.f32.mrb[6].mxu1  ;;  %v1597_v42 = vpop.f32.mrb[6].mxu0  ;;  %v3288_v36 = vld [vmem:[%s3429_s4 + $0x3e0] ss:$16 sps:$4 sm:$0xff]  }
 0x125   : > { %v1310_v43 = vpop.f32.mrb[7].mxu1  ;;  %v2162_v46 = vadd.f32 %v2161_v31, %v1595_v38  ;;  %v2232_v47 = vmul.f32 %v1595_v38, %v1595_v38  ;;  %v1598_v48 = vadd.f32 %v1597_v42, %v1308_v40  ;;  %v1599_v49 = vpop.f32.mrb[7].mxu0  ;;  %v3289_v40 = vld [vmem:[%s3429_s4 + $0x3e8] ss:$16 sps:$4 sm:$0xff]  }
 0x127   : > { %1520 = vmatmul.mubr.bf16.gmra.mrb[112].mxu1 %v3270_v37  ;;  %v2295_v50 = vadd.f32 %v2294_v33, %v2232_v47  ;;  %v2794_v51 = vpack.c.bf16 %v1598_v48, %v1595_v38  ;;  %v2163_v52 = vadd.f32 %v2162_v46, %v1598_v48  ;;  %v2233_v53 = vmul.f32 %v1598_v48, %v1598_v48 }
 0x128   : > { %1809 = vmatmul.mubr.bf16.gmra.mrb[112].mxu0 %v3271_v41  ;;  %1527 = vmatprep.mubr.bf16.mxu1 %v3272_v44 }
 0x129   : > { %1816 = vmatprep.mubr.bf16.mxu0 %v3274_v45  ;;  %2946 = vst [vmem:[%s3610_s22 + $0x8] sm:$0xff] %v2794_v51   ;;  %v2296_v54 = vadd.f32 %v2295_v50, %v2233_v53 }
 0x12a   : > { %v1313_v55 = vpop.f32.mrb[8].mxu1  ;;  %v1602_v56 = vpop.f32.mrb[8].mxu0 }
 0x12b   : > { %v1315_v57 = vpop.f32.mrb[9].mxu1  ;;  %v1603_v59 = vadd.f32 %v1602_v56, %v1313_v55  ;;  %v1604_v60 = vpop.f32.mrb[9].mxu0 }
 0x12c   : > { %v1316_v61 = vpop.f32.mrb[10].mxu1  ;;  %v1605_v63 = vpop.f32.mrb[10].mxu0 }
 0x12d   : > { %v1318_v0 = vpop.f32.mrb[11].mxu1  ;;  %v2164_v3 = vadd.f32 %v2163_v52, %v1603_v59  ;;  %v2234_v4 = vmul.f32 %v1603_v59, %v1603_v59  ;;  %v1606_v5 = vadd.f32 %v1605_v63, %v1316_v61  ;;  %v1607_v6 = vpop.f32.mrb[11].mxu0 }
 0x12f   : > { %1528 = vmatmul.mubr.bf16.gmra.mrb[116].mxu1 %v3276_v58  ;;  %v2297_v7 = vadd.f32 %v2296_v54, %v2234_v4  ;;  %v2799_v8 = vpack.c.bf16 %v1606_v5, %v1603_v59  ;;  %v2165_v9 = vadd.f32 %v2164_v3, %v1606_v5  ;;  %v2235_v10 = vmul.f32 %v1606_v5, %v1606_v5 }
 0x130   : > { %1817 = vmatmul.mubr.bf16.gmra.mrb[116].mxu0 %v3277_v62  ;;  %1535 = vmatprep.mubr.bf16.mxu1 %v3278_v1 }
 0x131   : > { %1824 = vmatprep.mubr.bf16.mxu0 %v3280_v2  ;;  %2947 = vst [vmem:[%s3610_s22 + $0x10] sm:$0xff] %v2799_v8   ;;  %v2298_v11 = vadd.f32 %v2297_v7, %v2235_v10 }
 0x132   : > { %v1321_v12 = vpop.f32.mrb[12].mxu1  ;;  %v1610_v13 = vpop.f32.mrb[12].mxu0 }
 0x133   : > { %v1323_v14 = vpop.f32.mrb[13].mxu1  ;;  %v1611_v16 = vadd.f32 %v1610_v13, %v1321_v12  ;;  %v1612_v17 = vpop.f32.mrb[13].mxu0 }
 0x134   : > { %v1324_v18 = vpop.f32.mrb[14].mxu1  ;;  %v1613_v20 = vpop.f32.mrb[14].mxu0 }
 0x135   : > { %v1326_v21 = vpop.f32.mrb[15].mxu1  ;;  %v2166_v24 = vadd.f32 %v2165_v9, %v1611_v16  ;;  %v2236_v25 = vmul.f32 %v1611_v16, %v1611_v16  ;;  %v1614_v26 = vadd.f32 %v1613_v20, %v1324_v18  ;;  %v1615_v27 = vpop.f32.mrb[15].mxu0 }
 0x137   : > { %1536 = vmatmul.mubr.bf16.gmra.mrb[120].mxu1 %v3282_v15  ;;  %v2299_v28 = vadd.f32 %v2298_v11, %v2236_v25  ;;  %v2804_v29 = vpack.c.bf16 %v1614_v26, %v1611_v16  ;;  %v2167_v30 = vadd.f32 %v2166_v24, %v1614_v26  ;;  %v2237_v31 = vmul.f32 %v1614_v26, %v1614_v26 }
 0x138   : > { %1825 = vmatmul.mubr.bf16.gmra.mrb[120].mxu0 %v3283_v19  ;;  %1543 = vmatprep.mubr.bf16.mxu1 %v3284_v22 }
 0x139   : > { %1832 = vmatprep.mubr.bf16.mxu0 %v3286_v23  ;;  %2948 = vst [vmem:[%s3610_s22 + $0x18] sm:$0xff] %v2804_v29   ;;  %v2300_v32 = vadd.f32 %v2299_v28, %v2237_v31 }
 0x13a   : > { %v1329_v33 = vpop.f32.mrb[16].mxu1  ;;  %v1618_v34 = vpop.f32.mrb[16].mxu0 }
 0x13b   : > { %v1331_v35 = vpop.f32.mrb[17].mxu1  ;;  %v1619_v37 = vadd.f32 %v1618_v34, %v1329_v33  ;;  %v1620_v38 = vpop.f32.mrb[17].mxu0 }
 0x13c   : > { %v1332_v39 = vpop.f32.mrb[18].mxu1  ;;  %v1621_v41 = vpop.f32.mrb[18].mxu0 }
 0x13d   : > { %v1334_v42 = vpop.f32.mrb[19].mxu1  ;;  %v2168_v43 = vadd.f32 %v2167_v30, %v1619_v37  ;;  %v2238_v44 = vmul.f32 %v1619_v37, %v1619_v37  ;;  %v1622_v45 = vadd.f32 %v1621_v41, %v1332_v39  ;;  %v1623_v46 = vpop.f32.mrb[19].mxu0 }
 0x13f   : > { %1544 = vmatmul.mubr.bf16.gmra.mrb[124].mxu1 %v3288_v36  ;;  %v2301_v47 = vadd.f32 %v2300_v32, %v2238_v44  ;;  %v2809_v48 = vpack.c.bf16 %v1622_v45, %v1619_v37  ;;  %v2169_v49 = vadd.f32 %v2168_v43, %v1622_v45  ;;  %v2239_v50 = vmul.f32 %v1622_v45, %v1622_v45 }
 0x140   : > { %1833 = vmatmul.mubr.bf16.gmra.mrb[124].mxu0 %v3289_v40 }
 0x141   : > { %2949 = vst [vmem:[%s3610_s22 + $0x20] sm:$0xff] %v2809_v48   ;;  %v2302_v51 = vadd.f32 %v2301_v47, %v2239_v50 }
 0x142   : > { %v1337_v52 = vpop.f32.mrb[20].mxu1  ;;  %v1626_v53 = vpop.f32.mrb[20].mxu0 }
 0x143   : > { %v1339_v54 = vpop.f32.mrb[21].mxu1  ;;  %v1627_v55 = vadd.f32 %v1626_v53, %v1337_v52  ;;  %v1628_v56 = vpop.f32.mrb[21].mxu0 }
 0x144   : > { %v1340_v57 = vpop.f32.mrb[22].mxu1  ;;  %v1629_v58 = vpop.f32.mrb[22].mxu0 }
 0x145   : > { %v1342_v59 = vpop.f32.mrb[23].mxu1  ;;  %v2170_v60 = vadd.f32 %v2169_v49, %v1627_v55  ;;  %v2240_v61 = vmul.f32 %v1627_v55, %v1627_v55  ;;  %v1630_v62 = vadd.f32 %v1629_v58, %v1340_v57  ;;  %v1631_v63 = vpop.f32.mrb[23].mxu0 }
 0x147   : > { %v2303_v0 = vadd.f32 %v2302_v51, %v2240_v61  ;;  %v2814_v1 = vpack.c.bf16 %v1630_v62, %v1627_v55  ;;  %v2171_v2 = vadd.f32 %v2170_v60, %v1630_v62  ;;  %v2241_v3 = vmul.f32 %v1630_v62, %v1630_v62 }
 0x149   : > { %2950 = vst [vmem:[%s3610_s22 + $0x28] sm:$0xff] %v2814_v1   ;;  %v2304_v4 = vadd.f32 %v2303_v0, %v2241_v3 }
 0x14a   : > { %v1345_v5 = vpop.f32.mrb[24].mxu1  ;;  %v1634_v6 = vpop.f32.mrb[24].mxu0 }
 0x14b   : > { %v1347_v7 = vpop.f32.mrb[25].mxu1  ;;  %v1635_v8 = vadd.f32 %v1634_v6, %v1345_v5  ;;  %v1636_v9 = vpop.f32.mrb[25].mxu0 }
 0x14c   : > { %v1348_v10 = vpop.f32.mrb[26].mxu1  ;;  %v1637_v11 = vpop.f32.mrb[26].mxu0 }
 0x14d   : > { %v1350_v12 = vpop.f32.mrb[27].mxu1  ;;  %v2172_v13 = vadd.f32 %v2171_v2, %v1635_v8  ;;  %v2242_v14 = vmul.f32 %v1635_v8, %v1635_v8  ;;  %v1638_v15 = vadd.f32 %v1637_v11, %v1348_v10  ;;  %v1639_v16 = vpop.f32.mrb[27].mxu0 }
 0x14f   : > { %v2305_v17 = vadd.f32 %v2304_v4, %v2242_v14  ;;  %v2819_v18 = vpack.c.bf16 %v1638_v15, %v1635_v8  ;;  %v2173_v19 = vadd.f32 %v2172_v13, %v1638_v15  ;;  %v2243_v20 = vmul.f32 %v1638_v15, %v1638_v15 }
 0x151   : > { %2951 = vst [vmem:[%s3610_s22 + $0x30] sm:$0xff] %v2819_v18   ;;  %v2306_v21 = vadd.f32 %v2305_v17, %v2243_v20 }
 0x152   : > { %v1353_v22 = vpop.f32.mrb[28].mxu1  ;;  %v1642_v23 = vpop.f32.mrb[28].mxu0 }
 0x153   : > { %v1355_v24 = vpop.f32.mrb[29].mxu1  ;;  %v1643_v25 = vadd.f32 %v1642_v23, %v1353_v22  ;;  %v1644_v26 = vpop.f32.mrb[29].mxu0 }
 0x154   : > { %v1356_v27 = vpop.f32.mrb[30].mxu1  ;;  %v1645_v28 = vpop.f32.mrb[30].mxu0 }
 0x155   : > { %v1358_v29 = vpop.f32.mrb[31].mxu1  ;;  %v2174_v30 = vadd.f32 %v2173_v19, %v1643_v25  ;;  %v2244_v31 = vmul.f32 %v1643_v25, %v1643_v25  ;;  %v1646_v32 = vadd.f32 %v1645_v28, %v1356_v27  ;;  %v1647_v33 = vpop.f32.mrb[31].mxu0 }
 0x157   : > { %v2307_v34 = vadd.f32 %v2306_v21, %v2244_v31  ;;  %v2824_v35 = vpack.c.bf16 %v1646_v32, %v1643_v25  ;;  %v2175_v36 = vadd.f32 %v2174_v30, %v1646_v32  ;;  %v2245_v37 = vmul.f32 %v1646_v32, %v1646_v32 }
 0x159   : > { %2952 = vst [vmem:[%s3610_s22 + $0x38] sm:$0xff] %v2824_v35   ;;  %v2308_v38 = vadd.f32 %v2307_v34, %v2245_v37 }
 0x15a   : > { %v1361_v39 = vpop.f32.mrb[32].mxu1  ;;  %v1650_v40 = vpop.f32.mrb[32].mxu0 }
 0x15b   : > { %v1363_v41 = vpop.f32.mrb[33].mxu1  ;;  %v1651_v42 = vadd.f32 %v1650_v40, %v1361_v39  ;;  %v1652_v43 = vpop.f32.mrb[33].mxu0 }
 0x15c   : > { %v1364_v44 = vpop.f32.mrb[34].mxu1  ;;  %v1653_v45 = vpop.f32.mrb[34].mxu0 }
 0x15d   : > { %v1366_v46 = vpop.f32.mrb[35].mxu1  ;;  %v2176_v47 = vadd.f32 %v2175_v36, %v1651_v42  ;;  %v2246_v48 = vmul.f32 %v1651_v42, %v1651_v42  ;;  %v1654_v49 = vadd.f32 %v1653_v45, %v1364_v44  ;;  %v1655_v50 = vpop.f32.mrb[35].mxu0 }
 0x15f   : > { %v2309_v51 = vadd.f32 %v2308_v38, %v2246_v48  ;;  %v2829_v52 = vpack.c.bf16 %v1654_v49, %v1651_v42  ;;  %v2177_v53 = vadd.f32 %v2176_v47, %v1654_v49  ;;  %v2247_v54 = vmul.f32 %v1654_v49, %v1654_v49 }
 0x161   : > { %2953 = vst [vmem:[%s3610_s22 + $0x40] sm:$0xff] %v2829_v52   ;;  %v2310_v55 = vadd.f32 %v2309_v51, %v2247_v54 }
 0x162   : > { %v1369_v56 = vpop.f32.mrb[36].mxu1  ;;  %v1658_v57 = vpop.f32.mrb[36].mxu0 }
 0x163   : > { %v1371_v58 = vpop.f32.mrb[37].mxu1  ;;  %v1659_v59 = vadd.f32 %v1658_v57, %v1369_v56  ;;  %v1660_v60 = vpop.f32.mrb[37].mxu0 }
 0x164   : > { %v1372_v61 = vpop.f32.mrb[38].mxu1  ;;  %v1661_v62 = vpop.f32.mrb[38].mxu0 }
 0x165   : > { %v1374_v63 = vpop.f32.mrb[39].mxu1  ;;  %v2178_v0 = vadd.f32 %v2177_v53, %v1659_v59  ;;  %v2248_v1 = vmul.f32 %v1659_v59, %v1659_v59  ;;  %v1662_v2 = vadd.f32 %v1661_v62, %v1372_v61  ;;  %v1663_v3 = vpop.f32.mrb[39].mxu0 }
 0x167   : > { %v2311_v4 = vadd.f32 %v2310_v55, %v2248_v1  ;;  %v2834_v5 = vpack.c.bf16 %v1662_v2, %v1659_v59  ;;  %v2179_v6 = vadd.f32 %v2178_v0, %v1662_v2  ;;  %v2249_v7 = vmul.f32 %v1662_v2, %v1662_v2 }
 0x169   : > { %2954 = vst [vmem:[%s3610_s22 + $0x48] sm:$0xff] %v2834_v5   ;;  %v2312_v8 = vadd.f32 %v2311_v4, %v2249_v7 }
 0x16a   : > { %v1377_v9 = vpop.f32.mrb[40].mxu1  ;;  %v1666_v10 = vpop.f32.mrb[40].mxu0 }
 0x16b   : > { %v1379_v11 = vpop.f32.mrb[41].mxu1  ;;  %v1667_v12 = vadd.f32 %v1666_v10, %v1377_v9  ;;  %v1668_v13 = vpop.f32.mrb[41].mxu0 }
 0x16c   : > { %v1380_v14 = vpop.f32.mrb[42].mxu1  ;;  %v1669_v15 = vpop.f32.mrb[42].mxu0 }
 0x16d   : > { %v1382_v16 = vpop.f32.mrb[43].mxu1  ;;  %v2180_v17 = vadd.f32 %v2179_v6, %v1667_v12  ;;  %v2250_v18 = vmul.f32 %v1667_v12, %v1667_v12  ;;  %v1670_v19 = vadd.f32 %v1669_v15, %v1380_v14  ;;  %v1671_v20 = vpop.f32.mrb[43].mxu0 }
 0x16f   : > { %v2313_v21 = vadd.f32 %v2312_v8, %v2250_v18  ;;  %v2839_v22 = vpack.c.bf16 %v1670_v19, %v1667_v12  ;;  %v2181_v23 = vadd.f32 %v2180_v17, %v1670_v19  ;;  %v2251_v24 = vmul.f32 %v1670_v19, %v1670_v19 }
 0x171   : > { %2955 = vst [vmem:[%s3610_s22 + $0x50] sm:$0xff] %v2839_v22   ;;  %v2314_v25 = vadd.f32 %v2313_v21, %v2251_v24 }
 0x172   : > { %v1385_v26 = vpop.f32.mrb[44].mxu1  ;;  %v1674_v27 = vpop.f32.mrb[44].mxu0 }
 0x173   : > { %v1387_v28 = vpop.f32.mrb[45].mxu1  ;;  %v1675_v29 = vadd.f32 %v1674_v27, %v1385_v26  ;;  %v1676_v30 = vpop.f32.mrb[45].mxu0 }
 0x174   : > { %v1388_v31 = vpop.f32.mrb[46].mxu1  ;;  %v1677_v32 = vpop.f32.mrb[46].mxu0 }
 0x175   : > { %v1390_v33 = vpop.f32.mrb[47].mxu1  ;;  %v2182_v34 = vadd.f32 %v2181_v23, %v1675_v29  ;;  %v2252_v35 = vmul.f32 %v1675_v29, %v1675_v29  ;;  %v1678_v36 = vadd.f32 %v1677_v32, %v1388_v31  ;;  %v1679_v37 = vpop.f32.mrb[47].mxu0 }
 0x177   : > { %v2315_v38 = vadd.f32 %v2314_v25, %v2252_v35  ;;  %v2844_v39 = vpack.c.bf16 %v1678_v36, %v1675_v29  ;;  %v2183_v40 = vadd.f32 %v2182_v34, %v1678_v36  ;;  %v2253_v41 = vmul.f32 %v1678_v36, %v1678_v36 }
 0x179   : > { %2956 = vst [vmem:[%s3610_s22 + $0x58] sm:$0xff] %v2844_v39   ;;  %v2316_v42 = vadd.f32 %v2315_v38, %v2253_v41 }
 0x17a   : > { %v1393_v43 = vpop.f32.mrb[48].mxu1  ;;  %v1682_v44 = vpop.f32.mrb[48].mxu0 }
 0x17b   : > { %v1395_v45 = vpop.f32.mrb[49].mxu1  ;;  %v1683_v46 = vadd.f32 %v1682_v44, %v1393_v43  ;;  %v1684_v47 = vpop.f32.mrb[49].mxu0 }
 0x17c   : > { %v1396_v48 = vpop.f32.mrb[50].mxu1  ;;  %v1685_v49 = vpop.f32.mrb[50].mxu0 }
 0x17d   : > { %v1398_v50 = vpop.f32.mrb[51].mxu1  ;;  %v2184_v51 = vadd.f32 %v2183_v40, %v1683_v46  ;;  %v2254_v52 = vmul.f32 %v1683_v46, %v1683_v46  ;;  %v1686_v53 = vadd.f32 %v1685_v49, %v1396_v48  ;;  %v1687_v54 = vpop.f32.mrb[51].mxu0 }
 0x17f   : > { %v2317_v55 = vadd.f32 %v2316_v42, %v2254_v52  ;;  %v2849_v56 = vpack.c.bf16 %v1686_v53, %v1683_v46  ;;  %v2185_v57 = vadd.f32 %v2184_v51, %v1686_v53  ;;  %v2255_v58 = vmul.f32 %v1686_v53, %v1686_v53 }
 0x181   : > { %2957 = vst [vmem:[%s3610_s22 + $0x60] sm:$0xff] %v2849_v56   ;;  %v2318_v59 = vadd.f32 %v2317_v55, %v2255_v58 }
 0x182   : > { %v1401_v60 = vpop.f32.mrb[52].mxu1  ;;  %v1690_v61 = vpop.f32.mrb[52].mxu0 }
 0x183   : > { %v1403_v62 = vpop.f32.mrb[53].mxu1  ;;  %v1691_v63 = vadd.f32 %v1690_v61, %v1401_v60  ;;  %v1692_v0 = vpop.f32.mrb[53].mxu0 }
 0x184   : > { %v1404_v1 = vpop.f32.mrb[54].mxu1  ;;  %v1693_v2 = vpop.f32.mrb[54].mxu0 }
 0x185   : > { %v1406_v3 = vpop.f32.mrb[55].mxu1  ;;  %v2186_v4 = vadd.f32 %v2185_v57, %v1691_v63  ;;  %v2256_v5 = vmul.f32 %v1691_v63, %v1691_v63  ;;  %v1694_v6 = vadd.f32 %v1693_v2, %v1404_v1  ;;  %v1695_v7 = vpop.f32.mrb[55].mxu0 }
 0x187   : > { %v2319_v8 = vadd.f32 %v2318_v59, %v2256_v5  ;;  %v2854_v9 = vpack.c.bf16 %v1694_v6, %v1691_v63  ;;  %v2187_v10 = vadd.f32 %v2186_v4, %v1694_v6  ;;  %v2257_v11 = vmul.f32 %v1694_v6, %v1694_v6 }
 0x189   : > { %2958 = vst [vmem:[%s3610_s22 + $0x68] sm:$0xff] %v2854_v9   ;;  %v2320_v12 = vadd.f32 %v2319_v8, %v2257_v11 }
 0x18a   : > { %v1409_v13 = vpop.f32.mrb[56].mxu1  ;;  %v1698_v14 = vpop.f32.mrb[56].mxu0 }
 0x18b   : > { %v1411_v15 = vpop.f32.mrb[57].mxu1  ;;  %v1699_v16 = vadd.f32 %v1698_v14, %v1409_v13  ;;  %v1700_v17 = vpop.f32.mrb[57].mxu0 }
 0x18c   : > { %v1412_v18 = vpop.f32.mrb[58].mxu1  ;;  %v1701_v19 = vpop.f32.mrb[58].mxu0 }
 0x18d   : > { %v1414_v20 = vpop.f32.mrb[59].mxu1  ;;  %v2188_v21 = vadd.f32 %v2187_v10, %v1699_v16  ;;  %v2258_v22 = vmul.f32 %v1699_v16, %v1699_v16  ;;  %v1702_v23 = vadd.f32 %v1701_v19, %v1412_v18  ;;  %v1703_v24 = vpop.f32.mrb[59].mxu0 }
 0x18f   : > { %v2321_v25 = vadd.f32 %v2320_v12, %v2258_v22  ;;  %v2859_v26 = vpack.c.bf16 %v1702_v23, %v1699_v16  ;;  %v2189_v27 = vadd.f32 %v2188_v21, %v1702_v23  ;;  %v2259_v28 = vmul.f32 %v1702_v23, %v1702_v23 }
 0x191   : > { %2959 = vst [vmem:[%s3610_s22 + $0x70] sm:$0xff] %v2859_v26   ;;  %v2322_v29 = vadd.f32 %v2321_v25, %v2259_v28 }
 0x192   : > { %v1417_v30 = vpop.f32.mrb[60].mxu1  ;;  %v1706_v31 = vpop.f32.mrb[60].mxu0 }
 0x193   : > { %v1419_v32 = vpop.f32.mrb[61].mxu1  ;;  %v1707_v33 = vadd.f32 %v1706_v31, %v1417_v30  ;;  %v1708_v34 = vpop.f32.mrb[61].mxu0 }
 0x194   : > { %v1420_v35 = vpop.f32.mrb[62].mxu1  ;;  %v1709_v36 = vpop.f32.mrb[62].mxu0 }
 0x195   : > { %v1422_v37 = vpop.f32.mrb[63].mxu1  ;;  %v2190_v38 = vadd.f32 %v2189_v27, %v1707_v33  ;;  %v2260_v39 = vmul.f32 %v1707_v33, %v1707_v33  ;;  %v1710_v40 = vadd.f32 %v1709_v36, %v1420_v35  ;;  %v1711_v41 = vpop.f32.mrb[63].mxu0 }
 0x197   : > { %v2323_v42 = vadd.f32 %v2322_v29, %v2260_v39  ;;  %v2864_v43 = vpack.c.bf16 %v1710_v40, %v1707_v33  ;;  %v2191_v44 = vadd.f32 %v2190_v38, %v1710_v40  ;;  %v2261_v45 = vmul.f32 %v1710_v40, %v1710_v40 }
 0x199   : > { %2960 = vst [vmem:[%s3610_s22 + $0x78] sm:$0xff] %v2864_v43   ;;  %v2324_v46 = vadd.f32 %v2323_v42, %v2261_v45 }
 0x19a   : > { %v1425_v47 = vpop.f32.mrb[64].mxu1  ;;  %v1714_v48 = vpop.f32.mrb[64].mxu0 }
 0x19b   : > { %v1427_v49 = vpop.f32.mrb[65].mxu1  ;;  %v1715_v50 = vadd.f32 %v1714_v48, %v1425_v47  ;;  %v1716_v51 = vpop.f32.mrb[65].mxu0 }
 0x19c   : > { %v1428_v52 = vpop.f32.mrb[66].mxu1  ;;  %v1717_v53 = vpop.f32.mrb[66].mxu0 }
 0x19d   : > { %v1430_v54 = vpop.f32.mrb[67].mxu1  ;;  %v2192_v55 = vadd.f32 %v2191_v44, %v1715_v50  ;;  %v2262_v56 = vmul.f32 %v1715_v50, %v1715_v50  ;;  %v1718_v57 = vadd.f32 %v1717_v53, %v1428_v52  ;;  %v1719_v58 = vpop.f32.mrb[67].mxu0 }
 0x19f   : > { %v2325_v59 = vadd.f32 %v2324_v46, %v2262_v56  ;;  %v2869_v60 = vpack.c.bf16 %v1718_v57, %v1715_v50  ;;  %v2193_v61 = vadd.f32 %v2192_v55, %v1718_v57  ;;  %v2263_v62 = vmul.f32 %v1718_v57, %v1718_v57 }
 0x1a1   : > { %2961 = vst [vmem:[%s3610_s22 + $0x80] sm:$0xff] %v2869_v60   ;;  %v2326_v63 = vadd.f32 %v2325_v59, %v2263_v62 }
 0x1a2   : > { %v1433_v0 = vpop.f32.mrb[68].mxu1  ;;  %v1722_v1 = vpop.f32.mrb[68].mxu0 }
 0x1a3   : > { %v1435_v2 = vpop.f32.mrb[69].mxu1  ;;  %v1723_v3 = vadd.f32 %v1722_v1, %v1433_v0  ;;  %v1724_v4 = vpop.f32.mrb[69].mxu0 }
 0x1a4   : > { %v1436_v5 = vpop.f32.mrb[70].mxu1  ;;  %v1725_v6 = vpop.f32.mrb[70].mxu0 }
 0x1a5   : > { %v1438_v7 = vpop.f32.mrb[71].mxu1  ;;  %v2194_v8 = vadd.f32 %v2193_v61, %v1723_v3  ;;  %v2264_v9 = vmul.f32 %v1723_v3, %v1723_v3  ;;  %v1726_v10 = vadd.f32 %v1725_v6, %v1436_v5  ;;  %v1727_v11 = vpop.f32.mrb[71].mxu0 }
 0x1a7   : > { %v2327_v12 = vadd.f32 %v2326_v63, %v2264_v9  ;;  %v2874_v13 = vpack.c.bf16 %v1726_v10, %v1723_v3  ;;  %v2195_v14 = vadd.f32 %v2194_v8, %v1726_v10  ;;  %v2265_v15 = vmul.f32 %v1726_v10, %v1726_v10 }
 0x1a9   : > { %2962 = vst [vmem:[%s3610_s22 + $0x88] sm:$0xff] %v2874_v13   ;;  %v2328_v16 = vadd.f32 %v2327_v12, %v2265_v15 }
 0x1aa   : > { %v1441_v17 = vpop.f32.mrb[72].mxu1  ;;  %v1730_v18 = vpop.f32.mrb[72].mxu0 }
 0x1ab   : > { %v1443_v19 = vpop.f32.mrb[73].mxu1  ;;  %v1731_v20 = vadd.f32 %v1730_v18, %v1441_v17  ;;  %v1732_v21 = vpop.f32.mrb[73].mxu0 }
 0x1ac   : > { %v1444_v22 = vpop.f32.mrb[74].mxu1  ;;  %v1733_v23 = vpop.f32.mrb[74].mxu0 }
 0x1ad   : > { %v1446_v24 = vpop.f32.mrb[75].mxu1  ;;  %v2196_v25 = vadd.f32 %v2195_v14, %v1731_v20  ;;  %v2266_v26 = vmul.f32 %v1731_v20, %v1731_v20  ;;  %v1734_v27 = vadd.f32 %v1733_v23, %v1444_v22  ;;  %v1735_v28 = vpop.f32.mrb[75].mxu0 }
 0x1af   : > { %v2329_v29 = vadd.f32 %v2328_v16, %v2266_v26  ;;  %v2879_v30 = vpack.c.bf16 %v1734_v27, %v1731_v20  ;;  %v2197_v31 = vadd.f32 %v2196_v25, %v1734_v27  ;;  %v2267_v32 = vmul.f32 %v1734_v27, %v1734_v27 }
 0x1b1   : > { %2963 = vst [vmem:[%s3610_s22 + $0x90] sm:$0xff] %v2879_v30   ;;  %v2330_v33 = vadd.f32 %v2329_v29, %v2267_v32 }
 0x1b2   : > { %v1449_v34 = vpop.f32.mrb[76].mxu1  ;;  %v1738_v35 = vpop.f32.mrb[76].mxu0 }
 0x1b3   : > { %v1451_v36 = vpop.f32.mrb[77].mxu1  ;;  %v1739_v37 = vadd.f32 %v1738_v35, %v1449_v34  ;;  %v1740_v38 = vpop.f32.mrb[77].mxu0 }
 0x1b4   : > { %v1452_v39 = vpop.f32.mrb[78].mxu1  ;;  %v1741_v40 = vpop.f32.mrb[78].mxu0 }
 0x1b5   : > { %v1454_v41 = vpop.f32.mrb[79].mxu1  ;;  %v2198_v42 = vadd.f32 %v2197_v31, %v1739_v37  ;;  %v2268_v43 = vmul.f32 %v1739_v37, %v1739_v37  ;;  %v1742_v44 = vadd.f32 %v1741_v40, %v1452_v39  ;;  %v1743_v45 = vpop.f32.mrb[79].mxu0 }
 0x1b7   : > { %v2331_v46 = vadd.f32 %v2330_v33, %v2268_v43  ;;  %v2884_v47 = vpack.c.bf16 %v1742_v44, %v1739_v37  ;;  %v2199_v48 = vadd.f32 %v2198_v42, %v1742_v44  ;;  %v2269_v49 = vmul.f32 %v1742_v44, %v1742_v44 }
 0x1b9   : > { %2964 = vst [vmem:[%s3610_s22 + $0x98] sm:$0xff] %v2884_v47   ;;  %v2332_v50 = vadd.f32 %v2331_v46, %v2269_v49 }
 0x1ba   : > { %v1457_v51 = vpop.f32.mrb[80].mxu1  ;;  %v1746_v52 = vpop.f32.mrb[80].mxu0 }
 0x1bb   : > { %v1459_v53 = vpop.f32.mrb[81].mxu1  ;;  %v1747_v54 = vadd.f32 %v1746_v52, %v1457_v51  ;;  %v1748_v55 = vpop.f32.mrb[81].mxu0 }
 0x1bc   : > { %v1460_v56 = vpop.f32.mrb[82].mxu1  ;;  %v1749_v57 = vpop.f32.mrb[82].mxu0 }
 0x1bd   : > { %v1462_v58 = vpop.f32.mrb[83].mxu1  ;;  %v2200_v59 = vadd.f32 %v2199_v48, %v1747_v54  ;;  %v2270_v60 = vmul.f32 %v1747_v54, %v1747_v54  ;;  %v1750_v61 = vadd.f32 %v1749_v57, %v1460_v56  ;;  %v1751_v62 = vpop.f32.mrb[83].mxu0 }
 0x1bf   : > { %v2333_v63 = vadd.f32 %v2332_v50, %v2270_v60  ;;  %v2889_v0 = vpack.c.bf16 %v1750_v61, %v1747_v54  ;;  %v2201_v1 = vadd.f32 %v2200_v59, %v1750_v61  ;;  %v2271_v2 = vmul.f32 %v1750_v61, %v1750_v61 }
 0x1c1   : > { %2965 = vst [vmem:[%s3610_s22 + $0xa0] sm:$0xff] %v2889_v0   ;;  %v2334_v3 = vadd.f32 %v2333_v63, %v2271_v2 }
 0x1c2   : > { %v1465_v4 = vpop.f32.mrb[84].mxu1  ;;  %v1754_v5 = vpop.f32.mrb[84].mxu0 }
 0x1c3   : > { %v1467_v6 = vpop.f32.mrb[85].mxu1  ;;  %v1755_v7 = vadd.f32 %v1754_v5, %v1465_v4  ;;  %v1756_v8 = vpop.f32.mrb[85].mxu0 }
 0x1c4   : > { %v1468_v9 = vpop.f32.mrb[86].mxu1  ;;  %v1757_v10 = vpop.f32.mrb[86].mxu0 }
 0x1c5   : > { %v1470_v11 = vpop.f32.mrb[87].mxu1  ;;  %v2202_v12 = vadd.f32 %v2201_v1, %v1755_v7  ;;  %v2272_v13 = vmul.f32 %v1755_v7, %v1755_v7  ;;  %v1758_v14 = vadd.f32 %v1757_v10, %v1468_v9  ;;  %v1759_v15 = vpop.f32.mrb[87].mxu0 }
 0x1c7   : > { %v2335_v16 = vadd.f32 %v2334_v3, %v2272_v13  ;;  %v2894_v17 = vpack.c.bf16 %v1758_v14, %v1755_v7  ;;  %v2203_v18 = vadd.f32 %v2202_v12, %v1758_v14  ;;  %v2273_v19 = vmul.f32 %v1758_v14, %v1758_v14 }
 0x1c9   : > { %2966 = vst [vmem:[%s3610_s22 + $0xa8] sm:$0xff] %v2894_v17   ;;  %v2336_v20 = vadd.f32 %v2335_v16, %v2273_v19 }
 0x1ca   : > { %v1473_v21 = vpop.f32.mrb[88].mxu1  ;;  %v1762_v22 = vpop.f32.mrb[88].mxu0 }
 0x1cb   : > { %v1475_v23 = vpop.f32.mrb[89].mxu1  ;;  %v1763_v24 = vadd.f32 %v1762_v22, %v1473_v21  ;;  %v1764_v25 = vpop.f32.mrb[89].mxu0 }
 0x1cc   : > { %v1476_v26 = vpop.f32.mrb[90].mxu1  ;;  %v1765_v27 = vpop.f32.mrb[90].mxu0 }
 0x1cd   : > { %v1478_v28 = vpop.f32.mrb[91].mxu1  ;;  %v2204_v29 = vadd.f32 %v2203_v18, %v1763_v24  ;;  %v2274_v30 = vmul.f32 %v1763_v24, %v1763_v24  ;;  %v1766_v31 = vadd.f32 %v1765_v27, %v1476_v26  ;;  %v1767_v32 = vpop.f32.mrb[91].mxu0 }
 0x1cf   : > { %v2337_v33 = vadd.f32 %v2336_v20, %v2274_v30  ;;  %v2899_v34 = vpack.c.bf16 %v1766_v31, %v1763_v24  ;;  %v2205_v35 = vadd.f32 %v2204_v29, %v1766_v31  ;;  %v2275_v36 = vmul.f32 %v1766_v31, %v1766_v31 }
 0x1d1   : > { %2967 = vst [vmem:[%s3610_s22 + $0xb0] sm:$0xff] %v2899_v34   ;;  %v2338_v37 = vadd.f32 %v2337_v33, %v2275_v36 }
 0x1d2   : > { %v1481_v38 = vpop.f32.mrb[92].mxu1  ;;  %v1770_v39 = vpop.f32.mrb[92].mxu0 }
 0x1d3   : > { %v1483_v40 = vpop.f32.mrb[93].mxu1  ;;  %v1771_v41 = vadd.f32 %v1770_v39, %v1481_v38  ;;  %v1772_v42 = vpop.f32.mrb[93].mxu0 }
 0x1d4   : > { %v1484_v43 = vpop.f32.mrb[94].mxu1  ;;  %v1773_v44 = vpop.f32.mrb[94].mxu0 }
 0x1d5   : > { %v1486_v45 = vpop.f32.mrb[95].mxu1  ;;  %v2206_v46 = vadd.f32 %v2205_v35, %v1771_v41  ;;  %v2276_v47 = vmul.f32 %v1771_v41, %v1771_v41  ;;  %v1774_v48 = vadd.f32 %v1773_v44, %v1484_v43  ;;  %v1775_v49 = vpop.f32.mrb[95].mxu0 }
 0x1d7   : > { %v2339_v50 = vadd.f32 %v2338_v37, %v2276_v47  ;;  %v2904_v51 = vpack.c.bf16 %v1774_v48, %v1771_v41  ;;  %v2207_v52 = vadd.f32 %v2206_v46, %v1774_v48  ;;  %v2277_v53 = vmul.f32 %v1774_v48, %v1774_v48 }
 0x1d9   : > { %2968 = vst [vmem:[%s3610_s22 + $0xb8] sm:$0xff] %v2904_v51   ;;  %v2340_v54 = vadd.f32 %v2339_v50, %v2277_v53 }
 0x1da   : > { %v1489_v55 = vpop.f32.mrb[96].mxu1  ;;  %v1778_v56 = vpop.f32.mrb[96].mxu0 }
 0x1db   : > { %v1491_v57 = vpop.f32.mrb[97].mxu1  ;;  %v1779_v58 = vadd.f32 %v1778_v56, %v1489_v55  ;;  %v1780_v59 = vpop.f32.mrb[97].mxu0 }
 0x1dc   : > { %v1492_v60 = vpop.f32.mrb[98].mxu1  ;;  %v1781_v61 = vpop.f32.mrb[98].mxu0 }
 0x1dd   : > { %v1494_v62 = vpop.f32.mrb[99].mxu1  ;;  %v2208_v63 = vadd.f32 %v2207_v52, %v1779_v58  ;;  %v2278_v0 = vmul.f32 %v1779_v58, %v1779_v58  ;;  %v1782_v1 = vadd.f32 %v1781_v61, %v1492_v60  ;;  %v1783_v2 = vpop.f32.mrb[99].mxu0 }
 0x1df   : > { %v2341_v3 = vadd.f32 %v2340_v54, %v2278_v0  ;;  %v2909_v4 = vpack.c.bf16 %v1782_v1, %v1779_v58  ;;  %v2209_v5 = vadd.f32 %v2208_v63, %v1782_v1  ;;  %v2279_v6 = vmul.f32 %v1782_v1, %v1782_v1 }
 0x1e1   : > { %2969 = vst [vmem:[%s3610_s22 + $0xc0] sm:$0xff] %v2909_v4   ;;  %v2342_v7 = vadd.f32 %v2341_v3, %v2279_v6 }
 0x1e2   : > { %v1497_v8 = vpop.f32.mrb[100].mxu1  ;;  %v1786_v9 = vpop.f32.mrb[100].mxu0 }
 0x1e3   : > { %v1499_v10 = vpop.f32.mrb[101].mxu1  ;;  %v1787_v11 = vadd.f32 %v1786_v9, %v1497_v8  ;;  %v1788_v12 = vpop.f32.mrb[101].mxu0 }
 0x1e4   : > { %v1500_v13 = vpop.f32.mrb[102].mxu1  ;;  %v1789_v14 = vpop.f32.mrb[102].mxu0 }
 0x1e5   : > { %v1502_v15 = vpop.f32.mrb[103].mxu1  ;;  %v2210_v16 = vadd.f32 %v2209_v5, %v1787_v11  ;;  %v2280_v17 = vmul.f32 %v1787_v11, %v1787_v11  ;;  %v1790_v18 = vadd.f32 %v1789_v14, %v1500_v13  ;;  %v1791_v19 = vpop.f32.mrb[103].mxu0 }
 0x1e7   : > { %v2343_v20 = vadd.f32 %v2342_v7, %v2280_v17  ;;  %v2914_v21 = vpack.c.bf16 %v1790_v18, %v1787_v11  ;;  %v2211_v22 = vadd.f32 %v2210_v16, %v1790_v18  ;;  %v2281_v23 = vmul.f32 %v1790_v18, %v1790_v18 }
 0x1e9   : > { %2970 = vst [vmem:[%s3610_s22 + $0xc8] sm:$0xff] %v2914_v21   ;;  %v2344_v24 = vadd.f32 %v2343_v20, %v2281_v23 }
 0x1ea   : > { %v1505_v25 = vpop.f32.mrb[104].mxu1  ;;  %v1794_v26 = vpop.f32.mrb[104].mxu0 }
 0x1eb   : > { %v1507_v27 = vpop.f32.mrb[105].mxu1  ;;  %v1795_v28 = vadd.f32 %v1794_v26, %v1505_v25  ;;  %v1796_v29 = vpop.f32.mrb[105].mxu0 }
 0x1ec   : > { %v1508_v30 = vpop.f32.mrb[106].mxu1  ;;  %v1797_v31 = vpop.f32.mrb[106].mxu0 }
 0x1ed   : > { %v1510_v32 = vpop.f32.mrb[107].mxu1  ;;  %v2212_v33 = vadd.f32 %v2211_v22, %v1795_v28  ;;  %v2282_v34 = vmul.f32 %v1795_v28, %v1795_v28  ;;  %v1798_v35 = vadd.f32 %v1797_v31, %v1508_v30  ;;  %v1799_v36 = vpop.f32.mrb[107].mxu0 }
 0x1ef   : > { %v2345_v37 = vadd.f32 %v2344_v24, %v2282_v34  ;;  %v2919_v38 = vpack.c.bf16 %v1798_v35, %v1795_v28  ;;  %v2213_v39 = vadd.f32 %v2212_v33, %v1798_v35  ;;  %v2283_v40 = vmul.f32 %v1798_v35, %v1798_v35 }
 0x1f1   : > { %2971 = vst [vmem:[%s3610_s22 + $0xd0] sm:$0xff] %v2919_v38   ;;  %v2346_v41 = vadd.f32 %v2345_v37, %v2283_v40 }
 0x1f2   : > { %v1513_v42 = vpop.f32.mrb[108].mxu1  ;;  %v1802_v43 = vpop.f32.mrb[108].mxu0 }
 0x1f3   : > { %v1515_v44 = vpop.f32.mrb[109].mxu1  ;;  %v1803_v45 = vadd.f32 %v1802_v43, %v1513_v42  ;;  %v1804_v46 = vpop.f32.mrb[109].mxu0 }
 0x1f4   : > { %v1516_v47 = vpop.f32.mrb[110].mxu1  ;;  %v1805_v48 = vpop.f32.mrb[110].mxu0 }
 0x1f5   : > { %v1518_v49 = vpop.f32.mrb[111].mxu1  ;;  %v2214_v50 = vadd.f32 %v2213_v39, %v1803_v45  ;;  %v2284_v51 = vmul.f32 %v1803_v45, %v1803_v45  ;;  %v1806_v52 = vadd.f32 %v1805_v48, %v1516_v47  ;;  %v1807_v53 = vpop.f32.mrb[111].mxu0 }
 0x1f7   : > { %v2347_v54 = vadd.f32 %v2346_v41, %v2284_v51  ;;  %v2924_v55 = vpack.c.bf16 %v1806_v52, %v1803_v45  ;;  %v2215_v56 = vadd.f32 %v2214_v50, %v1806_v52  ;;  %v2285_v57 = vmul.f32 %v1806_v52, %v1806_v52 }
 0x1f9   : > { %2972 = vst [vmem:[%s3610_s22 + $0xd8] sm:$0xff] %v2924_v55   ;;  %v2348_v58 = vadd.f32 %v2347_v54, %v2285_v57 }
 0x1fa   : > { %v1521_v59 = vpop.f32.mrb[112].mxu1 }
 0x1fb   : > { %v1810_v60 = vpop.f32.mrb[112].mxu0  ;;  %v1523_v61 = vpop.f32.mrb[113].mxu1 }
 0x1fc   : > { %v1811_v62 = vadd.f32 %v1810_v60, %v1521_v59  ;;  %v1812_v63 = vpop.f32.mrb[113].mxu0  ;;  %v1524_v0 = vpop.f32.mrb[114].mxu1 }
 0x1fd   : > { %v1813_v1 = vpop.f32.mrb[114].mxu0  ;;  %v1526_v2 = vpop.f32.mrb[115].mxu1 }
 0x1fe   : > { %v2216_v3 = vadd.f32 %v2215_v56, %v1811_v62  ;;  %v2286_v4 = vmul.f32 %v1811_v62, %v1811_v62  ;;  %v1814_v5 = vadd.f32 %v1813_v1, %v1524_v0  ;;  %v1815_v6 = vpop.f32.mrb[115].mxu0 }
 0x200   : > { %v2349_v7 = vadd.f32 %v2348_v58, %v2286_v4  ;;  %v2929_v8 = vpack.c.bf16 %v1814_v5, %v1811_v62  ;;  %v2217_v9 = vadd.f32 %v2216_v3, %v1814_v5  ;;  %v2287_v10 = vmul.f32 %v1814_v5, %v1814_v5 }
 0x202   : > { %2973 = vst [vmem:[%s3610_s22 + $0xe0] sm:$0xff] %v2929_v8   ;;  %v2350_v11 = vadd.f32 %v2349_v7, %v2287_v10  ;;  %v1529_v12 = vpop.f32.mrb[116].mxu1 }
 0x203   : > { %v1818_v13 = vpop.f32.mrb[116].mxu0  ;;  %v1531_v14 = vpop.f32.mrb[117].mxu1 }
 0x204   : > { %v1819_v15 = vadd.f32 %v1818_v13, %v1529_v12  ;;  %v1820_v16 = vpop.f32.mrb[117].mxu0  ;;  %v1532_v17 = vpop.f32.mrb[118].mxu1 }
 0x205   : > { %v1821_v18 = vpop.f32.mrb[118].mxu0  ;;  %v1534_v19 = vpop.f32.mrb[119].mxu1 }
 0x206   : > { %v2218_v20 = vadd.f32 %v2217_v9, %v1819_v15  ;;  %v2288_v21 = vmul.f32 %v1819_v15, %v1819_v15  ;;  %v1822_v22 = vadd.f32 %v1821_v18, %v1532_v17  ;;  %v1823_v23 = vpop.f32.mrb[119].mxu0 }
 0x208   : > { %v2351_v24 = vadd.f32 %v2350_v11, %v2288_v21  ;;  %v2934_v25 = vpack.c.bf16 %v1822_v22, %v1819_v15  ;;  %v2219_v26 = vadd.f32 %v2218_v20, %v1822_v22  ;;  %v2289_v27 = vmul.f32 %v1822_v22, %v1822_v22 }
 0x20a   : > { %2974 = vst [vmem:[%s3610_s22 + $0xe8] sm:$0xff] %v2934_v25   ;;  %v2352_v28 = vadd.f32 %v2351_v24, %v2289_v27  ;;  %v1537_v29 = vpop.f32.mrb[120].mxu1 }
 0x20b   : > { %v1826_v30 = vpop.f32.mrb[120].mxu0  ;;  %v1539_v31 = vpop.f32.mrb[121].mxu1 }
 0x20c   : > { %v1827_v32 = vadd.f32 %v1826_v30, %v1537_v29  ;;  %v1828_v33 = vpop.f32.mrb[121].mxu0  ;;  %v1540_v34 = vpop.f32.mrb[122].mxu1 }
 0x20d   : > { %v1829_v35 = vpop.f32.mrb[122].mxu0  ;;  %v1542_v36 = vpop.f32.mrb[123].mxu1 }
 0x20e   : > { %v2220_v37 = vadd.f32 %v2219_v26, %v1827_v32  ;;  %v2290_v38 = vmul.f32 %v1827_v32, %v1827_v32  ;;  %v1830_v39 = vadd.f32 %v1829_v35, %v1540_v34  ;;  %v1831_v40 = vpop.f32.mrb[123].mxu0 }
 0x210   : > { %v2353_v41 = vadd.f32 %v2352_v28, %v2290_v38  ;;  %v2939_v42 = vpack.c.bf16 %v1830_v39, %v1827_v32  ;;  %v2221_v43 = vadd.f32 %v2220_v37, %v1830_v39  ;;  %v2291_v44 = vmul.f32 %v1830_v39, %v1830_v39 }
 0x212   : > { %2975 = vst [vmem:[%s3610_s22 + $0xf0] sm:$0xff] %v2939_v42   ;;  %v2354_v45 = vadd.f32 %v2353_v41, %v2291_v44  ;;  %v1545_v46 = vpop.f32.mrb[124].mxu1 }
 0x213   : > { %v1834_v47 = vpop.f32.mrb[124].mxu0  ;;  %v1547_v48 = vpop.f32.mrb[125].mxu1 }
 0x214   : > { %v1835_v49 = vadd.f32 %v1834_v47, %v1545_v46  ;;  %v1836_v50 = vpop.f32.mrb[125].mxu0  ;;  %v1548_v51 = vpop.f32.mrb[126].mxu1 }
 0x215   : > { %v1837_v52 = vpop.f32.mrb[126].mxu0  ;;  %v1550_v53 = vpop.f32.mrb[127].mxu1 }
 0x216   : > { %v2222_v54 = vadd.f32 %v2221_v43, %v1835_v49  ;;  %v2292_v55 = vmul.f32 %v1835_v49, %v1835_v49  ;;  %v1838_v56 = vadd.f32 %v1837_v52, %v1548_v51  ;;  %v1839_v57 = vpop.f32.mrb[127].mxu0 }
 0x218   : > { %v2355_v58 = vadd.f32 %v2354_v45, %v2292_v55  ;;  %v2944_v59 = vpack.c.bf16 %v1838_v56, %v1835_v49  ;;  %v2223_v60 = vadd.f32 %v2222_v54, %v1838_v56  ;;  %v2293_v61 = vmul.f32 %v1838_v56, %v1838_v56 }
 0x21a   : > { %2976 = vst [vmem:[%s3610_s22 + $0xf8] sm:$0xff] %v2944_v59   ;;  %v2224_v62 = vrot.slane %v2223_v60, 4  ;;  %v2356_v63 = vadd.f32 %v2355_v58, %v2293_v61 }
 0x21c   : > { %v2225_v0 = vadd.f32 %v2224_v62, %v2223_v60  ;;  %v2357_v1 = vrot.slane %v2356_v63, 4 }
 0x21e   : > { %v2226_v2 = vrot.slane %v2225_v0, 2  ;;  %v2358_v3 = vadd.f32 %v2357_v1, %v2356_v63 }
 0x220   : > { %v2227_v4 = vadd.f32 %v2226_v2, %v2225_v0  ;;  %v2359_v5 = vrot.slane %v2358_v3, 2 }
 0x222   : > { %v2228_v6 = vrot.slane %v2227_v4, 1  ;;  %v2360_v7 = vadd.f32 %v2359_v5, %v2358_v3 }
 0x224   : > { %v2361_v8 = vrot.slane %v2360_v7, 1  ;;  %v2229_v9 = vadd.f32 %v2228_v6, %v2227_v4 }
 0x226   : > { %v2362_v10 = vadd.f32 %v2361_v8, %v2360_v7 }
 0x228   : > { %v2364_v11 = vsel %vm2363_vm0, %v2229_v9, %v2362_v10 }
 0x229   : > { %2365 = vst [vmem:[%s237_s24] sm:$0x3] %v2364_v11 }
 0x22a PF: > { %s14_s14 = sadd.s32 1, %s3312_s14   ;;  %s3676_s12 = smov %s3308_s13 }
 0x22b   : > { %p11_p6 = scmp.ge.s32.totalorder %s14_s14, 4   ;;  %s3677_s13 = smov %s3679_s15 }
 0x22d   :  { %13 = sbr.rel (!%p11_p6) target bundleno = 2 (0x2), region = 73 }

// kernel: bottleneck_forward.11
= control target key start
LH: loop header
LB: loop body
LE: loop exit
PB: predicated region body
PF: predicated region fallthrough
CT: control target
= control target key end

     0   :  { %11 = vsyncpa [#allocation3], 0  ;;  %s2662_s0 = inlined_call_operand.vmem [shape: bf16[1024,128], index: 0, kind: input, shape index: {}]   ;;  %s2663_s1 = inlined_call_operand.vmem [shape: f32[1,128], index: 1, kind: input, shape index: {}]   ;;  %s2664_s2 = inlined_call_operand.vmem [shape: f32[1,128], index: 2, kind: input, shape index: {}]   ;;  %s2665_s3 = inlined_call_operand.vmem [shape: bf16[1024,128], index: 3, kind: input, shape index: {}]   ;;  %s2666_s4 = inlined_call_operand.vmem [shape: f32[1,128], index: 4, kind: input, shape index: {}]   ;;  %s2667_s5 = inlined_call_operand.vmem [shape: f32[1,128], index: 5, kind: input, shape index: {}]   ;;  %s2668_s6 = inlined_call_operand.hbm [shape: bf16[1024,128], index: 6, kind: output, shape index: {}]  }
   0x1   :  { %13 = vsyncpa [#allocation3 + $0x1], 0  ;;  %s2154_s21 = smov 0   ;;  %s2156_s22 = smov 0  }
   0x2   :  { %s2158_s23 = smov 0   ;;  %s2160_s24 = smov 0  }
   0x3 LB: > { %s2175_s25 = sadd.s32 4294967295, %s2114_s24   ;;  %s1351_s26 = sadd.s32 4294967294, %s2114_s24   ;;  %s2114_s24 = sphi %s2160_s24, %s2674_s24   ;;  %s2110_s23 = sphi %s2158_s23, %s2673_s23   ;;  %s2106_s22 = sphi %s2156_s22, %s2672_s22   ;;  %s2102_s21 = sphi %s2154_s21, %s2671_s21  }
   0x4   : > { %s2179_s27 = sadd.s32 1, %s2114_s24   ;;  %s162_s28 = sadd.s32 1, %s2110_s23 }
   0x5   : > { %s159_s29 = ssub.s32 %s2114_s24, %s2179_s27  ;;  %p172_p0 = scmp.ne.s32.totalorder %s2110_s23, %s2106_s22 }
   0x6   : > { %p160_p1 = scmp.eq.s32.totalorder %s159_s29, 0  ;;  %p173_p2 = scmp.eq.s32.totalorder %s2175_s25, 1 }
   0x7   : > { %p178_p3 = scmp.ne.s32.totalorder %s2106_s22, %s2102_s21  ;;  %p179_p4 = scmp.eq.s32.totalorder %s1351_s26, 1 }
   0x8   : > { %s2190_s30 = scalar_select %p160_p1, %s2110_s23, %s162_s28  }
   0x9   : > { %p2192_p5 = por %p173_p2, %p172_p0  ;;  %p2196_p6 = por %p179_p4, %p178_p3 }
   0xa   : > { %p1354_p7 = scmp.ge.s32.totalorder %s2114_s24, 1  ;;  %p227_p8 = scmp.lt.s32.totalorder %s2114_s24, 3 }
   0xc   : > { %p228_p9 = pnand %p1354_p7, %p227_p8 }
   0xd   : > { %s1356_s9 = sshll.u32 (!%p228_p9), %s2175_s25, 6  ;;  %v2216_v0 = vld [vmem:[%s2663_s1] ss:$0 sm:$0xff] (!%p228_p9)  ;;  %s2116_s15 = smov (!%p228_p9), [#allocation2]  }
   0xe   : > { %231 = sbr.rel (%p228_p9) target bundleno = 183 (0xb7), region = 44  ;;  %p263_p10 = scmp.lt.s32.totalorder (!%p228_p9), %s1356_s9, 127  ;;  %v2221_v1 = vld [vmem:[%s2666_s4] ss:$0 sm:$0xff] (!%p228_p9) }
   0xf   : > { %v2230_v10 = vld [vmem:[%s2664_s2] ss:$0 sm:$0xff] (!%p228_p9)  ;;  %s2056_s17 = sshll.u32 (!%p228_p9), %s2116_s15, 4  ;;  %s2057_s17 = int_to_ptr.vmem [resolvable:$false] %s2056_s17 }
  0x10   : > { %v2235_v11 = vld [vmem:[%s2667_s5] ss:$0 sm:$0xff] (!%p228_p9)  ;;  %s2058_s18 = scalar_lea.vmem (!%p228_p9), %s2057_s17, 8192 }
  0x15   : > { %s2676_s9 = smov (!%p263_p10, %s1356_s9), 127 }
  0x16   : > { %s1357_s10 = sshll.u32 %s2676_s9, 2 }
  0x17   : > { %s2206_s13 = scalar_lea.vmem %s2662_s0, %s1357_s10  ;;  %s2211_s16 = scalar_lea.vmem %s2665_s3, %s1357_s10 }
  0x18   : > { %v1499_v2 = vld [vmem:[%s2206_s13] sm:$0xff]   ;;  %v1914_v4 = vld [vmem:[%s2206_s13 + $0x8] sm:$0xff]   ;;  %s259_s10 = sand.u32 1, %s2106_s22   ;;  %v1915_v24 = vld [vmem:[%s2206_s13 + $0x10] sm:$0xff]  }
  0x19   : > { %v1627_v3 = vld [vmem:[%s2211_s16] sm:$0xff]   ;;  %v1500_v5 = vunpack.c.l.bf16 %v1499_v2  ;;  %v1501_v6 = vunpack.c.h.bf16 %v1499_v2  ;;  %v1945_v9 = vld [vmem:[%s2211_s16 + $0x8] sm:$0xff]   ;;  %v1504_v12 = vunpack.c.l.bf16 %v1914_v4  ;;  %v1505_v13 = vunpack.c.h.bf16 %v1914_v4  ;;  %v1946_v29 = vld [vmem:[%s2211_s16 + $0x10] sm:$0xff]   ;;  %s1355_s11 = sshll.u32 %s259_s10, 8  ;;  %s2621_s14 = scalar_lea.sflag [#allocation3], %s259_s10 }
  0x1a   : > { %v1628_v7 = vunpack.c.l.bf16 %v1627_v3  ;;  %v1629_v8 = vunpack.c.h.bf16 %v1627_v3  ;;  %v1632_v14 = vunpack.c.l.bf16 %v1945_v9  ;;  %v1633_v15 = vunpack.c.h.bf16 %v1945_v9  ;;  %v1916_v42 = vld [vmem:[%s2206_s13 + $0x18] sm:$0xff]   ;;  %v1917_v52 = vld [vmem:[%s2206_s13 + $0x20] sm:$0xff]   ;;  %s2269_s12 = scalar_lea.vmem [#allocation2], %s1355_s11 }
  0x1b   : > { %v410_v16 = vmul.f32 %v1500_v5, %v2216_v0  ;;  %v411_v17 = vmul.f32 %v1501_v6, %v2216_v0  ;;  %v412_v20 = vmul.f32 %v1504_v12, %v2216_v0  ;;  %v413_v21 = vmul.f32 %v1505_v13, %v2216_v0  ;;  %v1947_v51 = vld [vmem:[%s2211_s16 + $0x18] sm:$0xff]  }
  0x1c   : > { %v680_v18 = vmul.f32 %v1628_v7, %v2221_v1  ;;  %v681_v19 = vmul.f32 %v1629_v8, %v2221_v1  ;;  %v682_v22 = vmul.f32 %v1632_v14, %v2221_v1  ;;  %v683_v23 = vmul.f32 %v1633_v15, %v2221_v1  ;;  %v1948_v7 = vld [vmem:[%s2211_s16 + $0x20] sm:$0xff]   ;;  %v1918_v14 = vld [vmem:[%s2206_s13 + $0x28] sm:$0xff]  }
  0x1d   : > { %v481_v25 = vadd.f32 %v2230_v10, %v410_v16  ;;  %v482_v26 = vadd.f32 %v2230_v10, %v411_v17  ;;  %v483_v30 = vadd.f32 %v2230_v10, %v412_v20  ;;  %v484_v31 = vadd.f32 %v2230_v10, %v413_v21 }
  0x1e   : > { %v751_v27 = vadd.f32 %v2235_v11, %v680_v18  ;;  %v752_v28 = vadd.f32 %v2235_v11, %v681_v19  ;;  %v753_v32 = vadd.f32 %v2235_v11, %v682_v22  ;;  %v754_v33 = vadd.f32 %v2235_v11, %v683_v23  ;;  %v1949_v23 = vld [vmem:[%s2211_s16 + $0x28] sm:$0xff]  }
  0x1f   : > { %v1508_v36 = vunpack.c.l.bf16 %v1915_v24  ;;  %v1509_v37 = vunpack.c.h.bf16 %v1915_v24  ;;  %v1636_v40 = vunpack.c.l.bf16 %v1946_v29  ;;  %v1637_v41 = vunpack.c.h.bf16 %v1946_v29 }
  0x20   : > { %v815_v34 = vadd.f32 %v751_v27, %v481_v25  ;;  %v816_v35 = vadd.f32 %v752_v28, %v482_v26  ;;  %v817_v38 = vadd.f32 %v753_v32, %v483_v30  ;;  %v818_v39 = vadd.f32 %v754_v33, %v484_v31 }
  0x21   : > { %v414_v45 = vmul.f32 %v1508_v36, %v2216_v0  ;;  %v415_v46 = vmul.f32 %v1509_v37, %v2216_v0  ;;  %v684_v49 = vmul.f32 %v1636_v40, %v2221_v1  ;;  %v685_v50 = vmul.f32 %v1637_v41, %v2221_v1  ;;  %v1919_v36 = vld [vmem:[%s2206_s13 + $0x30] sm:$0xff]  }
  0x22   : > { %v879_v43 = vmax.f32 %v815_v34, 0.0  ;;  %v880_v44 = vmax.f32 %v816_v35, 0.0  ;;  %v881_v47 = vmax.f32 %v817_v38, 0.0  ;;  %v882_v48 = vmax.f32 %v818_v39, 0.0 }
  0x23   : > { %v485_v54 = vadd.f32 %v2230_v10, %v414_v45  ;;  %v486_v55 = vadd.f32 %v2230_v10, %v415_v46  ;;  %v1512_v56 = vunpack.c.l.bf16 %v1916_v42  ;;  %v755_v58 = vadd.f32 %v2235_v11, %v684_v49  ;;  %v1950_v45 = vld [vmem:[%s2211_s16 + $0x30] sm:$0xff]  }
  0x24   : > { %v1757_v53 = vpack.c.bf16 %v880_v44, %v879_v43  ;;  %v1762_v57 = vpack.c.bf16 %v882_v48, %v881_v47  ;;  %v756_v59 = vadd.f32 %v2235_v11, %v685_v50  ;;  %v1513_v60 = vunpack.c.h.bf16 %v1916_v42 }
  0x25   : > { %v416_v61 = vmul.f32 %v1512_v56, %v2216_v0  ;;  %v1640_v62 = vunpack.c.l.bf16 %v1947_v51  ;;  %v1641_v63 = vunpack.c.h.bf16 %v1947_v51  ;;  %v1516_v2 = vunpack.c.l.bf16 %v1917_v52 }
  0x26   : > { %1758 = vst [vmem:[%s2269_s12] sm:$0xff] %v1757_v53   ;;  %1976 = vst [vmem:[%s2269_s12 + $0x8] sm:$0xff] %v1762_v57   ;;  %v819_v3 = vadd.f32 %v755_v58, %v485_v54  ;;  %v820_v4 = vadd.f32 %v756_v59, %v486_v55  ;;  %v417_v5 = vmul.f32 %v1513_v60, %v2216_v0  ;;  %v1517_v6 = vunpack.c.h.bf16 %v1917_v52  ;;  %v1920_v54 = vld [vmem:[%s2206_s13 + $0x38] sm:$0xff]  }
  0x27   : > { %v487_v8 = vadd.f32 %v2230_v10, %v416_v61  ;;  %v686_v9 = vmul.f32 %v1640_v62, %v2221_v1  ;;  %v687_v12 = vmul.f32 %v1641_v63, %v2221_v1  ;;  %v418_v13 = vmul.f32 %v1516_v2, %v2216_v0 }
  0x28   : > { %v883_v15 = vmax.f32 %v819_v3, 0.0  ;;  %v884_v16 = vmax.f32 %v820_v4, 0.0  ;;  %v488_v17 = vadd.f32 %v2230_v10, %v417_v5  ;;  %v419_v18 = vmul.f32 %v1517_v6, %v2216_v0  ;;  %v1951_v5 = vld [vmem:[%s2211_s16 + $0x38] sm:$0xff]   ;;  %v1921_v6 = vld [vmem:[%s2206_s13 + $0x40] sm:$0xff]  }
  0x29   : > { %v757_v19 = vadd.f32 %v2235_v11, %v686_v9  ;;  %v758_v20 = vadd.f32 %v2235_v11, %v687_v12  ;;  %v489_v21 = vadd.f32 %v2230_v10, %v418_v13  ;;  %v1644_v22 = vunpack.c.l.bf16 %v1948_v7 }
  0x2a   : > { %v1767_v24 = vpack.c.bf16 %v884_v16, %v883_v15  ;;  %v490_v25 = vadd.f32 %v2230_v10, %v419_v18  ;;  %v1645_v26 = vunpack.c.h.bf16 %v1948_v7  ;;  %v1520_v27 = vunpack.c.l.bf16 %v1918_v14 }
  0x2b   : > { %v821_v28 = vadd.f32 %v757_v19, %v487_v8  ;;  %v822_v29 = vadd.f32 %v758_v20, %v488_v17  ;;  %v688_v30 = vmul.f32 %v1644_v22, %v2221_v1  ;;  %v1521_v31 = vunpack.c.h.bf16 %v1918_v14 }
  0x2c   : > { %1977 = vst [vmem:[%s2269_s12 + $0x10] sm:$0xff] %v1767_v24   ;;  %v689_v32 = vmul.f32 %v1645_v26, %v2221_v1  ;;  %v420_v33 = vmul.f32 %v1520_v27, %v2216_v0  ;;  %v1648_v34 = vunpack.c.l.bf16 %v1949_v23  ;;  %v1649_v35 = vunpack.c.h.bf16 %v1949_v23 }
  0x2d   : > { %v885_v37 = vmax.f32 %v821_v28, 0.0  ;;  %v886_v38 = vmax.f32 %v822_v29, 0.0  ;;  %v759_v39 = vadd.f32 %v2235_v11, %v688_v30  ;;  %v421_v40 = vmul.f32 %v1521_v31, %v2216_v0  ;;  %v1922_v30 = vld [vmem:[%s2206_s13 + $0x48] sm:$0xff]  }
  0x2e   : > { %v760_v41 = vadd.f32 %v2235_v11, %v689_v32  ;;  %v491_v42 = vadd.f32 %v2230_v10, %v420_v33  ;;  %v690_v43 = vmul.f32 %v1648_v34, %v2221_v1  ;;  %v691_v44 = vmul.f32 %v1649_v35, %v2221_v1 }
  0x2f   : > { %v1772_v46 = vpack.c.bf16 %v886_v38, %v885_v37  ;;  %v823_v47 = vadd.f32 %v759_v39, %v489_v21  ;;  %v492_v48 = vadd.f32 %v2230_v10, %v421_v40  ;;  %v1524_v49 = vunpack.c.l.bf16 %v1919_v36  ;;  %v1952_v21 = vld [vmem:[%s2211_s16 + $0x40] sm:$0xff]   ;;  %v1953_v39 = vld [vmem:[%s2211_s16 + $0x48] sm:$0xff]  }
  0x30   : > { %v824_v50 = vadd.f32 %v760_v41, %v490_v25  ;;  %v761_v51 = vadd.f32 %v2235_v11, %v690_v43  ;;  %v762_v52 = vadd.f32 %v2235_v11, %v691_v44  ;;  %v1525_v53 = vunpack.c.h.bf16 %v1919_v36 }
  0x31   : > { %1978 = vst [vmem:[%s2269_s12 + $0x18] sm:$0xff] %v1772_v46   ;;  %v887_v55 = vmax.f32 %v823_v47, 0.0  ;;  %v422_v56 = vmul.f32 %v1524_v49, %v2216_v0  ;;  %v1652_v57 = vunpack.c.l.bf16 %v1950_v45  ;;  %v1653_v58 = vunpack.c.h.bf16 %v1950_v45 }
  0x32   : > { %v888_v59 = vmax.f32 %v824_v50, 0.0  ;;  %v825_v60 = vadd.f32 %v761_v51, %v491_v42  ;;  %v826_v61 = vadd.f32 %v762_v52, %v492_v48  ;;  %v423_v62 = vmul.f32 %v1525_v53, %v2216_v0  ;;  %v1923_v52 = vld [vmem:[%s2206_s13 + $0x50] sm:$0xff]  }
  0x33   : > { %v493_v63 = vadd.f32 %v2230_v10, %v422_v56  ;;  %v692_v2 = vmul.f32 %v1652_v57, %v2221_v1  ;;  %v693_v3 = vmul.f32 %v1653_v58, %v2221_v1  ;;  %v1528_v4 = vunpack.c.l.bf16 %v1920_v54 }
  0x34   : > { %v1777_v7 = vpack.c.bf16 %v888_v59, %v887_v55  ;;  %v889_v8 = vmax.f32 %v825_v60, 0.0  ;;  %v890_v9 = vmax.f32 %v826_v61, 0.0  ;;  %v494_v12 = vadd.f32 %v2230_v10, %v423_v62  ;;  %v1954_v61 = vld [vmem:[%s2211_s16 + $0x50] sm:$0xff]  }
  0x35   : > { %v763_v13 = vadd.f32 %v2235_v11, %v692_v2  ;;  %v764_v14 = vadd.f32 %v2235_v11, %v693_v3  ;;  %v1529_v15 = vunpack.c.h.bf16 %v1920_v54  ;;  %v424_v16 = vmul.f32 %v1528_v4, %v2216_v0  ;;  %v1924_v4 = vld [vmem:[%s2206_s13 + $0x58] sm:$0xff]  }
  0x36   : > { %1979 = vst [vmem:[%s2269_s12 + $0x20] sm:$0xff] %v1777_v7   ;;  %v1782_v17 = vpack.c.bf16 %v890_v9, %v889_v8  ;;  %v1656_v18 = vunpack.c.l.bf16 %v1951_v5  ;;  %v1657_v19 = vunpack.c.h.bf16 %v1951_v5  ;;  %v1532_v20 = vunpack.c.l.bf16 %v1921_v6 }
  0x37   : > { %v827_v22 = vadd.f32 %v763_v13, %v493_v63  ;;  %v828_v23 = vadd.f32 %v764_v14, %v494_v12  ;;  %v425_v24 = vmul.f32 %v1529_v15, %v2216_v0  ;;  %v495_v25 = vadd.f32 %v2230_v10, %v424_v16 }
  0x38   : > { %1980 = vst [vmem:[%s2269_s12 + $0x28] sm:$0xff] %v1782_v17   ;;  %v694_v26 = vmul.f32 %v1656_v18, %v2221_v1  ;;  %v695_v27 = vmul.f32 %v1657_v19, %v2221_v1  ;;  %v1533_v28 = vunpack.c.h.bf16 %v1921_v6  ;;  %v426_v29 = vmul.f32 %v1532_v20, %v2216_v0 }
  0x39   : > { %v891_v31 = vmax.f32 %v827_v22, 0.0  ;;  %v892_v32 = vmax.f32 %v828_v23, 0.0  ;;  %v496_v33 = vadd.f32 %v2230_v10, %v425_v24  ;;  %v1660_v34 = vunpack.c.l.bf16 %v1952_v21  ;;  %v1955_v23 = vld [vmem:[%s2211_s16 + $0x58] sm:$0xff]   ;;  %v1925_v24 = vld [vmem:[%s2206_s13 + $0x60] sm:$0xff]  }
  0x3a   : > { %v765_v35 = vadd.f32 %v2235_v11, %v694_v26  ;;  %v766_v36 = vadd.f32 %v2235_v11, %v695_v27  ;;  %v427_v37 = vmul.f32 %v1533_v28, %v2216_v0  ;;  %v497_v38 = vadd.f32 %v2230_v10, %v426_v29 }
  0x3b   : > { %v1787_v40 = vpack.c.bf16 %v892_v32, %v891_v31  ;;  %v1661_v41 = vunpack.c.h.bf16 %v1952_v21  ;;  %v696_v42 = vmul.f32 %v1660_v34, %v2221_v1  ;;  %v1536_v43 = vunpack.c.l.bf16 %v1922_v30 }
  0x3c   : > { %v829_v44 = vadd.f32 %v765_v35, %v495_v25  ;;  %v830_v45 = vadd.f32 %v766_v36, %v496_v33  ;;  %v498_v46 = vadd.f32 %v2230_v10, %v427_v37  ;;  %v1537_v47 = vunpack.c.h.bf16 %v1922_v30  ;;  %v1956_v37 = vld [vmem:[%s2211_s16 + $0x60] sm:$0xff]  }
  0x3d   : > { %1981 = vst [vmem:[%s2269_s12 + $0x30] sm:$0xff] %v1787_v40   ;;  %v697_v48 = vmul.f32 %v1661_v41, %v2221_v1  ;;  %v767_v49 = vadd.f32 %v2235_v11, %v696_v42  ;;  %v428_v50 = vmul.f32 %v1536_v43, %v2216_v0  ;;  %v1664_v51 = vunpack.c.l.bf16 %v1953_v39 }
  0x3e   : > { %v893_v53 = vmax.f32 %v829_v44, 0.0  ;;  %v894_v54 = vmax.f32 %v830_v45, 0.0  ;;  %v429_v55 = vmul.f32 %v1537_v47, %v2216_v0  ;;  %v1665_v56 = vunpack.c.h.bf16 %v1953_v39 }
  0x3f   : > { %v768_v57 = vadd.f32 %v2235_v11, %v697_v48  ;;  %v831_v58 = vadd.f32 %v767_v49, %v497_v38  ;;  %v499_v59 = vadd.f32 %v2230_v10, %v428_v50  ;;  %v698_v60 = vmul.f32 %v1664_v51, %v2221_v1 }
  0x40   : > { %v1792_v62 = vpack.c.bf16 %v894_v54, %v893_v53  ;;  %v500_v63 = vadd.f32 %v2230_v10, %v429_v55  ;;  %v699_v2 = vmul.f32 %v1665_v56, %v2221_v1  ;;  %v1540_v3 = vunpack.c.l.bf16 %v1923_v52  ;;  %v1957_v55 = vld [vmem:[%s2211_s16 + $0x68] sm:$0xff]  }
  0x41   : > { %v832_v5 = vadd.f32 %v768_v57, %v498_v46  ;;  %v895_v6 = vmax.f32 %v831_v58, 0.0  ;;  %v769_v7 = vadd.f32 %v2235_v11, %v698_v60  ;;  %v1541_v8 = vunpack.c.h.bf16 %v1923_v52  ;;  %v1926_v46 = vld [vmem:[%s2206_s13 + $0x68] sm:$0xff]  }
  0x42   : > { %1982 = vst [vmem:[%s2269_s12 + $0x38] sm:$0xff] %v1792_v62   ;;  %v770_v9 = vadd.f32 %v2235_v11, %v699_v2  ;;  %v430_v12 = vmul.f32 %v1540_v3, %v2216_v0  ;;  %v1668_v13 = vunpack.c.l.bf16 %v1954_v61  ;;  %v1669_v14 = vunpack.c.h.bf16 %v1954_v61 }
  0x43   : > { %v896_v15 = vmax.f32 %v832_v5, 0.0  ;;  %v833_v16 = vadd.f32 %v769_v7, %v499_v59  ;;  %v431_v17 = vmul.f32 %v1541_v8, %v2216_v0  ;;  %v1544_v18 = vunpack.c.l.bf16 %v1924_v4 }
  0x44   : > { %v834_v19 = vadd.f32 %v770_v9, %v500_v63  ;;  %v501_v20 = vadd.f32 %v2230_v10, %v430_v12  ;;  %v700_v21 = vmul.f32 %v1668_v13, %v2221_v1  ;;  %v701_v22 = vmul.f32 %v1669_v14, %v2221_v1 }
  0x45   : > { %v1797_v25 = vpack.c.bf16 %v896_v15, %v895_v6  ;;  %v897_v26 = vmax.f32 %v833_v16, 0.0  ;;  %v502_v27 = vadd.f32 %v2230_v10, %v431_v17  ;;  %v1545_v28 = vunpack.c.h.bf16 %v1924_v4  ;;  %v1927_v6 = vld [vmem:[%s2206_s13 + $0x70] sm:$0xff]  }
  0x46   : > { %v898_v29 = vmax.f32 %v834_v19, 0.0  ;;  %v771_v30 = vadd.f32 %v2235_v11, %v700_v21  ;;  %v772_v31 = vadd.f32 %v2235_v11, %v701_v22  ;;  %v432_v32 = vmul.f32 %v1544_v18, %v2216_v0  ;;  %v1958_v17 = vld [vmem:[%s2211_s16 + $0x70] sm:$0xff]   ;;  %v1928_v22 = vld [vmem:[%s2206_s13 + $0x78] sm:$0xff]  }
  0x47   : > { %1983 = vst [vmem:[%s2269_s12 + $0x40] sm:$0xff] %v1797_v25   ;;  %v433_v33 = vmul.f32 %v1545_v28, %v2216_v0  ;;  %v1672_v34 = vunpack.c.l.bf16 %v1955_v23  ;;  %v1673_v35 = vunpack.c.h.bf16 %v1955_v23  ;;  %v1548_v36 = vunpack.c.l.bf16 %v1925_v24 }
  0x48   : > { %v1802_v38 = vpack.c.bf16 %v898_v29, %v897_v26  ;;  %v835_v39 = vadd.f32 %v771_v30, %v501_v20  ;;  %v836_v40 = vadd.f32 %v772_v31, %v502_v27  ;;  %v503_v41 = vadd.f32 %v2230_v10, %v432_v32 }
  0x49   : > { %v504_v42 = vadd.f32 %v2230_v10, %v433_v33  ;;  %v702_v43 = vmul.f32 %v1672_v34, %v2221_v1  ;;  %v703_v44 = vmul.f32 %v1673_v35, %v2221_v1  ;;  %v1549_v45 = vunpack.c.h.bf16 %v1925_v24  ;;  %v1959_v35 = vld [vmem:[%s2211_s16 + $0x78] sm:$0xff]  }
  0x4a   : > { %1984 = vst [vmem:[%s2269_s12 + $0x48] sm:$0xff] %v1802_v38   ;;  %v899_v47 = vmax.f32 %v835_v39, 0.0  ;;  %v900_v48 = vmax.f32 %v836_v40, 0.0  ;;  %v434_v49 = vmul.f32 %v1548_v36, %v2216_v0  ;;  %v1676_v50 = vunpack.c.l.bf16 %v1956_v37  ;;  %v1929_v40 = vld [vmem:[%s2206_s13 + $0x80] sm:$0xff]  }
  0x4b   : > { %v773_v51 = vadd.f32 %v2235_v11, %v702_v43  ;;  %v774_v52 = vadd.f32 %v2235_v11, %v703_v44  ;;  %v435_v53 = vmul.f32 %v1549_v45, %v2216_v0  ;;  %v1677_v54 = vunpack.c.h.bf16 %v1956_v37 }
  0x4c   : > { %v1807_v56 = vpack.c.bf16 %v900_v48, %v899_v47  ;;  %v505_v57 = vadd.f32 %v2230_v10, %v434_v49  ;;  %v704_v58 = vmul.f32 %v1676_v50, %v2221_v1  ;;  %v1552_v59 = vunpack.c.l.bf16 %v1926_v46 }
  0x4d   : > { %v837_v60 = vadd.f32 %v773_v51, %v503_v41  ;;  %v838_v61 = vadd.f32 %v774_v52, %v504_v42  ;;  %v506_v62 = vadd.f32 %v2230_v10, %v435_v53  ;;  %v705_v63 = vmul.f32 %v1677_v54, %v2221_v1  ;;  %v1960_v53 = vld [vmem:[%s2211_s16 + $0x80] sm:$0xff]  }
  0x4e   : > { %1985 = vst [vmem:[%s2269_s12 + $0x50] sm:$0xff] %v1807_v56   ;;  %v775_v2 = vadd.f32 %v2235_v11, %v704_v58  ;;  %v1553_v3 = vunpack.c.h.bf16 %v1926_v46  ;;  %v436_v4 = vmul.f32 %v1552_v59, %v2216_v0  ;;  %v1680_v5 = vunpack.c.l.bf16 %v1957_v55 }
  0x4f   : > { %v901_v7 = vmax.f32 %v837_v60, 0.0  ;;  %v902_v8 = vmax.f32 %v838_v61, 0.0  ;;  %v776_v9 = vadd.f32 %v2235_v11, %v705_v63  ;;  %v1681_v12 = vunpack.c.h.bf16 %v1957_v55 }
  0x50   : > { %v839_v13 = vadd.f32 %v775_v2, %v505_v57  ;;  %v437_v14 = vmul.f32 %v1553_v3, %v2216_v0  ;;  %v507_v15 = vadd.f32 %v2230_v10, %v436_v4  ;;  %v706_v16 = vmul.f32 %v1680_v5, %v2221_v1 }
  0x51   : > { %v1812_v18 = vpack.c.bf16 %v902_v8, %v901_v7  ;;  %v840_v19 = vadd.f32 %v776_v9, %v506_v62  ;;  %v707_v20 = vmul.f32 %v1681_v12, %v2221_v1  ;;  %v1556_v21 = vunpack.c.l.bf16 %v1927_v6  ;;  %v1930_v62 = vld [vmem:[%s2206_s13 + $0x88] sm:$0xff]  }
  0x52   : > { %v903_v23 = vmax.f32 %v839_v13, 0.0  ;;  %v508_v24 = vadd.f32 %v2230_v10, %v437_v14  ;;  %v777_v25 = vadd.f32 %v2235_v11, %v706_v16  ;;  %v1557_v26 = vunpack.c.h.bf16 %v1927_v6 }
  0x53   : > { %1986 = vst [vmem:[%s2269_s12 + $0x58] sm:$0xff] %v1812_v18   ;;  %v904_v27 = vmax.f32 %v840_v19, 0.0  ;;  %v778_v28 = vadd.f32 %v2235_v11, %v707_v20  ;;  %v438_v29 = vmul.f32 %v1556_v21, %v2216_v0  ;;  %v1684_v30 = vunpack.c.l.bf16 %v1958_v17  ;;  %v1931_v20 = vld [vmem:[%s2206_s13 + $0x90] sm:$0xff]  }
  0x54   : > { %v841_v31 = vadd.f32 %v777_v25, %v507_v15  ;;  %v439_v32 = vmul.f32 %v1557_v26, %v2216_v0  ;;  %v1685_v33 = vunpack.c.h.bf16 %v1958_v17  ;;  %v1560_v34 = vunpack.c.l.bf16 %v1928_v22  ;;  %v1961_v15 = vld [vmem:[%s2211_s16 + $0x88] sm:$0xff]  }
  0x55   : > { %v1817_v36 = vpack.c.bf16 %v904_v27, %v903_v23  ;;  %v842_v37 = vadd.f32 %v778_v28, %v508_v24  ;;  %v509_v38 = vadd.f32 %v2230_v10, %v438_v29  ;;  %v708_v39 = vmul.f32 %v1684_v30, %v2221_v1 }
  0x56   : > { %v905_v41 = vmax.f32 %v841_v31, 0.0  ;;  %v510_v42 = vadd.f32 %v2230_v10, %v439_v32  ;;  %v709_v43 = vmul.f32 %v1685_v33, %v2221_v1  ;;  %v1561_v44 = vunpack.c.h.bf16 %v1928_v22  ;;  %v1962_v33 = vld [vmem:[%s2211_s16 + $0x90] sm:$0xff]  }
  0x57   : > { %1987 = vst [vmem:[%s2269_s12 + $0x60] sm:$0xff] %v1817_v36   ;;  %v906_v45 = vmax.f32 %v842_v37, 0.0  ;;  %v779_v46 = vadd.f32 %v2235_v11, %v708_v39  ;;  %v440_v47 = vmul.f32 %v1560_v34, %v2216_v0  ;;  %v1688_v48 = vunpack.c.l.bf16 %v1959_v35 }
  0x58   : > { %v780_v49 = vadd.f32 %v2235_v11, %v709_v43  ;;  %v441_v50 = vmul.f32 %v1561_v44, %v2216_v0  ;;  %v1689_v51 = vunpack.c.h.bf16 %v1959_v35  ;;  %v1564_v52 = vunpack.c.l.bf16 %v1929_v40 }
  0x59   : > { %v1822_v54 = vpack.c.bf16 %v906_v45, %v905_v41  ;;  %v843_v55 = vadd.f32 %v779_v46, %v509_v38  ;;  %v511_v56 = vadd.f32 %v2230_v10, %v440_v47  ;;  %v710_v57 = vmul.f32 %v1688_v48, %v2221_v1  ;;  %v1932_v38 = vld [vmem:[%s2206_s13 + $0x98] sm:$0xff]  }
  0x5a   : > { %v844_v58 = vadd.f32 %v780_v49, %v510_v42  ;;  %v512_v59 = vadd.f32 %v2230_v10, %v441_v50  ;;  %v711_v60 = vmul.f32 %v1689_v51, %v2221_v1  ;;  %v1565_v61 = vunpack.c.h.bf16 %v1929_v40  ;;  %v1963_v51 = vld [vmem:[%s2211_s16 + $0x98] sm:$0xff]  }
  0x5b   : > { %1988 = vst [vmem:[%s2269_s12 + $0x68] sm:$0xff] %v1822_v54   ;;  %v907_v63 = vmax.f32 %v843_v55, 0.0  ;;  %v781_v2 = vadd.f32 %v2235_v11, %v710_v57  ;;  %v442_v3 = vmul.f32 %v1564_v52, %v2216_v0  ;;  %v1692_v4 = vunpack.c.l.bf16 %v1960_v53 }
  0x5c   : > { %v908_v5 = vmax.f32 %v844_v58, 0.0  ;;  %v782_v6 = vadd.f32 %v2235_v11, %v711_v60  ;;  %v443_v7 = vmul.f32 %v1565_v61, %v2216_v0  ;;  %v1693_v8 = vunpack.c.h.bf16 %v1960_v53  ;;  %v1933_v60 = vld [vmem:[%s2206_s13 + $0xa0] sm:$0xff]  }
  0x5d   : > { %v845_v9 = vadd.f32 %v781_v2, %v511_v56  ;;  %v513_v12 = vadd.f32 %v2230_v10, %v442_v3  ;;  %v712_v13 = vmul.f32 %v1692_v4, %v2221_v1  ;;  %v1568_v14 = vunpack.c.l.bf16 %v1930_v62 }
  0x5e   : > { %v1827_v16 = vpack.c.bf16 %v908_v5, %v907_v63  ;;  %v846_v17 = vadd.f32 %v782_v6, %v512_v59  ;;  %v514_v18 = vadd.f32 %v2230_v10, %v443_v7  ;;  %v713_v19 = vmul.f32 %v1693_v8, %v2221_v1  ;;  %v1964_v7 = vld [vmem:[%s2211_s16 + $0xa0] sm:$0xff]  }
  0x5f   : > { %v909_v21 = vmax.f32 %v845_v9, 0.0  ;;  %v783_v22 = vadd.f32 %v2235_v11, %v712_v13  ;;  %v1569_v23 = vunpack.c.h.bf16 %v1930_v62  ;;  %v444_v24 = vmul.f32 %v1568_v14, %v2216_v0 }
  0x60   : > { %1989 = vst [vmem:[%s2269_s12 + $0x70] sm:$0xff] %v1827_v16   ;;  %v910_v25 = vmax.f32 %v846_v17, 0.0  ;;  %v784_v26 = vadd.f32 %v2235_v11, %v713_v19  ;;  %v1696_v27 = vunpack.c.l.bf16 %v1961_v15  ;;  %v1697_v28 = vunpack.c.h.bf16 %v1961_v15 }
  0x61   : > { %v847_v29 = vadd.f32 %v783_v22, %v513_v12  ;;  %v445_v30 = vmul.f32 %v1569_v23, %v2216_v0  ;;  %v515_v31 = vadd.f32 %v2230_v10, %v444_v24  ;;  %v1572_v32 = vunpack.c.l.bf16 %v1931_v20 }
  0x62   : > { %v1832_v34 = vpack.c.bf16 %v910_v25, %v909_v21  ;;  %v848_v35 = vadd.f32 %v784_v26, %v514_v18  ;;  %v714_v36 = vmul.f32 %v1696_v27, %v2221_v1  ;;  %v715_v37 = vmul.f32 %v1697_v28, %v2221_v1  ;;  %v1934_v18 = vld [vmem:[%s2206_s13 + $0xa8] sm:$0xff]  }
  0x63   : > { %v911_v39 = vmax.f32 %v847_v29, 0.0  ;;  %v516_v40 = vadd.f32 %v2230_v10, %v445_v30  ;;  %v1573_v41 = vunpack.c.h.bf16 %v1931_v20  ;;  %v446_v42 = vmul.f32 %v1572_v32, %v2216_v0 }
  0x64   : > { %1990 = vst [vmem:[%s2269_s12 + $0x78] sm:$0xff] %v1832_v34   ;;  %v912_v43 = vmax.f32 %v848_v35, 0.0  ;;  %v785_v44 = vadd.f32 %v2235_v11, %v714_v36  ;;  %v786_v45 = vadd.f32 %v2235_v11, %v715_v37  ;;  %v1700_v46 = vunpack.c.l.bf16 %v1962_v33  ;;  %v1935_v36 = vld [vmem:[%s2206_s13 + $0xb0] sm:$0xff]  }
  0x65   : > { %v447_v47 = vmul.f32 %v1573_v41, %v2216_v0  ;;  %v517_v48 = vadd.f32 %v2230_v10, %v446_v42  ;;  %v1701_v49 = vunpack.c.h.bf16 %v1962_v33  ;;  %v1576_v50 = vunpack.c.l.bf16 %v1932_v38 }
  0x66   : > { %v1837_v52 = vpack.c.bf16 %v912_v43, %v911_v39  ;;  %v849_v53 = vadd.f32 %v785_v44, %v515_v31  ;;  %v850_v54 = vadd.f32 %v786_v45, %v516_v40  ;;  %v716_v55 = vmul.f32 %v1700_v46, %v2221_v1  ;;  %v1965_v31 = vld [vmem:[%s2211_s16 + $0xa8] sm:$0xff]  }
  0x67   : > { %v518_v56 = vadd.f32 %v2230_v10, %v447_v47  ;;  %v717_v57 = vmul.f32 %v1701_v49, %v2221_v1  ;;  %v1577_v58 = vunpack.c.h.bf16 %v1932_v38  ;;  %v448_v59 = vmul.f32 %v1576_v50, %v2216_v0  ;;  %v1966_v49 = vld [vmem:[%s2211_s16 + $0xb0] sm:$0xff]  }
  0x68   : > { %1991 = vst [vmem:[%s2269_s12 + $0x80] sm:$0xff] %v1837_v52   ;;  %v913_v61 = vmax.f32 %v849_v53, 0.0  ;;  %v914_v62 = vmax.f32 %v850_v54, 0.0  ;;  %v787_v63 = vadd.f32 %v2235_v11, %v716_v55  ;;  %v1704_v2 = vunpack.c.l.bf16 %v1963_v51  ;;  %v1936_v54 = vld [vmem:[%s2206_s13 + $0xb8] sm:$0xff]  }
  0x69   : > { %v788_v3 = vadd.f32 %v2235_v11, %v717_v57  ;;  %v449_v4 = vmul.f32 %v1577_v58, %v2216_v0  ;;  %v519_v5 = vadd.f32 %v2230_v10, %v448_v59  ;;  %v1705_v6 = vunpack.c.h.bf16 %v1963_v51 }
  0x6a   : > { %v1842_v8 = vpack.c.bf16 %v914_v62, %v913_v61  ;;  %v851_v9 = vadd.f32 %v787_v63, %v517_v48  ;;  %v718_v12 = vmul.f32 %v1704_v2, %v2221_v1  ;;  %v1580_v13 = vunpack.c.l.bf16 %v1933_v60 }
  0x6b   : > { %v852_v14 = vadd.f32 %v788_v3, %v518_v56  ;;  %v520_v15 = vadd.f32 %v2230_v10, %v449_v4  ;;  %v719_v16 = vmul.f32 %v1705_v6, %v2221_v1  ;;  %v1581_v17 = vunpack.c.h.bf16 %v1933_v60 }
  0x6c   : > { %1992 = vst [vmem:[%s2269_s12 + $0x88] sm:$0xff] %v1842_v8   ;;  %v915_v19 = vmax.f32 %v851_v9, 0.0  ;;  %v789_v20 = vadd.f32 %v2235_v11, %v718_v12  ;;  %v450_v21 = vmul.f32 %v1580_v13, %v2216_v0  ;;  %v1708_v22 = vunpack.c.l.bf16 %v1964_v7 }
  0x6d   : > { %v916_v23 = vmax.f32 %v852_v14, 0.0  ;;  %v790_v24 = vadd.f32 %v2235_v11, %v719_v16  ;;  %v451_v25 = vmul.f32 %v1581_v17, %v2216_v0  ;;  %v1709_v26 = vunpack.c.h.bf16 %v1964_v7  ;;  %v1937_v16 = vld [vmem:[%s2206_s13 + $0xc0] sm:$0xff]  }
  0x6e   : > { %v853_v27 = vadd.f32 %v789_v20, %v519_v5  ;;  %v521_v28 = vadd.f32 %v2230_v10, %v450_v21  ;;  %v720_v29 = vmul.f32 %v1708_v22, %v2221_v1  ;;  %v1584_v30 = vunpack.c.l.bf16 %v1934_v18  ;;  %v1967_v5 = vld [vmem:[%s2211_s16 + $0xb8] sm:$0xff]  }
  0x6f   : > { %v1847_v32 = vpack.c.bf16 %v916_v23, %v915_v19  ;;  %v854_v33 = vadd.f32 %v790_v24, %v520_v15  ;;  %v522_v34 = vadd.f32 %v2230_v10, %v451_v25  ;;  %v721_v35 = vmul.f32 %v1709_v26, %v2221_v1  ;;  %v1968_v25 = vld [vmem:[%s2211_s16 + $0xc0] sm:$0xff]  }
  0x70   : > { %v917_v37 = vmax.f32 %v853_v27, 0.0  ;;  %v791_v38 = vadd.f32 %v2235_v11, %v720_v29  ;;  %v1585_v39 = vunpack.c.h.bf16 %v1934_v18  ;;  %v452_v40 = vmul.f32 %v1584_v30, %v2216_v0 }
  0x71   : > { %1993 = vst [vmem:[%s2269_s12 + $0x90] sm:$0xff] %v1847_v32   ;;  %v918_v41 = vmax.f32 %v854_v33, 0.0  ;;  %v792_v42 = vadd.f32 %v2235_v11, %v721_v35  ;;  %v1712_v43 = vunpack.c.l.bf16 %v1965_v31  ;;  %v1713_v44 = vunpack.c.h.bf16 %v1965_v31 }
  0x72   : > { %v855_v45 = vadd.f32 %v791_v38, %v521_v28  ;;  %v453_v46 = vmul.f32 %v1585_v39, %v2216_v0  ;;  %v523_v47 = vadd.f32 %v2230_v10, %v452_v40  ;;  %v1588_v48 = vunpack.c.l.bf16 %v1935_v36 }
  0x73   : > { %v1852_v50 = vpack.c.bf16 %v918_v41, %v917_v37  ;;  %v856_v51 = vadd.f32 %v792_v42, %v522_v34  ;;  %v722_v52 = vmul.f32 %v1712_v43, %v2221_v1  ;;  %v723_v53 = vmul.f32 %v1713_v44, %v2221_v1  ;;  %v1938_v34 = vld [vmem:[%s2206_s13 + $0xc8] sm:$0xff]  }
  0x74   : > { %v919_v55 = vmax.f32 %v855_v45, 0.0  ;;  %v524_v56 = vadd.f32 %v2230_v10, %v453_v46  ;;  %v1589_v57 = vunpack.c.h.bf16 %v1935_v36  ;;  %v454_v58 = vmul.f32 %v1588_v48, %v2216_v0 }
  0x75   : > { %1994 = vst [vmem:[%s2269_s12 + $0x98] sm:$0xff] %v1852_v50   ;;  %v920_v59 = vmax.f32 %v856_v51, 0.0  ;;  %v793_v60 = vadd.f32 %v2235_v11, %v722_v52  ;;  %v794_v61 = vadd.f32 %v2235_v11, %v723_v53  ;;  %v1716_v62 = vunpack.c.l.bf16 %v1966_v49  ;;  %v1939_v52 = vld [vmem:[%s2206_s13 + $0xd0] sm:$0xff]  }
  0x76   : > { %v455_v63 = vmul.f32 %v1589_v57, %v2216_v0  ;;  %v525_v2 = vadd.f32 %v2230_v10, %v454_v58  ;;  %v1717_v3 = vunpack.c.h.bf16 %v1966_v49  ;;  %v1592_v4 = vunpack.c.l.bf16 %v1936_v54 }
  0x77   : > { %v1857_v6 = vpack.c.bf16 %v920_v59, %v919_v55  ;;  %v857_v7 = vadd.f32 %v793_v60, %v523_v47  ;;  %v858_v8 = vadd.f32 %v794_v61, %v524_v56  ;;  %v724_v9 = vmul.f32 %v1716_v62, %v2221_v1  ;;  %v1969_v47 = vld [vmem:[%s2211_s16 + $0xc8] sm:$0xff]  }
  0x78   : > { %v526_v12 = vadd.f32 %v2230_v10, %v455_v63  ;;  %v725_v13 = vmul.f32 %v1717_v3, %v2221_v1  ;;  %v1593_v14 = vunpack.c.h.bf16 %v1936_v54  ;;  %v456_v15 = vmul.f32 %v1592_v4, %v2216_v0 }
  0x79   : > { %1995 = vst [vmem:[%s2269_s12 + $0xa0] sm:$0xff] %v1857_v6   ;;  %v921_v17 = vmax.f32 %v857_v7, 0.0  ;;  %v922_v18 = vmax.f32 %v858_v8, 0.0  ;;  %v795_v19 = vadd.f32 %v2235_v11, %v724_v9  ;;  %v1720_v20 = vunpack.c.l.bf16 %v1967_v5  ;;  %v1940_v7 = vld [vmem:[%s2206_s13 + $0xd8] sm:$0xff]  }
  0x7a   : > { %v796_v21 = vadd.f32 %v2235_v11, %v725_v13  ;;  %v457_v22 = vmul.f32 %v1593_v14, %v2216_v0  ;;  %v527_v23 = vadd.f32 %v2230_v10, %v456_v15  ;;  %v1721_v24 = vunpack.c.h.bf16 %v1967_v5  ;;  %v2521_v5 = vld [vmem:[%s2666_s4] ss:$0 sm:$0xff] }
  0x7b   : > { %v1862_v26 = vpack.c.bf16 %v922_v18, %v921_v17  ;;  %v859_v27 = vadd.f32 %v795_v19, %v525_v2  ;;  %v726_v28 = vmul.f32 %v1720_v20, %v2221_v1  ;;  %v1596_v29 = vunpack.c.l.bf16 %v1937_v16  ;;  %v1970_v2 = vld [vmem:[%s2211_s16 + $0xd0] sm:$0xff]   ;;  %v2537_v15 = vld [vmem:[%s2667_s5] ss:$0 sm:$0xff] }
  0x7c   : > { %v860_v30 = vadd.f32 %v796_v21, %v526_v12  ;;  %v528_v31 = vadd.f32 %v2230_v10, %v457_v22  ;;  %v727_v32 = vmul.f32 %v1721_v24, %v2221_v1  ;;  %v1597_v33 = vunpack.c.h.bf16 %v1937_v16  ;;  %v2530_v12 = vld [vmem:[%s2663_s1] ss:$0 sm:$0xff] }
  0x7d   : > { %1996 = vst [vmem:[%s2269_s12 + $0xa8] sm:$0xff] %v1862_v26   ;;  %v923_v35 = vmax.f32 %v859_v27, 0.0  ;;  %v797_v36 = vadd.f32 %v2235_v11, %v726_v28  ;;  %v458_v37 = vmul.f32 %v1596_v29, %v2216_v0  ;;  %v1724_v38 = vunpack.c.l.bf16 %v1968_v25  ;;  %v2545_v19 = vld [vmem:[%s2664_s2] ss:$0 sm:$0xff] }
  0x7e   : > { %v924_v39 = vmax.f32 %v860_v30, 0.0  ;;  %v798_v40 = vadd.f32 %v2235_v11, %v727_v32  ;;  %v459_v41 = vmul.f32 %v1597_v33, %v2216_v0  ;;  %v1725_v42 = vunpack.c.h.bf16 %v1968_v25  ;;  %v1941_v32 = vld [vmem:[%s2206_s13 + $0xe0] sm:$0xff]  }
  0x7f   : > { %v861_v43 = vadd.f32 %v797_v36, %v527_v23  ;;  %v529_v44 = vadd.f32 %v2230_v10, %v458_v37  ;;  %v728_v45 = vmul.f32 %v1724_v38, %v2221_v1  ;;  %v1600_v46 = vunpack.c.l.bf16 %v1938_v34  ;;  %v1971_v23 = vld [vmem:[%s2211_s16 + $0xd8] sm:$0xff]  }
  0x80   : > { %v1867_v48 = vpack.c.bf16 %v924_v39, %v923_v35  ;;  %v862_v49 = vadd.f32 %v798_v40, %v528_v31  ;;  %v530_v50 = vadd.f32 %v2230_v10, %v459_v41  ;;  %v729_v51 = vmul.f32 %v1725_v42, %v2221_v1  ;;  %v1972_v41 = vld [vmem:[%s2211_s16 + $0xe0] sm:$0xff]  }
  0x81   : > { %v925_v53 = vmax.f32 %v861_v43, 0.0  ;;  %v799_v54 = vadd.f32 %v2235_v11, %v728_v45  ;;  %v1601_v55 = vunpack.c.h.bf16 %v1938_v34  ;;  %v460_v56 = vmul.f32 %v1600_v46, %v2216_v0 }
  0x82   : > { %1997 = vst [vmem:[%s2269_s12 + $0xb0] sm:$0xff] %v1867_v48   ;;  %v926_v57 = vmax.f32 %v862_v49, 0.0  ;;  %v800_v58 = vadd.f32 %v2235_v11, %v729_v51  ;;  %v1728_v59 = vunpack.c.l.bf16 %v1969_v47  ;;  %v1729_v60 = vunpack.c.h.bf16 %v1969_v47 }
  0x83   : > { %v863_v61 = vadd.f32 %v799_v54, %v529_v44  ;;  %v461_v62 = vmul.f32 %v1601_v55, %v2216_v0  ;;  %v531_v1 = vadd.f32 %v2230_v10, %v460_v56  ;;  %v1604_v63 = vunpack.c.l.bf16 %v1939_v52 }
  0x84   : > { %v1872_v3 = vpack.c.bf16 %v926_v57, %v925_v53  ;;  %v864_v4 = vadd.f32 %v800_v58, %v530_v50  ;;  %v730_v6 = vmul.f32 %v2521_v5, %v1728_v59  ;;  %v731_v11 = vmul.f32 %v2521_v5, %v1729_v60  ;;  %v1942_v50 = vld [vmem:[%s2206_s13 + $0xe8] sm:$0xff]  }
  0x85   : > { %v927_v8 = vmax.f32 %v863_v61, 0.0  ;;  %v532_v0 = vadd.f32 %v2230_v10, %v461_v62  ;;  %v1605_v9 = vunpack.c.h.bf16 %v1939_v52  ;;  %v462_v13 = vmul.f32 %v2530_v12, %v1604_v63 }
  0x86   : > { %1998 = vst [vmem:[%s2269_s12 + $0xb8] sm:$0xff] %v1872_v3   ;;  %v928_v14 = vmax.f32 %v864_v4, 0.0  ;;  %v801_v16 = vadd.f32 %v2537_v15, %v730_v6  ;;  %v802_v17 = vadd.f32 %v2537_v15, %v731_v11  ;;  %v1732_v10 = vunpack.c.l.bf16 %v1970_v2  ;;  %v1943_v6 = vld [vmem:[%s2206_s13 + $0xf0] sm:$0xff]  }
  0x87   : > { %v463_v18 = vmul.f32 %v2530_v12, %v1605_v9  ;;  %v533_v20 = vadd.f32 %v2545_v19, %v462_v13  ;;  %v1733_v21 = vunpack.c.h.bf16 %v1970_v2  ;;  %v1608_v22 = vunpack.c.l.bf16 %v1940_v7 }
  0x88   : > { %v1877_v24 = vpack.c.bf16 %v928_v14, %v927_v8  ;;  %v865_v25 = vadd.f32 %v801_v16, %v531_v1  ;;  %v866_v26 = vadd.f32 %v802_v17, %v532_v0  ;;  %v732_v27 = vmul.f32 %v2521_v5, %v1732_v10  ;;  %v1973_v1 = vld [vmem:[%s2211_s16 + $0xe8] sm:$0xff]  }
  0x89   : > { %v534_v28 = vadd.f32 %v2545_v19, %v463_v18  ;;  %v733_v29 = vmul.f32 %v2521_v5, %v1733_v21  ;;  %v1609_v30 = vunpack.c.h.bf16 %v1940_v7  ;;  %v464_v31 = vmul.f32 %v2530_v12, %v1608_v22  ;;  %v1974_v21 = vld [vmem:[%s2211_s16 + $0xf0] sm:$0xff]  }
  0x8a   : > { %1999 = vst [vmem:[%s2269_s12 + $0xc0] sm:$0xff] %v1877_v24   ;;  %v929_v33 = vmax.f32 %v865_v25, 0.0  ;;  %v930_v34 = vmax.f32 %v866_v26, 0.0  ;;  %v803_v35 = vadd.f32 %v2537_v15, %v732_v27  ;;  %v1736_v36 = vunpack.c.l.bf16 %v1971_v23  ;;  %v1944_v26 = vld [vmem:[%s2206_s13 + $0xf8] sm:$0xff]   ;;  %s1497_s13 = sshll.u32 %s2175_s25, 12 }
  0x8b   : > { %v804_v37 = vadd.f32 %v2537_v15, %v733_v29  ;;  %v465_v38 = vmul.f32 %v2530_v12, %v1609_v30  ;;  %v535_v39 = vadd.f32 %v2545_v19, %v464_v31  ;;  %v1737_v40 = vunpack.c.h.bf16 %v1971_v23  ;;  %s2614_s11 = scalar_lea.hbm %s2668_s6, %s1497_s13 }
  0x8c   : > { %v1882_v42 = vpack.c.bf16 %v930_v34, %v929_v33  ;;  %v867_v43 = vadd.f32 %v803_v35, %v533_v20  ;;  %v734_v44 = vmul.f32 %v2521_v5, %v1736_v36  ;;  %v1612_v45 = vunpack.c.l.bf16 %v1941_v32 }
  0x8d   : > { %v868_v46 = vadd.f32 %v804_v37, %v534_v28  ;;  %v536_v47 = vadd.f32 %v2545_v19, %v465_v38  ;;  %v735_v48 = vmul.f32 %v2521_v5, %v1737_v40  ;;  %v1613_v49 = vunpack.c.h.bf16 %v1941_v32 }
  0x8e   : > { %2000 = vst [vmem:[%s2269_s12 + $0xc8] sm:$0xff] %v1882_v42   ;;  %v931_v51 = vmax.f32 %v867_v43, 0.0  ;;  %v805_v52 = vadd.f32 %v2537_v15, %v734_v44  ;;  %v466_v53 = vmul.f32 %v2530_v12, %v1612_v45  ;;  %v1740_v54 = vunpack.c.l.bf16 %v1972_v41 }
  0x8f   : > { %v932_v55 = vmax.f32 %v868_v46, 0.0  ;;  %v806_v56 = vadd.f32 %v2537_v15, %v735_v48  ;;  %v467_v57 = vmul.f32 %v2530_v12, %v1613_v49  ;;  %v1741_v58 = vunpack.c.h.bf16 %v1972_v41 }
  0x90   : > { %v869_v59 = vadd.f32 %v805_v52, %v535_v39  ;;  %v537_v60 = vadd.f32 %v2545_v19, %v466_v53  ;;  %v736_v61 = vmul.f32 %v2521_v5, %v1740_v54  ;;  %v1616_v62 = vunpack.c.l.bf16 %v1942_v50  ;;  %v1975_v39 = vld [vmem:[%s2211_s16 + $0xf8] sm:$0xff]   ;;  %s1277_s16 = sshll.u32 %s2269_s12, 4  ;;  %s2616_s16 = int_to_ptr.vmem [resolvable:$true] %s1277_s16 }
  0x91   : > { %v1887_v63 = vpack.c.bf16 %v932_v55, %v931_v51  ;;  %v870_v2 = vadd.f32 %v806_v56, %v536_v47  ;;  %v538_v3 = vadd.f32 %v2545_v19, %v467_v57  ;;  %v737_v4 = vmul.f32 %v2521_v5, %v1741_v58  ;;  %s2052_s25 = scalar_lea.vmem %s2616_s16, 4096  ;;  %p2059_p0 = scmp.lt.s32.totalorder %s2616_s16, %s2057_s17 }
  0x92   : > { %v933_v11 = vmax.f32 %v869_v59, 0.0  ;;  %v807_v7 = vadd.f32 %v2537_v15, %v736_v61  ;;  %v1617_v8 = vunpack.c.h.bf16 %v1942_v50  ;;  %v468_v0 = vmul.f32 %v2530_v12, %v1616_v62  ;;  %p2053_p11 = scmp.ne.s32.totalorder %s2616_s16, %s2052_s25  ;;  %p2060_p1 = scmp.lt.s32.totalorder %s2058_s18, %s2052_s25 }
  0x93   : > { %2001 = vst [vmem:[%s2269_s12 + $0xd0] sm:$0xff] %v1887_v63   ;;  %v934_v9 = vmax.f32 %v870_v2, 0.0  ;;  %v808_v13 = vadd.f32 %v2537_v15, %v737_v4  ;;  %v1744_v14 = vunpack.c.l.bf16 %v1973_v1  ;;  %v1745_v16 = vunpack.c.h.bf16 %v1973_v1 }
  0x94   : > { %v871_v17 = vadd.f32 %v807_v7, %v537_v60  ;;  %v469_v10 = vmul.f32 %v2530_v12, %v1617_v8  ;;  %v539_v18 = vadd.f32 %v2545_v19, %v468_v0  ;;  %v1620_v20 = vunpack.c.l.bf16 %v1943_v6  ;;  %p2054_p12 = pnand %p2053_p11, %p2192_p5  ;;  %p2061_p2 = por %p2060_p1, %p2059_p0 }
  0x95   : > { %v1892_v22 = vpack.c.bf16 %v934_v9, %v933_v11  ;;  %v872_v23 = vadd.f32 %v808_v13, %v538_v3  ;;  %v738_v24 = vmul.f32 %v2521_v5, %v1744_v14  ;;  %v739_v25 = vmul.f32 %v2521_v5, %v1745_v16 }
  0x96   : > { %v935_v27 = vmax.f32 %v871_v17, 0.0  ;;  %v540_v28 = vadd.f32 %v2545_v19, %v469_v10  ;;  %v1621_v29 = vunpack.c.h.bf16 %v1943_v6  ;;  %v470_v30 = vmul.f32 %v2530_v12, %v1620_v20  ;;  %p2055_p13 = pneg %p2054_p12 }
  0x97   : > { %2002 = vst [vmem:[%s2269_s12 + $0xd8] sm:$0xff] %v1892_v22   ;;  %v936_v31 = vmax.f32 %v872_v23, 0.0  ;;  %v809_v32 = vadd.f32 %v2537_v15, %v738_v24  ;;  %v810_v33 = vadd.f32 %v2537_v15, %v739_v25  ;;  %v1748_v34 = vunpack.c.l.bf16 %v1974_v21 }
  0x98   : > { %v471_v35 = vmul.f32 %v2530_v12, %v1621_v29  ;;  %v541_v36 = vadd.f32 %v2545_v19, %v470_v30  ;;  %v1749_v37 = vunpack.c.h.bf16 %v1974_v21  ;;  %v1624_v38 = vunpack.c.l.bf16 %v1944_v26  ;;  %p2062_p3 = pnand %p2061_p2, %p2055_p13 }
  0x99   : > { %v1897_v40 = vpack.c.bf16 %v936_v31, %v935_v27  ;;  %v873_v41 = vadd.f32 %v809_v32, %v539_v18  ;;  %v874_v42 = vadd.f32 %v810_v33, %v540_v28  ;;  %v740_v43 = vmul.f32 %v2521_v5, %v1748_v34 }
  0x9a   : > { %v542_v44 = vadd.f32 %v2545_v19, %v471_v35  ;;  %v741_v45 = vmul.f32 %v2521_v5, %v1749_v37  ;;  %v1625_v46 = vunpack.c.h.bf16 %v1944_v26  ;;  %v472_v47 = vmul.f32 %v2530_v12, %v1624_v38 }
  0x9b   : > { %2003 = vst [vmem:[%s2269_s12 + $0xe0] sm:$0xff] %v1897_v40   ;;  %v937_v48 = vmax.f32 %v873_v41, 0.0  ;;  %v938_v49 = vmax.f32 %v874_v42, 0.0  ;;  %v811_v50 = vadd.f32 %v2537_v15, %v740_v43  ;;  %v1752_v51 = vunpack.c.l.bf16 %v1975_v39 }
  0x9c   : > { %v812_v52 = vadd.f32 %v2537_v15, %v741_v45  ;;  %v473_v53 = vmul.f32 %v2530_v12, %v1625_v46  ;;  %v1753_v54 = vunpack.c.h.bf16 %v1975_v39  ;;  %v543_v57 = vadd.f32 %v2545_v19, %v472_v47 }
  0x9d   : > { %v1902_v55 = vpack.c.bf16 %v938_v49, %v937_v48  ;;  %v875_v56 = vadd.f32 %v811_v50, %v541_v36  ;;  %v742_v58 = vmul.f32 %v2521_v5, %v1752_v51 }
  0x9e   : > { %v876_v59 = vadd.f32 %v812_v52, %v542_v44  ;;  %v544_v60 = vadd.f32 %v2545_v19, %v473_v53  ;;  %v743_v61 = vmul.f32 %v2521_v5, %v1753_v54 }
  0x9f   : > { %2004 = vst [vmem:[%s2269_s12 + $0xe8] sm:$0xff] %v1902_v55   ;;  %v939_v62 = vmax.f32 %v875_v56, 0.0  ;;  %v813_v12 = vadd.f32 %v2537_v15, %v742_v58 }
  0xa0   : > { %v940_v1 = vmax.f32 %v876_v59, 0.0  ;;  %v814_v63 = vadd.f32 %v2537_v15, %v743_v61 }
  0xa1   : > { %v877_v2 = vadd.f32 %v813_v12, %v543_v57 }
  0xa2   : > { %v1907_v3 = vpack.c.bf16 %v940_v1, %v939_v62  ;;  %v878_v4 = vadd.f32 %v814_v63, %v544_v60 }
  0xa3   : > { %v941_v6 = vmax.f32 %v877_v2, 0.0 }
  0xa4   : > { %2005 = vst [vmem:[%s2269_s12 + $0xf0] sm:$0xff] %v1907_v3   ;;  %v942_v19 = vmax.f32 %v878_v4, 0.0 }
  0xa6   : > { %v1912_v5 = vpack.c.bf16 %v942_v19, %v941_v6 }
  0xa8   : > { %2006 = vst [vmem:[%s2269_s12 + $0xf8] sm:$0xff] %v1912_v5  }
  0xa9   : > { %2065 = shalt.err (!%p2062_p3)
}
  0xaa   : > { %s2066_s10 = scalar_lea.hbm %s2614_s11, 4096  ;;  %s2070_s20 = scalar_lea.hbm %s2668_s6, 8192 }
  0xab   : > { %p2067_p4 = scmp.ne.s32.totalorder %s2614_s11, %s2066_s10  ;;  %p2071_p9 = scmp.lt.u32.totalorder %s2614_s11, %s2668_s6 }
  0xac   : > { %p2072_p10 = scmp.lt.u32.totalorder %s2070_s20, %s2066_s10  ;;  %p2074_p12 = scmp.lt.u32.totalorder %s2066_s10, %s2614_s11 }
  0xad   : > { %p2068_p7 = pnand %p2067_p4, %p2192_p5 }
  0xae   : > { %p2073_p11 = por %p2072_p10, %p2071_p9 }
  0xaf   : > { %p2069_p8 = pneg %p2068_p7 }
  0xb0   : > { %p2075_p13 = por %p2074_p12, %p2073_p11 }
  0xb2   : > { %p2076_p0 = pnand %p2075_p13, %p2069_p8 }
  0xb4   : > { %2079 = shalt.err (!%p2076_p0)
}
  0xb5   : > { %s2117_s13 = smov 64   ;;  %s2118_s29 = smov 4  }
  0xb6   : > { %2007 = dma.vmem_to_hbm [thread:$0]  (%p2192_p5), %s2616_s16, 4096, %s2614_s11, %s2621_s14, %s2117_s13, %s2117_s13, %s2118_s29  }
  0xb7 PF: > { %p2013_p1 = scmp.ge.s32.totalorder %s2114_s24, 2  ;;  %s1292_s9 = sand.u32 1, %s2102_s21  }
  0xb8   : > { %s1293_s25 = scalar_lea.sflag [#allocation3], %s1292_s9 }
  0xb9   : > { %p2010_p2 = pnand %p2013_p1, %p2196_p6 }
  0xbb   : > { %2097 = dma.done.wait (!%p2010_p2), %s1293_s25, 4096  }
  0xbc   : > { %2099 = vsyncadd (!%p2010_p2), %s1293_s25, 4294963200  ;;  %p16_p3 = scmp.ge.s32.totalorder %s2179_s27, 4   ;;  %s2671_s21 = smov %s2106_s22 }
  0xbd   : > { %s2672_s22 = smov %s2110_s23  ;;  %s2673_s23 = smov %s2190_s30 }
  0xbe   : > { %s2674_s24 = smov %s2179_s27  ;;  %18 = sbr.rel (!%p16_p3) target bundleno = 3 (0x3), region = 82 }
  0xc5   :  { %1298 = vsyncpa [#allocation3], 1 }
  0xc6   :  { %1300 = vsyncpa [#allocation3 + $0x1], 1 }

</bundles_post_ra>
